<compile_context>
chip_gen: v5e
topology: v5e:2x2
jax: 0.10.0
libtpu: 0.0.40
codegen_flags: <defaults>
</compile_context>

<pallas_src>
import math

import jax
import jax.numpy as jnp
from jax.experimental import pallas as pl
from jax.experimental.pallas import tpu as pltpu

NUM_LAYERS = 2
NUM_HEADS = 4  # head split is irrelevant for seq_len == 1 (attention == V)
LN_EPS = 1e-5


def _round_up(x, m):
    return ((x + m - 1) // m) * m


def _layernorm(h, g, b, eps=LN_EPS):
    mu = jnp.mean(h, axis=-1, keepdims=True)
    var = jnp.mean(jnp.square(h - mu), axis=-1, keepdims=True)
    return (h - mu) * jax.lax.rsqrt(var + eps) * g + b


def transformer_encoder_kernel(
    x_ref,
    w_in_ref, b_in_ref,
    w_attn_ref, b_attn_ref,
    ln1_g_ref, ln1_b_ref,
    w1_ref, b1_ref, w2_ref, b2_ref,
    ln2_g_ref, ln2_b_ref,
    w_out_ref, b_out_ref,
    lnf_g_ref, lnf_b_ref,
    o_ref,
):
    # bf16 operands -> MXU, f32 accumulation; biases / LN params stay f32.
    def mm(a_f32, w_bf16, b_f32):
        return jnp.dot(a_f32.astype(jnp.bfloat16), w_bf16,
                       preferred_element_type=jnp.float32) + b_f32

    x = x_ref[...]  # (bt, K_pad) f32

    # input projection
    h = mm(x, w_in_ref[...], b_in_ref[...])

    # 2 post-norm transformer encoder layers (static unroll)
    for l in range(NUM_LAYERS):
        # --- self-attention block, pre-fused for seq_len == 1 ---
        attn = mm(h, w_attn_ref[l], b_attn_ref[l])
        h = _layernorm(h + attn, ln1_g_ref[l], ln1_b_ref[l])

        # --- feed-forward block: Linear -> ReLU -> Linear ---
        ff = mm(h, w1_ref[l], b1_ref[l])
        ff = jnp.maximum(ff, 0.0)
        ff = mm(ff, w2_ref[l], b2_ref[l])
        h = _layernorm(h + ff, ln2_g_ref[l], ln2_b_ref[l])

    # output projection + final LayerNorm
    y = mm(h, w_out_ref[...], b_out_ref[...])
    y = _layernorm(y, lnf_g_ref[...], lnf_b_ref[...])

    # F.normalize(y, p=2, dim=1): y / max(||y||, 1e-12) == y * rsqrt(max(sumsq, 1e-24))
    sumsq = jnp.sum(y * y, axis=-1, keepdims=True)
    y = y * jax.lax.rsqrt(jnp.maximum(sumsq, 1e-24))

    o_ref[...] = y.astype(o_ref.dtype)


# kernel-argument order after wrapper-side fusion
PARAM_ORDER = (
    "w_in", "b_in",
    "w_attn", "b_attn",
    "ln1_g", "ln1_b",
    "w1", "b1", "w2", "b2",
    "ln2_g", "ln2_b",
    "w_out", "b_out",
    "lnf_g", "lnf_b",
)


def init_params(key, input_size, hidden, num_layers=NUM_LAYERS):
    """PyTorch-equivalent f32 parameters (weights stored as (in, out))."""
    ffn = hidden * 4
    out_dim = hidden // 2
    keys = iter(jax.random.split(key, 16))

    def w(shape, fan_in):
        return jax.random.normal(next(keys), shape, jnp.float32) / math.sqrt(fan_in)

    z = lambda *s: jnp.zeros(s, jnp.float32)
    o = lambda *s: jnp.ones(s, jnp.float32)

    return {
        "w_in": w((input_size, hidden), input_size),
        "b_in": z(1, hidden),
        "wv": w((num_layers, hidden, hidden), hidden),
        "bv": z(num_layers, 1, hidden),
        "wo": w((num_layers, hidden, hidden), hidden),
        "bo": z(num_layers, 1, hidden),
        "ln1_g": o(num_layers, 1, hidden),
        "ln1_b": z(num_layers, 1, hidden),
        "w1": w((num_layers, hidden, ffn), hidden),
        "b1": z(num_layers, 1, ffn),
        "w2": w((num_layers, ffn, hidden), ffn),
        "b2": z(num_layers, 1, hidden),
        "ln2_g": o(num_layers, 1, hidden),
        "ln2_b": z(num_layers, 1, hidden),
        "w_out": w((hidden, out_dim), hidden),
        "b_out": z(1, out_dim),
        "lnf_g": o(1, out_dim),
        "lnf_b": z(1, out_dim),
    }


def transformer_encoder(x, params, *, batch_tile=256):
    B, K = x.shape
    hidden = params["w_in"].shape[1]
    ffn = params["w1"].shape[2]
    out_dim = params["w_out"].shape[1]

    # ---------- wrapper-side prep (plain JAX, cheap, done once per call) ----------
    # 1) Fuse the seq_len==1 attention:  (h@Wv+bv)@Wo+bo == h@(Wv@Wo) + (bv@Wo+bo)
    w_attn = jnp.einsum("lij,ljk->lik", params["wv"], params["wo"])
    b_attn = jnp.einsum("lrj,ljk->lrk", params["bv"], params["wo"]) + params["bo"]

    # 2) Pad the ragged input-feature dim (112) up to a 128-lane tile; zeros are inert.
    Kp = _round_up(K, 128)
    xp = jnp.pad(x, ((0, 0), (0, Kp - K))) if Kp != K else x
    w_in = jnp.pad(params["w_in"], ((0, Kp - K), (0, 0))) if Kp != K else params["w_in"]

    # 3) bf16 weights for the MXU (halves the dominant weight DMA); biases/LN stay f32.
    bf = lambda a: a.astype(jnp.bfloat16)
    fused = {
        "w_in": bf(w_in), "b_in": params["b_in"],
        "w_attn": bf(w_attn), "b_attn": b_attn,
        "ln1_g": params["ln1_g"], "ln1_b": params["ln1_b"],
        "w1": bf(params["w1"]), "b1": params["b1"],
        "w2": bf(params["w2"]), "b2": params["b2"],
        "ln2_g": params["ln2_g"], "ln2_b": params["ln2_b"],
        "w_out": bf(params["w_out"]), "b_out": params["b_out"],
        "lnf_g": params["lnf_g"], "lnf_b": params["lnf_b"],
    }

    # 4) Batch tiling: cap the tile (keeps activations bounded, lets the batch grid
    #    pipeline and split across v7x's two TensorCores), pad B to a multiple.
    bt = min(batch_tile, _round_up(B, 8))
    Bp = _round_up(B, bt)
    if Bp != B:
        xp = jnp.pad(xp, ((0, Bp - B), (0, 0)))
    grid = (Bp // bt,)

    # ---------- specs ----------
    def full_spec(p):
        # whole-array block, identical for every grid step (stays VMEM-resident)
        return pl.BlockSpec(p.shape, lambda i, nd=p.ndim: (0,) * nd)

    in_specs = [pl.BlockSpec((bt, Kp), lambda i: (i, 0))]
    args = [xp]
    for name in PARAM_ORDER:
        p = fused[name]
        in_specs.append(full_spec(p))
        args.append(p)

    out_specs = pl.BlockSpec((bt, out_dim), lambda i: (i, 0))

    # ---------- cost estimate (lets XLA overlap the weight DMA with other work) ----------
    flops = 2 * Bp * (
        Kp * hidden
        + NUM_LAYERS * (hidden * hidden + 2 * hidden * ffn)
        + hidden * out_dim
    )
    bytes_accessed = sum(int(a.size) * a.dtype.itemsize for a in args) + Bp * out_dim * 4
    cost = pl.CostEstimate(flops=flops, transcendentals=6 * Bp,
                           bytes_accessed=bytes_accessed)

    out = pl.pallas_call(
        transformer_encoder_kernel,
        out_shape=jax.ShapeDtypeStruct((Bp, out_dim), jnp.float32),
        grid=grid,
        in_specs=in_specs,
        out_specs=out_specs,
        compiler_params=pltpu.CompilerParams(
            dimension_semantics=("parallel",),
            vmem_limit_bytes=48 * 1024 * 1024,  # under v7x's 64 MiB physical VMEM
        ),
        cost_estimate=cost,
    )(*args)

    return out[:B] if Bp != B else out


def _reference(x, params):
    """Pure-JAX f32 reference of the original (unfused) PyTorch forward."""
    h = x @ params["w_in"] + params["b_in"]
    for l in range(NUM_LAYERS):
        v = h @ params["wv"][l] + params["bv"][l]
        attn = v @ params["wo"][l] + params["bo"][l]
        h = _layernorm(h + attn, params["ln1_g"][l], params["ln1_b"][l])
        ff = jnp.maximum(h @ params["w1"][l] + params["b1"][l], 0.0)
        ff = ff @ params["w2"][l] + params["b2"][l]
        h = _layernorm(h + ff, params["ln2_g"][l], params["ln2_b"][l])
    y = h @ params["w_out"] + params["b_out"]
    y = _layernorm(y, params["lnf_g"], params["lnf_b"])
    nrm = jnp.sqrt(jnp.sum(y * y, axis=-1, keepdims=True))
    return y / jnp.maximum(nrm, 1e-12)


if __name__ == "__main__":
    input_size = 112
    hidden_size = 256
    batch = 8

    key = jax.random.PRNGKey(0)
    k_params, k_x = jax.random.split(key)

    params = init_params(k_params, input_size, hidden_size)
    x = jax.random.normal(k_x, (batch, input_size), jnp.float32)

    y = transformer_encoder(x, params)
    jax.block_until_ready(y)

    assert y.shape == (batch, hidden_size // 2), y.shape

    # rows are L2-normalized
    norms = jnp.linalg.norm(y, axis=1)
    assert bool(jnp.all(jnp.abs(norms - 1.0) < 1e-2)), norms

    # matches the f32 unfused reference within bf16-weight tolerance
    y_ref = _reference(x, params)
    max_err = float(jnp.max(jnp.abs(y - y_ref)))
    assert max_err < 3e-2, max_err

    print("KERNEL_OK")
</pallas_src>

<mosaic_0001>
module attributes {stable_mosaic.version = 11 : i64} {
  func.func @transformer_encoder_kernel(%arg0: i32, %arg1: memref<8x128xf32, #tpu.memory_space<vmem>>, %arg2: memref<128x256xbf16, #tpu.memory_space<vmem>>, %arg3: memref<1x256xf32, #tpu.memory_space<vmem>>, %arg4: memref<2x256x256xbf16, #tpu.memory_space<vmem>>, %arg5: memref<2x1x256xf32, #tpu.memory_space<vmem>>, %arg6: memref<2x1x256xf32, #tpu.memory_space<vmem>>, %arg7: memref<2x1x256xf32, #tpu.memory_space<vmem>>, %arg8: memref<2x256x1024xbf16, #tpu.memory_space<vmem>>, %arg9: memref<2x1x1024xf32, #tpu.memory_space<vmem>>, %arg10: memref<2x1024x256xbf16, #tpu.memory_space<vmem>>, %arg11: memref<2x1x256xf32, #tpu.memory_space<vmem>>, %arg12: memref<2x1x256xf32, #tpu.memory_space<vmem>>, %arg13: memref<2x1x256xf32, #tpu.memory_space<vmem>>, %arg14: memref<256x128xbf16, #tpu.memory_space<vmem>>, %arg15: memref<1x128xf32, #tpu.memory_space<vmem>>, %arg16: memref<1x128xf32, #tpu.memory_space<vmem>>, %arg17: memref<1x128xf32, #tpu.memory_space<vmem>>, %arg18: memref<8x128xf32, #tpu.memory_space<vmem>>) attributes {dimension_semantics = [#tpu.dimension_semantics<parallel>], iteration_bounds = array<i64: 1>, scalar_prefetch = 0 : i64, scratch_operands = 0 : i64, tpu.core_type = #tpu.core_type<tc>, window_params = [{transform_indices = @transform_0, window_bounds = array<i64: 8, 128>}, {pipeline_mode = #tpu.pipeline_mode<synchronous>, transform_indices = @transform_1, window_bounds = array<i64: 128, 256>}, {pipeline_mode = #tpu.pipeline_mode<synchronous>, transform_indices = @transform_2, window_bounds = array<i64: 1, 256>}, {pipeline_mode = #tpu.pipeline_mode<synchronous>, transform_indices = @transform_3, window_bounds = array<i64: 2, 256, 256>}, {pipeline_mode = #tpu.pipeline_mode<synchronous>, transform_indices = @transform_4, window_bounds = array<i64: 2, 1, 256>}, {pipeline_mode = #tpu.pipeline_mode<synchronous>, transform_indices = @transform_5, window_bounds = array<i64: 2, 1, 256>}, {pipeline_mode = #tpu.pipeline_mode<synchronous>, transform_indices = @transform_6, window_bounds = array<i64: 2, 1, 256>}, {pipeline_mode = #tpu.pipeline_mode<synchronous>, transform_indices = @transform_7, window_bounds = array<i64: 2, 256, 1024>}, {pipeline_mode = #tpu.pipeline_mode<synchronous>, transform_indices = @transform_8, window_bounds = array<i64: 2, 1, 1024>}, {pipeline_mode = #tpu.pipeline_mode<synchronous>, transform_indices = @transform_9, window_bounds = array<i64: 2, 1024, 256>}, {pipeline_mode = #tpu.pipeline_mode<synchronous>, transform_indices = @transform_10, window_bounds = array<i64: 2, 1, 256>}, {pipeline_mode = #tpu.pipeline_mode<synchronous>, transform_indices = @transform_11, window_bounds = array<i64: 2, 1, 256>}, {pipeline_mode = #tpu.pipeline_mode<synchronous>, transform_indices = @transform_12, window_bounds = array<i64: 2, 1, 256>}, {pipeline_mode = #tpu.pipeline_mode<synchronous>, transform_indices = @transform_13, window_bounds = array<i64: 256, 128>}, {pipeline_mode = #tpu.pipeline_mode<synchronous>, transform_indices = @transform_14, window_bounds = array<i64: 1, 128>}, {pipeline_mode = #tpu.pipeline_mode<synchronous>, transform_indices = @transform_15, window_bounds = array<i64: 1, 128>}, {pipeline_mode = #tpu.pipeline_mode<synchronous>, transform_indices = @transform_16, window_bounds = array<i64: 1, 128>}, {transform_indices = @transform_17, window_bounds = array<i64: 8, 128>}]} {
    %c0 = arith.constant 0 : index
    %c0_0 = arith.constant 0 : index
    %0 = vector.load %arg1[%c0, %c0_0] : memref<8x128xf32, #tpu.memory_space<vmem>>, vector<8x128xf32>
    %c0_1 = arith.constant 0 : index
    %c0_2 = arith.constant 0 : index
    %1 = vector.load %arg2[%c0_1, %c0_2] : memref<128x256xbf16, #tpu.memory_space<vmem>>, vector<128x256xbf16>
    %c0_3 = arith.constant 0 : index
    %c0_4 = arith.constant 0 : index
    %2 = vector.load %arg3[%c0_3, %c0_4] : memref<1x256xf32, #tpu.memory_space<vmem>>, vector<1x256xf32>
    %3 = arith.truncf %0 : vector<8x128xf32> to vector<8x128xbf16>
    %cst = arith.constant dense<0.000000e+00> : vector<8x256xf32>
    %4 = tpu.matmul %3, %1, %cst {dimension_numbers = #tpu.dot_dimension_numbers<[1], [0], [0], [1], [0, 0, 1, 1], [], []>} : vector<8x128xbf16>, vector<128x256xbf16>, vector<8x256xf32> -> vector<8x256xf32>
    %5 = vector.broadcast %2 : vector<1x256xf32> to vector<8x256xf32>
    %6 = arith.addf %4, %5 : vector<8x256xf32>
    %c0_5 = arith.constant 0 : index
    %c0_6 = arith.constant 0 : index
    %c0_7 = arith.constant 0 : index
    %7 = vector.load %arg4[%c0_5, %c0_6, %c0_7] : memref<2x256x256xbf16, #tpu.memory_space<vmem>>, vector<1x256x256xbf16>
    %8 = vector.shape_cast %7 : vector<1x256x256xbf16> to vector<256x256xbf16>
    %c0_8 = arith.constant 0 : index
    %c0_9 = arith.constant 0 : index
    %c0_10 = arith.constant 0 : index
    %9 = vector.load %arg5[%c0_8, %c0_9, %c0_10] : memref<2x1x256xf32, #tpu.memory_space<vmem>>, vector<1x1x256xf32>
    %10 = vector.shape_cast %9 : vector<1x1x256xf32> to vector<1x256xf32>
    %11 = arith.truncf %6 : vector<8x256xf32> to vector<8x256xbf16>
    %cst_11 = arith.constant dense<0.000000e+00> : vector<8x256xf32>
    %12 = tpu.matmul %11, %8, %cst_11 {dimension_numbers = #tpu.dot_dimension_numbers<[1], [0], [0], [1], [0, 0, 1, 1], [], []>} : vector<8x256xbf16>, vector<256x256xbf16>, vector<8x256xf32> -> vector<8x256xf32>
    %13 = vector.broadcast %10 : vector<1x256xf32> to vector<8x256xf32>
    %14 = arith.addf %12, %13 : vector<8x256xf32>
    %15 = arith.addf %6, %14 : vector<8x256xf32>
    %c0_12 = arith.constant 0 : index
    %c0_13 = arith.constant 0 : index
    %c0_14 = arith.constant 0 : index
    %16 = vector.load %arg6[%c0_12, %c0_13, %c0_14] : memref<2x1x256xf32, #tpu.memory_space<vmem>>, vector<1x1x256xf32>
    %17 = vector.shape_cast %16 : vector<1x1x256xf32> to vector<1x256xf32>
    %c0_15 = arith.constant 0 : index
    %c0_16 = arith.constant 0 : index
    %c0_17 = arith.constant 0 : index
    %18 = vector.load %arg7[%c0_15, %c0_16, %c0_17] : memref<2x1x256xf32, #tpu.memory_space<vmem>>, vector<1x1x256xf32>
    %19 = vector.shape_cast %18 : vector<1x1x256xf32> to vector<1x256xf32>
    %cst_18 = arith.constant dense<0.000000e+00> : vector<8xf32>
    %20 = vector.multi_reduction <add>, %15, %cst_18 [1] : vector<8x256xf32> to vector<8xf32>
    %21 = vector.shape_cast %20 : vector<8xf32> to vector<8x1xf32>
    %cst_19 = arith.constant 2.560000e+02 : f32
    %22 = vector.broadcast %cst_19 : f32 to vector<8x1xf32>
    %23 = arith.divf %21, %22 : vector<8x1xf32>
    %24 = vector.broadcast %23 : vector<8x1xf32> to vector<8x256xf32>
    %25 = arith.subf %15, %24 : vector<8x256xf32>
    %26 = arith.mulf %25, %25 : vector<8x256xf32>
    %cst_20 = arith.constant dense<0.000000e+00> : vector<8xf32>
    %27 = vector.multi_reduction <add>, %26, %cst_20 [1] : vector<8x256xf32> to vector<8xf32>
    %28 = vector.shape_cast %27 : vector<8xf32> to vector<8x1xf32>
    %cst_21 = arith.constant 2.560000e+02 : f32
    %29 = vector.broadcast %cst_21 : f32 to vector<8x1xf32>
    %30 = arith.divf %28, %29 : vector<8x1xf32>
    %31 = vector.broadcast %23 : vector<8x1xf32> to vector<8x256xf32>
    %32 = arith.subf %15, %31 : vector<8x256xf32>
    %cst_22 = arith.constant 9.99999974E-6 : f32
    %33 = vector.broadcast %cst_22 : f32 to vector<8x1xf32>
    %34 = arith.addf %30, %33 : vector<8x1xf32>
    %35 = math.rsqrt %34 : vector<8x1xf32>
    %36 = vector.broadcast %35 : vector<8x1xf32> to vector<8x256xf32>
    %37 = arith.mulf %32, %36 : vector<8x256xf32>
    %38 = vector.broadcast %17 : vector<1x256xf32> to vector<8x256xf32>
    %39 = arith.mulf %37, %38 : vector<8x256xf32>
    %40 = vector.broadcast %19 : vector<1x256xf32> to vector<8x256xf32>
    %41 = arith.addf %39, %40 : vector<8x256xf32>
    %c0_23 = arith.constant 0 : index
    %c0_24 = arith.constant 0 : index
    %c0_25 = arith.constant 0 : index
    %42 = vector.load %arg8[%c0_23, %c0_24, %c0_25] : memref<2x256x1024xbf16, #tpu.memory_space<vmem>>, vector<1x256x1024xbf16>
    %43 = vector.shape_cast %42 : vector<1x256x1024xbf16> to vector<256x1024xbf16>
    %c0_26 = arith.constant 0 : index
    %c0_27 = arith.constant 0 : index
    %c0_28 = arith.constant 0 : index
    %44 = vector.load %arg9[%c0_26, %c0_27, %c0_28] : memref<2x1x1024xf32, #tpu.memory_space<vmem>>, vector<1x1x1024xf32>
    %45 = vector.shape_cast %44 : vector<1x1x1024xf32> to vector<1x1024xf32>
    %46 = arith.truncf %41 : vector<8x256xf32> to vector<8x256xbf16>
    %cst_29 = arith.constant dense<0.000000e+00> : vector<8x1024xf32>
    %47 = tpu.matmul %46, %43, %cst_29 {dimension_numbers = #tpu.dot_dimension_numbers<[1], [0], [0], [1], [0, 0, 1, 1], [], []>} : vector<8x256xbf16>, vector<256x1024xbf16>, vector<8x1024xf32> -> vector<8x1024xf32>
    %48 = vector.broadcast %45 : vector<1x1024xf32> to vector<8x1024xf32>
    %49 = arith.addf %47, %48 : vector<8x1024xf32>
    %cst_30 = arith.constant 0.000000e+00 : f32
    %50 = vector.broadcast %cst_30 : f32 to vector<8x1024xf32>
    %51 = arith.maximumf %49, %50 : vector<8x1024xf32>
    %c0_31 = arith.constant 0 : index
    %c0_32 = arith.constant 0 : index
    %c0_33 = arith.constant 0 : index
    %52 = vector.load %arg10[%c0_31, %c0_32, %c0_33] : memref<2x1024x256xbf16, #tpu.memory_space<vmem>>, vector<1x1024x256xbf16>
    %53 = vector.shape_cast %52 : vector<1x1024x256xbf16> to vector<1024x256xbf16>
    %c0_34 = arith.constant 0 : index
    %c0_35 = arith.constant 0 : index
    %c0_36 = arith.constant 0 : index
    %54 = vector.load %arg11[%c0_34, %c0_35, %c0_36] : memref<2x1x256xf32, #tpu.memory_space<vmem>>, vector<1x1x256xf32>
    %55 = vector.shape_cast %54 : vector<1x1x256xf32> to vector<1x256xf32>
    %56 = arith.truncf %51 : vector<8x1024xf32> to vector<8x1024xbf16>
    %cst_37 = arith.constant dense<0.000000e+00> : vector<8x256xf32>
    %57 = tpu.matmul %56, %53, %cst_37 {dimension_numbers = #tpu.dot_dimension_numbers<[1], [0], [0], [1], [0, 0, 1, 1], [], []>} : vector<8x1024xbf16>, vector<1024x256xbf16>, vector<8x256xf32> -> vector<8x256xf32>
    %58 = vector.broadcast %55 : vector<1x256xf32> to vector<8x256xf32>
    %59 = arith.addf %57, %58 : vector<8x256xf32>
    %60 = arith.addf %41, %59 : vector<8x256xf32>
    %c0_38 = arith.constant 0 : index
    %c0_39 = arith.constant 0 : index
    %c0_40 = arith.constant 0 : index
    %61 = vector.load %arg12[%c0_38, %c0_39, %c0_40] : memref<2x1x256xf32, #tpu.memory_space<vmem>>, vector<1x1x256xf32>
    %62 = vector.shape_cast %61 : vector<1x1x256xf32> to vector<1x256xf32>
    %c0_41 = arith.constant 0 : index
    %c0_42 = arith.constant 0 : index
    %c0_43 = arith.constant 0 : index
    %63 = vector.load %arg13[%c0_41, %c0_42, %c0_43] : memref<2x1x256xf32, #tpu.memory_space<vmem>>, vector<1x1x256xf32>
    %64 = vector.shape_cast %63 : vector<1x1x256xf32> to vector<1x256xf32>
    %cst_44 = arith.constant dense<0.000000e+00> : vector<8xf32>
    %65 = vector.multi_reduction <add>, %60, %cst_44 [1] : vector<8x256xf32> to vector<8xf32>
    %66 = vector.shape_cast %65 : vector<8xf32> to vector<8x1xf32>
    %cst_45 = arith.constant 2.560000e+02 : f32
    %67 = vector.broadcast %cst_45 : f32 to vector<8x1xf32>
    %68 = arith.divf %66, %67 : vector<8x1xf32>
    %69 = vector.broadcast %68 : vector<8x1xf32> to vector<8x256xf32>
    %70 = arith.subf %60, %69 : vector<8x256xf32>
    %71 = arith.mulf %70, %70 : vector<8x256xf32>
    %cst_46 = arith.constant dense<0.000000e+00> : vector<8xf32>
    %72 = vector.multi_reduction <add>, %71, %cst_46 [1] : vector<8x256xf32> to vector<8xf32>
    %73 = vector.shape_cast %72 : vector<8xf32> to vector<8x1xf32>
    %cst_47 = arith.constant 2.560000e+02 : f32
    %74 = vector.broadcast %cst_47 : f32 to vector<8x1xf32>
    %75 = arith.divf %73, %74 : vector<8x1xf32>
    %76 = vector.broadcast %68 : vector<8x1xf32> to vector<8x256xf32>
    %77 = arith.subf %60, %76 : vector<8x256xf32>
    %cst_48 = arith.constant 9.99999974E-6 : f32
    %78 = vector.broadcast %cst_48 : f32 to vector<8x1xf32>
    %79 = arith.addf %75, %78 : vector<8x1xf32>
    %80 = math.rsqrt %79 : vector<8x1xf32>
    %81 = vector.broadcast %80 : vector<8x1xf32> to vector<8x256xf32>
    %82 = arith.mulf %77, %81 : vector<8x256xf32>
    %83 = vector.broadcast %62 : vector<1x256xf32> to vector<8x256xf32>
    %84 = arith.mulf %82, %83 : vector<8x256xf32>
    %85 = vector.broadcast %64 : vector<1x256xf32> to vector<8x256xf32>
    %86 = arith.addf %84, %85 : vector<8x256xf32>
    %c1 = arith.constant 1 : index
    %c0_49 = arith.constant 0 : index
    %c0_50 = arith.constant 0 : index
    %87 = vector.load %arg4[%c1, %c0_49, %c0_50] : memref<2x256x256xbf16, #tpu.memory_space<vmem>>, vector<1x256x256xbf16>
    %88 = vector.shape_cast %87 : vector<1x256x256xbf16> to vector<256x256xbf16>
    %c1_51 = arith.constant 1 : index
    %c0_52 = arith.constant 0 : index
    %c0_53 = arith.constant 0 : index
    %89 = vector.load %arg5[%c1_51, %c0_52, %c0_53] : memref<2x1x256xf32, #tpu.memory_space<vmem>>, vector<1x1x256xf32>
    %90 = vector.shape_cast %89 : vector<1x1x256xf32> to vector<1x256xf32>
    %91 = arith.truncf %86 : vector<8x256xf32> to vector<8x256xbf16>
    %cst_54 = arith.constant dense<0.000000e+00> : vector<8x256xf32>
    %92 = tpu.matmul %91, %88, %cst_54 {dimension_numbers = #tpu.dot_dimension_numbers<[1], [0], [0], [1], [0, 0, 1, 1], [], []>} : vector<8x256xbf16>, vector<256x256xbf16>, vector<8x256xf32> -> vector<8x256xf32>
    %93 = vector.broadcast %90 : vector<1x256xf32> to vector<8x256xf32>
    %94 = arith.addf %92, %93 : vector<8x256xf32>
    %95 = arith.addf %86, %94 : vector<8x256xf32>
    %c1_55 = arith.constant 1 : index
    %c0_56 = arith.constant 0 : index
    %c0_57 = arith.constant 0 : index
    %96 = vector.load %arg6[%c1_55, %c0_56, %c0_57] : memref<2x1x256xf32, #tpu.memory_space<vmem>>, vector<1x1x256xf32>
    %97 = vector.shape_cast %96 : vector<1x1x256xf32> to vector<1x256xf32>
    %c1_58 = arith.constant 1 : index
    %c0_59 = arith.constant 0 : index
    %c0_60 = arith.constant 0 : index
    %98 = vector.load %arg7[%c1_58, %c0_59, %c0_60] : memref<2x1x256xf32, #tpu.memory_space<vmem>>, vector<1x1x256xf32>
    %99 = vector.shape_cast %98 : vector<1x1x256xf32> to vector<1x256xf32>
    %cst_61 = arith.constant dense<0.000000e+00> : vector<8xf32>
    %100 = vector.multi_reduction <add>, %95, %cst_61 [1] : vector<8x256xf32> to vector<8xf32>
    %101 = vector.shape_cast %100 : vector<8xf32> to vector<8x1xf32>
    %cst_62 = arith.constant 2.560000e+02 : f32
    %102 = vector.broadcast %cst_62 : f32 to vector<8x1xf32>
    %103 = arith.divf %101, %102 : vector<8x1xf32>
    %104 = vector.broadcast %103 : vector<8x1xf32> to vector<8x256xf32>
    %105 = arith.subf %95, %104 : vector<8x256xf32>
    %106 = arith.mulf %105, %105 : vector<8x256xf32>
    %cst_63 = arith.constant dense<0.000000e+00> : vector<8xf32>
    %107 = vector.multi_reduction <add>, %106, %cst_63 [1] : vector<8x256xf32> to vector<8xf32>
    %108 = vector.shape_cast %107 : vector<8xf32> to vector<8x1xf32>
    %cst_64 = arith.constant 2.560000e+02 : f32
    %109 = vector.broadcast %cst_64 : f32 to vector<8x1xf32>
    %110 = arith.divf %108, %109 : vector<8x1xf32>
    %111 = vector.broadcast %103 : vector<8x1xf32> to vector<8x256xf32>
    %112 = arith.subf %95, %111 : vector<8x256xf32>
    %cst_65 = arith.constant 9.99999974E-6 : f32
    %113 = vector.broadcast %cst_65 : f32 to vector<8x1xf32>
    %114 = arith.addf %110, %113 : vector<8x1xf32>
    %115 = math.rsqrt %114 : vector<8x1xf32>
    %116 = vector.broadcast %115 : vector<8x1xf32> to vector<8x256xf32>
    %117 = arith.mulf %112, %116 : vector<8x256xf32>
    %118 = vector.broadcast %97 : vector<1x256xf32> to vector<8x256xf32>
    %119 = arith.mulf %117, %118 : vector<8x256xf32>
    %120 = vector.broadcast %99 : vector<1x256xf32> to vector<8x256xf32>
    %121 = arith.addf %119, %120 : vector<8x256xf32>
    %c1_66 = arith.constant 1 : index
    %c0_67 = arith.constant 0 : index
    %c0_68 = arith.constant 0 : index
    %122 = vector.load %arg8[%c1_66, %c0_67, %c0_68] : memref<2x256x1024xbf16, #tpu.memory_space<vmem>>, vector<1x256x1024xbf16>
    %123 = vector.shape_cast %122 : vector<1x256x1024xbf16> to vector<256x1024xbf16>
    %c1_69 = arith.constant 1 : index
    %c0_70 = arith.constant 0 : index
    %c0_71 = arith.constant 0 : index
    %124 = vector.load %arg9[%c1_69, %c0_70, %c0_71] : memref<2x1x1024xf32, #tpu.memory_space<vmem>>, vector<1x1x1024xf32>
    %125 = vector.shape_cast %124 : vector<1x1x1024xf32> to vector<1x1024xf32>
    %126 = arith.truncf %121 : vector<8x256xf32> to vector<8x256xbf16>
    %cst_72 = arith.constant dense<0.000000e+00> : vector<8x1024xf32>
    %127 = tpu.matmul %126, %123, %cst_72 {dimension_numbers = #tpu.dot_dimension_numbers<[1], [0], [0], [1], [0, 0, 1, 1], [], []>} : vector<8x256xbf16>, vector<256x1024xbf16>, vector<8x1024xf32> -> vector<8x1024xf32>
    %128 = vector.broadcast %125 : vector<1x1024xf32> to vector<8x1024xf32>
    %129 = arith.addf %127, %128 : vector<8x1024xf32>
    %cst_73 = arith.constant 0.000000e+00 : f32
    %130 = vector.broadcast %cst_73 : f32 to vector<8x1024xf32>
    %131 = arith.maximumf %129, %130 : vector<8x1024xf32>
    %c1_74 = arith.constant 1 : index
    %c0_75 = arith.constant 0 : index
    %c0_76 = arith.constant 0 : index
    %132 = vector.load %arg10[%c1_74, %c0_75, %c0_76] : memref<2x1024x256xbf16, #tpu.memory_space<vmem>>, vector<1x1024x256xbf16>
    %133 = vector.shape_cast %132 : vector<1x1024x256xbf16> to vector<1024x256xbf16>
    %c1_77 = arith.constant 1 : index
    %c0_78 = arith.constant 0 : index
    %c0_79 = arith.constant 0 : index
    %134 = vector.load %arg11[%c1_77, %c0_78, %c0_79] : memref<2x1x256xf32, #tpu.memory_space<vmem>>, vector<1x1x256xf32>
    %135 = vector.shape_cast %134 : vector<1x1x256xf32> to vector<1x256xf32>
    %136 = arith.truncf %131 : vector<8x1024xf32> to vector<8x1024xbf16>
    %cst_80 = arith.constant dense<0.000000e+00> : vector<8x256xf32>
    %137 = tpu.matmul %136, %133, %cst_80 {dimension_numbers = #tpu.dot_dimension_numbers<[1], [0], [0], [1], [0, 0, 1, 1], [], []>} : vector<8x1024xbf16>, vector<1024x256xbf16>, vector<8x256xf32> -> vector<8x256xf32>
    %138 = vector.broadcast %135 : vector<1x256xf32> to vector<8x256xf32>
    %139 = arith.addf %137, %138 : vector<8x256xf32>
    %140 = arith.addf %121, %139 : vector<8x256xf32>
    %c1_81 = arith.constant 1 : index
    %c0_82 = arith.constant 0 : index
    %c0_83 = arith.constant 0 : index
    %141 = vector.load %arg12[%c1_81, %c0_82, %c0_83] : memref<2x1x256xf32, #tpu.memory_space<vmem>>, vector<1x1x256xf32>
    %142 = vector.shape_cast %141 : vector<1x1x256xf32> to vector<1x256xf32>
    %c1_84 = arith.constant 1 : index
    %c0_85 = arith.constant 0 : index
    %c0_86 = arith.constant 0 : index
    %143 = vector.load %arg13[%c1_84, %c0_85, %c0_86] : memref<2x1x256xf32, #tpu.memory_space<vmem>>, vector<1x1x256xf32>
    %144 = vector.shape_cast %143 : vector<1x1x256xf32> to vector<1x256xf32>
    %cst_87 = arith.constant dense<0.000000e+00> : vector<8xf32>
    %145 = vector.multi_reduction <add>, %140, %cst_87 [1] : vector<8x256xf32> to vector<8xf32>
    %146 = vector.shape_cast %145 : vector<8xf32> to vector<8x1xf32>
    %cst_88 = arith.constant 2.560000e+02 : f32
    %147 = vector.broadcast %cst_88 : f32 to vector<8x1xf32>
    %148 = arith.divf %146, %147 : vector<8x1xf32>
    %149 = vector.broadcast %148 : vector<8x1xf32> to vector<8x256xf32>
    %150 = arith.subf %140, %149 : vector<8x256xf32>
    %151 = arith.mulf %150, %150 : vector<8x256xf32>
    %cst_89 = arith.constant dense<0.000000e+00> : vector<8xf32>
    %152 = vector.multi_reduction <add>, %151, %cst_89 [1] : vector<8x256xf32> to vector<8xf32>
    %153 = vector.shape_cast %152 : vector<8xf32> to vector<8x1xf32>
    %cst_90 = arith.constant 2.560000e+02 : f32
    %154 = vector.broadcast %cst_90 : f32 to vector<8x1xf32>
    %155 = arith.divf %153, %154 : vector<8x1xf32>
    %156 = vector.broadcast %148 : vector<8x1xf32> to vector<8x256xf32>
    %157 = arith.subf %140, %156 : vector<8x256xf32>
    %cst_91 = arith.constant 9.99999974E-6 : f32
    %158 = vector.broadcast %cst_91 : f32 to vector<8x1xf32>
    %159 = arith.addf %155, %158 : vector<8x1xf32>
    %160 = math.rsqrt %159 : vector<8x1xf32>
    %161 = vector.broadcast %160 : vector<8x1xf32> to vector<8x256xf32>
    %162 = arith.mulf %157, %161 : vector<8x256xf32>
    %163 = vector.broadcast %142 : vector<1x256xf32> to vector<8x256xf32>
    %164 = arith.mulf %162, %163 : vector<8x256xf32>
    %165 = vector.broadcast %144 : vector<1x256xf32> to vector<8x256xf32>
    %166 = arith.addf %164, %165 : vector<8x256xf32>
    %c0_92 = arith.constant 0 : index
    %c0_93 = arith.constant 0 : index
    %167 = vector.load %arg14[%c0_92, %c0_93] : memref<256x128xbf16, #tpu.memory_space<vmem>>, vector<256x128xbf16>
    %c0_94 = arith.constant 0 : index
    %c0_95 = arith.constant 0 : index
    %168 = vector.load %arg15[%c0_94, %c0_95] : memref<1x128xf32, #tpu.memory_space<vmem>>, vector<1x128xf32>
    %169 = arith.truncf %166 : vector<8x256xf32> to vector<8x256xbf16>
    %cst_96 = arith.constant dense<0.000000e+00> : vector<8x128xf32>
    %170 = tpu.matmul %169, %167, %cst_96 {dimension_numbers = #tpu.dot_dimension_numbers<[1], [0], [0], [1], [0, 0, 1, 1], [], []>} : vector<8x256xbf16>, vector<256x128xbf16>, vector<8x128xf32> -> vector<8x128xf32>
    %171 = vector.broadcast %168 : vector<1x128xf32> to vector<8x128xf32>
    %172 = arith.addf %170, %171 : vector<8x128xf32>
    %c0_97 = arith.constant 0 : index
    %c0_98 = arith.constant 0 : index
    %173 = vector.load %arg16[%c0_97, %c0_98] : memref<1x128xf32, #tpu.memory_space<vmem>>, vector<1x128xf32>
    %c0_99 = arith.constant 0 : index
    %c0_100 = arith.constant 0 : index
    %174 = vector.load %arg17[%c0_99, %c0_100] : memref<1x128xf32, #tpu.memory_space<vmem>>, vector<1x128xf32>
    %cst_101 = arith.constant dense<0.000000e+00> : vector<8xf32>
    %175 = vector.multi_reduction <add>, %172, %cst_101 [1] : vector<8x128xf32> to vector<8xf32>
    %176 = vector.shape_cast %175 : vector<8xf32> to vector<8x1xf32>
    %cst_102 = arith.constant 1.280000e+02 : f32
    %177 = vector.broadcast %cst_102 : f32 to vector<8x1xf32>
    %178 = arith.divf %176, %177 : vector<8x1xf32>
    %179 = vector.broadcast %178 : vector<8x1xf32> to vector<8x128xf32>
    %180 = arith.subf %172, %179 : vector<8x128xf32>
    %181 = arith.mulf %180, %180 : vector<8x128xf32>
    %cst_103 = arith.constant dense<0.000000e+00> : vector<8xf32>
    %182 = vector.multi_reduction <add>, %181, %cst_103 [1] : vector<8x128xf32> to vector<8xf32>
    %183 = vector.shape_cast %182 : vector<8xf32> to vector<8x1xf32>
    %cst_104 = arith.constant 1.280000e+02 : f32
    %184 = vector.broadcast %cst_104 : f32 to vector<8x1xf32>
    %185 = arith.divf %183, %184 : vector<8x1xf32>
    %186 = vector.broadcast %178 : vector<8x1xf32> to vector<8x128xf32>
    %187 = arith.subf %172, %186 : vector<8x128xf32>
    %cst_105 = arith.constant 9.99999974E-6 : f32
    %188 = vector.broadcast %cst_105 : f32 to vector<8x1xf32>
    %189 = arith.addf %185, %188 : vector<8x1xf32>
    %190 = math.rsqrt %189 : vector<8x1xf32>
    %191 = vector.broadcast %190 : vector<8x1xf32> to vector<8x128xf32>
    %192 = arith.mulf %187, %191 : vector<8x128xf32>
    %193 = vector.broadcast %173 : vector<1x128xf32> to vector<8x128xf32>
    %194 = arith.mulf %192, %193 : vector<8x128xf32>
    %195 = vector.broadcast %174 : vector<1x128xf32> to vector<8x128xf32>
    %196 = arith.addf %194, %195 : vector<8x128xf32>
    %197 = arith.mulf %196, %196 : vector<8x128xf32>
    %cst_106 = arith.constant dense<0.000000e+00> : vector<8xf32>
    %198 = vector.multi_reduction <add>, %197, %cst_106 [1] : vector<8x128xf32> to vector<8xf32>
    %199 = vector.shape_cast %198 : vector<8xf32> to vector<8x1xf32>
    %cst_107 = arith.constant 1.000000e-24 : f32
    %200 = vector.broadcast %cst_107 : f32 to vector<8x1xf32>
    %201 = arith.maximumf %199, %200 : vector<8x1xf32>
    %202 = math.rsqrt %201 : vector<8x1xf32>
    %203 = vector.broadcast %202 : vector<8x1xf32> to vector<8x128xf32>
    %204 = arith.mulf %196, %203 : vector<8x128xf32>
    %c0_108 = arith.constant 0 : index
    %c0_109 = arith.constant 0 : index
    %205 = vector.load %arg18[%c0_108, %c0_109] : memref<8x128xf32, #tpu.memory_space<vmem>>, vector<8x128xf32>
    tpu.vector_store %arg18[%c0_108, %c0_109], %204 {strides = array<i32>} : memref<8x128xf32, #tpu.memory_space<vmem>>, vector<8x128xf32>,
    return
  }
  func.func @transform_0(%arg0: i32) -> (i32, i32) {
    %c0_i32 = arith.constant 0 : i32
    %c0_i32_0 = arith.constant 0 : i32
    return %arg0, %c0_i32 : i32, i32
  }
  func.func @transform_1(%arg0: i32) -> (i32, i32) {
    %c0_i32 = arith.constant 0 : i32
    %c0_i32_0 = arith.constant 0 : i32
    %c0_i32_1 = arith.constant 0 : i32
    return %c0_i32, %c0_i32_0 : i32, i32
  }
  func.func @transform_2(%arg0: i32) -> (i32, i32) {
    %c0_i32 = arith.constant 0 : i32
    %c0_i32_0 = arith.constant 0 : i32
    %c0_i32_1 = arith.constant 0 : i32
    return %c0_i32, %c0_i32_0 : i32, i32
  }
  func.func @transform_3(%arg0: i32) -> (i32, i32, i32) {
    %c0_i32 = arith.constant 0 : i32
    %c0_i32_0 = arith.constant 0 : i32
    %c0_i32_1 = arith.constant 0 : i32
    %c0_i32_2 = arith.constant 0 : i32
    return %c0_i32, %c0_i32_0, %c0_i32_1 : i32, i32, i32
  }
  func.func @transform_4(%arg0: i32) -> (i32, i32, i32) {
    %c0_i32 = arith.constant 0 : i32
    %c0_i32_0 = arith.constant 0 : i32
    %c0_i32_1 = arith.constant 0 : i32
    %c0_i32_2 = arith.constant 0 : i32
    return %c0_i32, %c0_i32_0, %c0_i32_1 : i32, i32, i32
  }
  func.func @transform_5(%arg0: i32) -> (i32, i32, i32) {
    %c0_i32 = arith.constant 0 : i32
    %c0_i32_0 = arith.constant 0 : i32
    %c0_i32_1 = arith.constant 0 : i32
    %c0_i32_2 = arith.constant 0 : i32
    return %c0_i32, %c0_i32_0, %c0_i32_1 : i32, i32, i32
  }
  func.func @transform_6(%arg0: i32) -> (i32, i32, i32) {
    %c0_i32 = arith.constant 0 : i32
    %c0_i32_0 = arith.constant 0 : i32
    %c0_i32_1 = arith.constant 0 : i32
    %c0_i32_2 = arith.constant 0 : i32
    return %c0_i32, %c0_i32_0, %c0_i32_1 : i32, i32, i32
  }
  func.func @transform_7(%arg0: i32) -> (i32, i32, i32) {
    %c0_i32 = arith.constant 0 : i32
    %c0_i32_0 = arith.constant 0 : i32
    %c0_i32_1 = arith.constant 0 : i32
    %c0_i32_2 = arith.constant 0 : i32
    return %c0_i32, %c0_i32_0, %c0_i32_1 : i32, i32, i32
  }
  func.func @transform_8(%arg0: i32) -> (i32, i32, i32) {
    %c0_i32 = arith.constant 0 : i32
    %c0_i32_0 = arith.constant 0 : i32
    %c0_i32_1 = arith.constant 0 : i32
    %c0_i32_2 = arith.constant 0 : i32
    return %c0_i32, %c0_i32_0, %c0_i32_1 : i32, i32, i32
  }
  func.func @transform_9(%arg0: i32) -> (i32, i32, i32) {
    %c0_i32 = arith.constant 0 : i32
    %c0_i32_0 = arith.constant 0 : i32
    %c0_i32_1 = arith.constant 0 : i32
    %c0_i32_2 = arith.constant 0 : i32
    return %c0_i32, %c0_i32_0, %c0_i32_1 : i32, i32, i32
  }
  func.func @transform_10(%arg0: i32) -> (i32, i32, i32) {
    %c0_i32 = arith.constant 0 : i32
    %c0_i32_0 = arith.constant 0 : i32
    %c0_i32_1 = arith.constant 0 : i32
    %c0_i32_2 = arith.constant 0 : i32
    return %c0_i32, %c0_i32_0, %c0_i32_1 : i32, i32, i32
  }
  func.func @transform_11(%arg0: i32) -> (i32, i32, i32) {
    %c0_i32 = arith.constant 0 : i32
    %c0_i32_0 = arith.constant 0 : i32
    %c0_i32_1 = arith.constant 0 : i32
    %c0_i32_2 = arith.constant 0 : i32
    return %c0_i32, %c0_i32_0, %c0_i32_1 : i32, i32, i32
  }
  func.func @transform_12(%arg0: i32) -> (i32, i32, i32) {
    %c0_i32 = arith.constant 0 : i32
    %c0_i32_0 = arith.constant 0 : i32
    %c0_i32_1 = arith.constant 0 : i32
    %c0_i32_2 = arith.constant 0 : i32
    return %c0_i32, %c0_i32_0, %c0_i32_1 : i32, i32, i32
  }
  func.func @transform_13(%arg0: i32) -> (i32, i32) {
    %c0_i32 = arith.constant 0 : i32
    %c0_i32_0 = arith.constant 0 : i32
    %c0_i32_1 = arith.constant 0 : i32
    return %c0_i32, %c0_i32_0 : i32, i32
  }
  func.func @transform_14(%arg0: i32) -> (i32, i32) {
    %c0_i32 = arith.constant 0 : i32
    %c0_i32_0 = arith.constant 0 : i32
    %c0_i32_1 = arith.constant 0 : i32
    return %c0_i32, %c0_i32_0 : i32, i32
  }
  func.func @transform_15(%arg0: i32) -> (i32, i32) {
    %c0_i32 = arith.constant 0 : i32
    %c0_i32_0 = arith.constant 0 : i32
    %c0_i32_1 = arith.constant 0 : i32
    return %c0_i32, %c0_i32_0 : i32, i32
  }
  func.func @transform_16(%arg0: i32) -> (i32, i32) {
    %c0_i32 = arith.constant 0 : i32
    %c0_i32_0 = arith.constant 0 : i32
    %c0_i32_1 = arith.constant 0 : i32
    return %c0_i32, %c0_i32_0 : i32, i32
  }
  func.func @transform_17(%arg0: i32) -> (i32, i32) {
    %c0_i32 = arith.constant 0 : i32
    %c0_i32_0 = arith.constant 0 : i32
    return %arg0, %c0_i32 : i32, i32
  }
}

</mosaic_0001>

<bundles_post_ra>
// kernel: tpu_custom_call.1
= control target key start
LH: loop header
LB: loop body
LE: loop exit
PB: predicated region body
PF: predicated region fallthrough
CT: control target
= control target key end

     0   :  { %s9097_s0 = inlined_call_operand.hbm [shape: f32[8,128], index: 0, kind: input, shape index: {}]   ;;  %s9098_s1 = inlined_call_operand.hbm [shape: bf16[128,256], index: 1, kind: input, shape index: {}]   ;;  %s9099_s2 = inlined_call_operand.hbm [shape: f32[1,256], index: 2, kind: input, shape index: {}]   ;;  %s9100_s3 = inlined_call_operand.hbm [shape: bf16[2,256,256], index: 3, kind: input, shape index: {}]   ;;  %s9101_s4 = inlined_call_operand.hbm [shape: f32[2,1,256], index: 4, kind: input, shape index: {}]   ;;  %s9102_s5 = inlined_call_operand.vmem [shape: f32[2,1,256], index: 5, kind: input, shape index: {}]   ;;  %s9103_s6 = inlined_call_operand.hbm [shape: f32[2,1,256], index: 6, kind: input, shape index: {}]   ;;  %s9104_s7 = inlined_call_operand.hbm [shape: bf16[2,256,1024], index: 7, kind: input, shape index: {}]   ;;  %s9105_s8 = inlined_call_operand.hbm [shape: f32[2,1,1024], index: 8, kind: input, shape index: {}]   ;;  %s9106_s9 = inlined_call_operand.hbm [shape: bf16[2,1024,256], index: 9, kind: input, shape index: {}]   ;;  %s9107_s10 = inlined_call_operand.vmem [shape: f32[2,1,256], index: 10, kind: input, shape index: {}]   ;;  %s9108_s11 = inlined_call_operand.hbm [shape: f32[2,1,256], index: 11, kind: input, shape index: {}]   ;;  %s9109_s12 = inlined_call_operand.hbm [shape: f32[2,1,256], index: 12, kind: input, shape index: {}]   ;;  %s9110_s13 = inlined_call_operand.hbm [shape: bf16[256,128], index: 13, kind: input, shape index: {}]   ;;  %s9111_s14 = inlined_call_operand.vmem [shape: f32[1,128], index: 14, kind: input, shape index: {}]   ;;  %s9112_s15 = inlined_call_operand.vmem [shape: f32[1,128], index: 15, kind: input, shape index: {}]   ;;  %s9113_s16 = inlined_call_operand.vmem [shape: f32[1,128], index: 16, kind: input, shape index: {}]   ;;  %s9114_s17 = inlined_call_operand.hbm [shape: f32[8,128], index: 17, kind: output, shape index: {}]  }
   0x1   :  { %9115 = sst [smem:[#allocation31_spill]] %s9097_s0 }
   0x2   :  { %9116 = sst [smem:[#allocation32_spill]] %s9098_s1 }
   0x3   :  { %22 = vsyncpa [#allocation3], 0 }
   0x4   :  { %23 = vsyncpa [#allocation6], 0 }
   0x5   :  { %24 = vsyncpa [#allocation9], 0 }
   0x6   :  { %25 = vsyncpa [#allocation12], 0 }
   0x7   :  { %26 = vsyncpa [#allocation15], 0 }
   0x8   :  { %27 = vsyncpa [#allocation18], 0 }
   0x9   :  { %28 = vsyncpa [#allocation21], 0  ;;  %s9117_s26 = sld [smem:[#allocation32_spill]] }
   0xf   :  { %s45_s27 = sshll.u32 %s9117_s26, 4  ;;  %s46_s27 = int_to_ptr.hbm [resolvable:$true] %s45_s27 }
  0x10   :  { %29 = vsyncpa [#allocation4], 0  ;;  %s8698_s28 = smov [#allocation5]   ;;  %s69_s18 = sshll.u32 %s9100_s3, 4  ;;  %s70_s18 = int_to_ptr.hbm [resolvable:$true] %s69_s18 }
  0x11   :  { %s47_s29 = sshll.u32 %s8698_s28, 4  ;;  %s8699_s19 = smov 128   ;;  %s48_s29 = int_to_ptr.vmem [resolvable:$true] %s47_s29 }
  0x12   :  { %s8700_s1 = smov 8   ;;  %s8701_s20 = smov [#allocation8]  }
  0x13   :  { %53 = dma.hbm_to_vmem [thread:$0]  %s46_s27, 2048, %s48_s29, [#allocation6], %s8699_s19, %s8699_s19, %s8700_s1  }
  0x14   :  { %s71_s21 = sshll.u32 %s8701_s20, 4  ;;  %s97_s24 = sshll.u32 %s9103_s6, 4  ;;  %s72_s21 = int_to_ptr.vmem [resolvable:$true] %s71_s21  ;;  %s98_s24 = int_to_ptr.hbm [resolvable:$true] %s97_s24 }
  0x15   :  { %77 = dma.hbm_to_vmem [thread:$0]  %s70_s18, 8192, %s72_s21, [#allocation9], %s8699_s19, %s8699_s19, %s8700_s1  }
  0x16   :  { %s8702_s3 = smov [#allocation11]   ;;  %s123_s27 = sshll.u32 %s9105_s8, 4  ;;  %s124_s27 = int_to_ptr.hbm [resolvable:$true] %s123_s27 }
  0x17   :  { %s99_s25 = sshll.u32 %s8702_s3, 4  ;;  %s8703_s29 = smov 32   ;;  %s100_s25 = int_to_ptr.vmem [resolvable:$true] %s99_s25 }
  0x18   :  { %s8704_s0 = smov 2   ;;  %s8705_s30 = smov [#allocation14]  }
  0x19   :  { %105 = dma.hbm_to_vmem [thread:$0]  %s98_s24, 64, %s100_s25, [#allocation12], %s8703_s29, %s8703_s29, %s8704_s0  }
  0x1a   :  { %s125_s18 = sshll.u32 %s8705_s30, 4  ;;  %s151_s6 = sshll.u32 %s9108_s11, 4  ;;  %s126_s18 = int_to_ptr.vmem [resolvable:$true] %s125_s18  ;;  %s152_s6 = int_to_ptr.hbm [resolvable:$true] %s151_s6 }
  0x1b   :  { %131 = dma.hbm_to_vmem [thread:$0]  %s124_s27, 256, %s126_s18, [#allocation15], %s8699_s19, %s8699_s19, %s8700_s1  }
  0x1c   :  { %s9118_s23 = sld [smem:[#allocation31_spill]]  ;;  %s8706_s26 = smov [#allocation17]  }
  0x1d   :  { %s153_s28 = sshll.u32 %s8706_s26, 4  ;;  %s8707_s24 = smov [#allocation2]   ;;  %s154_s28 = int_to_ptr.vmem [resolvable:$true] %s153_s28 }
  0x1e   :  { %159 = dma.hbm_to_vmem [thread:$0]  %s152_s6, 64, %s154_s28, [#allocation18], %s8703_s29, %s8703_s29, %s8704_s0  }
  0x1f   :  { %s37_s11 = sshll.u32 %s8707_s24, 4  ;;  %s59_s20 = sshll.u32 %s9099_s2, 4  ;;  %s38_s11 = int_to_ptr.vmem [resolvable:$true] %s37_s11  ;;  %s60_s20 = int_to_ptr.hbm [resolvable:$true] %s59_s20 }
  0x20   :  { %s82_s21 = sshll.u32 %s9101_s4, 4  ;;  %s8708_s8 = smov [#allocation7]   ;;  %s83_s21 = int_to_ptr.hbm [resolvable:$true] %s82_s21 }
  0x21   :  { %s61_s22 = sshll.u32 %s8708_s8, 4  ;;  %s110_s24 = sshll.u32 %s9104_s7, 4  ;;  %s62_s22 = int_to_ptr.vmem [resolvable:$true] %s61_s22  ;;  %s111_s24 = int_to_ptr.hbm [resolvable:$true] %s110_s24 }
  0x22   :  { %s35_s3 = sshll.u32 %s9118_s23, 4  ;;  %s8709_s23 = smov [#allocation10]   ;;  %s36_s3 = int_to_ptr.hbm [resolvable:$true] %s35_s3 }
  0x23   :  { %40 = dma.hbm_to_vmem [thread:$0]  %s36_s3, 128, %s38_s11, [#allocation3]  }
  0x24   :  { %64 = dma.hbm_to_vmem [thread:$0]  %s60_s20, 32, %s62_s22, [#allocation6]  }
  0x25   :  { %s84_s6 = sshll.u32 %s8709_s23, 4  ;;  %s8710_s2 = smov [#allocation13]   ;;  %s85_s6 = int_to_ptr.vmem [resolvable:$true] %s84_s6 }
  0x26   :  { %90 = dma.hbm_to_vmem [thread:$0]  %s83_s21, 64, %s85_s6, [#allocation9], %s8703_s29, %s8703_s29, %s8704_s0  }
  0x27   :  { %s112_s3 = sshll.u32 %s8710_s2, 4  ;;  %s136_s25 = sshll.u32 %s9106_s9, 4  ;;  %s113_s3 = int_to_ptr.vmem [resolvable:$true] %s112_s3  ;;  %s137_s25 = int_to_ptr.hbm [resolvable:$true] %s136_s25 }
  0x28   :  { %s8711_s30 = smov 512   ;;  %s164_s7 = sshll.u32 %s9109_s12, 4  ;;  %s165_s7 = int_to_ptr.hbm [resolvable:$true] %s164_s7 }
  0x29   :  { %118 = dma.hbm_to_vmem [thread:$0]  %s111_s24, 32768, %s113_s3, [#allocation12], %s8711_s30, %s8711_s30, %s8703_s29  }
  0x2a   :  { %s8712_s18 = smov [#allocation16]   ;;  %s8713_s21 = smov [#allocation19]  }
  0x2b   :  { %s138_s8 = sshll.u32 %s8712_s18, 4  ;;  %s166_s22 = sshll.u32 %s8713_s21, 4  ;;  %s139_s8 = int_to_ptr.vmem [resolvable:$true] %s138_s8  ;;  %s167_s22 = int_to_ptr.vmem [resolvable:$true] %s166_s22 }
  0x2c   :  { %144 = dma.hbm_to_vmem [thread:$0]  %s137_s25, 32768, %s139_s8, [#allocation15], %s8699_s19, %s8699_s19, %s8700_s1  }
  0x2d   :  { %s177_s6 = sshll.u32 %s9110_s13, 4  ;;  %s8714_s12 = smov [#allocation20]   ;;  %s178_s6 = int_to_ptr.hbm [resolvable:$true] %s177_s6 }
  0x2e   :  { %172 = dma.hbm_to_vmem [thread:$0]  %s165_s7, 64, %s167_s22, [#allocation18], %s8703_s29, %s8703_s29, %s8704_s0  }
  0x2f   :  { %s179_s26 = sshll.u32 %s8714_s12, 4  ;;  %s8715_s28 = smov 64   ;;  %s180_s26 = int_to_ptr.vmem [resolvable:$true] %s179_s26 }
  0x30   :  { %s8716_s24 = smov 4  }
  0x31   :  { %185 = dma.hbm_to_vmem [thread:$0]  %s178_s6, 2048, %s180_s26, [#allocation21], %s8715_s28, %s8715_s28, %s8716_s24  }
  0x32   :  { %8682 = dma.done.wait [#allocation3], 128  }
  0x33   :  { %8683 = vsyncadd [#allocation3], 4294967168 }
  0x34   :  { %8684 = dma.done.wait [#allocation6], 2080  }
  0x35   :  { %8685 = vsyncadd [#allocation6], 4294965216 }
  0x36   :  { %8686 = dma.done.wait [#allocation9], 8256  }
  0x37   :  { %8687 = vsyncadd [#allocation9], 4294959040 }
  0x38   :  { %8688 = dma.done.wait [#allocation12], 32832  }
  0x39   :  { %8689 = vsyncadd [#allocation12], 4294934464 }
  0x3a   :  { %8690 = dma.done.wait [#allocation15], 33024  }
  0x3b   :  { %8691 = vsyncadd [#allocation15], 4294934272 }
  0x3c   :  { %8692 = dma.done.wait [#allocation18], 128  }
  0x3d   :  { %8693 = vsyncadd [#allocation18], 4294967168 }
  0x3e   :  { %8694 = dma.done.wait [#allocation21], 2048  }
  0x3f   :  { %8695 = vsyncadd [#allocation21], 4294965248  ;;  %v5345_v0 = vld [vmem:[#allocation5 + $0x70] sm:$0xf]  ;;  %v7736_v1 = vld [vmem:[#allocation5 + $0x74] sm:$0xf0] }
  0x40   :  { %v7735_v2 = vld [vmem:[#allocation5 + $0x74] sm:$0xf]  ;;  %v5346_v3 = vor.u32 %v7736_v1, %v5345_v0  ;;  %v5347_v4 = vld [vmem:[#allocation5 + $0x78] sm:$0xf0]  ;;  %v5337_v5 = vld [vmem:[#allocation5 + $0x60] sm:$0xf] }
  0x41   :  { %v7734_v6 = vld [vmem:[#allocation5 + $0x64] sm:$0xf0]  ;;  %v5350_v7 = vor.u32 %v7735_v2, %v5347_v4  ;;  %v7733_v8 = vld [vmem:[#allocation5 + $0x64] sm:$0xf]  ;;  %v5339_v9 = vld [vmem:[#allocation5 + $0x68] sm:$0xf0] }
  0x42   :  { %344 = vmatpush.bf16.msra.mxu0 %v5346_v3  ;;  %v5338_v10 = vor.u32 %v7734_v6, %v5337_v5  ;;  %v5342_v11 = vor.u32 %v7733_v8, %v5339_v9  ;;  %v5329_v12 = vld [vmem:[#allocation5 + $0x50] sm:$0xf]  ;;  %v7732_v13 = vld [vmem:[#allocation5 + $0x54] sm:$0xf0]  ;;  %v7731_v14 = vld [vmem:[#allocation5 + $0x54] sm:$0xf] }
  0x43   :  { %357 = vmatpush.bf16.msra.mxu1 %v5350_v7  ;;  %v5331_v15 = vld [vmem:[#allocation5 + $0x58] sm:$0xf0]  ;;  %v5330_v16 = vor.u32 %v7732_v13, %v5329_v12  ;;  %v5321_v18 = vld [vmem:[#allocation5 + $0x40] sm:$0xf]  ;;  %v7730_v19 = vld [vmem:[#allocation5 + $0x44] sm:$0xf0] }
  0x44   :  { %v5334_v17 = vor.u32 %v7731_v14, %v5331_v15  ;;  %v7729_v20 = vld [vmem:[#allocation5 + $0x44] sm:$0xf]  ;;  %v5323_v21 = vld [vmem:[#allocation5 + $0x48] sm:$0xf0]  ;;  %v5322_v22 = vor.u32 %v7730_v19, %v5321_v18  ;;  %v5409_v23 = vld [vmem:[#allocation8 + $0x70] sm:$0xf] }
  0x45   :  { %v7752_v24 = vld [vmem:[#allocation8 + $0x74] sm:$0xf0]  ;;  %v5473_v25 = vld [vmem:[#allocation8 + $0xf0] sm:$0xf]  ;;  %v5326_v26 = vor.u32 %v7729_v20, %v5323_v21  ;;  %v5401_v34 = vld [vmem:[#allocation8 + $0x60] sm:$0xf] }
  0x46   :  { %345 = vmatpush.bf16.msra.mxu0 %v5338_v10  ;;  %v5313_v27 = vld [vmem:[#allocation5 + $0x30] sm:$0xf]  ;;  %v7728_v28 = vld [vmem:[#allocation5 + $0x34] sm:$0xf0]  ;;  %v5410_v29 = vor.u32 %v7752_v24, %v5409_v23  ;;  %v7727_v31 = vld [vmem:[#allocation5 + $0x34] sm:$0xf] }
  0x47   :  { %358 = vmatpush.bf16.msra.mxu1 %v5342_v11  ;;  %v7768_v30 = vld [vmem:[#allocation8 + $0xf4] sm:$0xf0]  ;;  %v7750_v35 = vld [vmem:[#allocation8 + $0x64] sm:$0xf0]  ;;  %v5465_v36 = vld [vmem:[#allocation8 + $0xe0] sm:$0xf]  ;;  %v5314_v38 = vor.u32 %v7728_v28, %v5313_v27 }
  0x48   :  { %v5315_v32 = vld [vmem:[#allocation5 + $0x38] sm:$0xf0]  ;;  %v5474_v33 = vor.u32 %v7768_v30, %v5473_v25  ;;  %570 = vmatpush.bf16.msra.mxu2 %v5410_v29  ;;  %v7766_v37 = vld [vmem:[#allocation8 + $0xe4] sm:$0xf0]  ;;  %v5305_v39 = vld [vmem:[#allocation5 + $0x20] sm:$0xf]  ;;  %v5402_v41 = vor.u32 %v7750_v35, %v5401_v34 }
  0x49   :  { %v7726_v40 = vld [vmem:[#allocation5 + $0x24] sm:$0xf0]  ;;  %v5466_v42 = vor.u32 %v7766_v37, %v5465_v36  ;;  %v5318_v43 = vor.u32 %v7727_v31, %v5315_v32  ;;  %v7725_v44 = vld [vmem:[#allocation5 + $0x24] sm:$0xf]  ;;  %v5393_v45 = vld [vmem:[#allocation8 + $0x50] sm:$0xf] }
  0x4a   :  { %346 = vmatpush.bf16.msra.mxu0 %v5330_v16  ;;  %583 = vmatpush.bf16.msra.mxu3 %v5474_v33  ;;  %v7748_v46 = vld [vmem:[#allocation8 + $0x54] sm:$0xf0]  ;;  %v5307_v47 = vld [vmem:[#allocation5 + $0x28] sm:$0xf0]  ;;  %v5457_v48 = vld [vmem:[#allocation8 + $0xd0] sm:$0xf]  ;;  %v5306_v51 = vor.u32 %v7726_v40, %v5305_v39 }
  0x4b   :  { %359 = vmatpush.bf16.msra.mxu1 %v5334_v17  ;;  %v7764_v49 = vld [vmem:[#allocation8 + $0xd4] sm:$0xf0]  ;;  %v5394_v50 = vor.u32 %v7748_v46, %v5393_v45  ;;  %v5297_v52 = vld [vmem:[#allocation5 + $0x10] sm:$0xf]  ;;  %v5385_v54 = vld [vmem:[#allocation8 + $0x40] sm:$0xf]  ;;  %v5310_v56 = vor.u32 %v7725_v44, %v5307_v47 }
  0x4c   :  { %571 = vmatpush.bf16.msra.mxu2 %v5402_v41  ;;  %v5458_v53 = vor.u32 %v7764_v49, %v5457_v48  ;;  %v7746_v55 = vld [vmem:[#allocation8 + $0x44] sm:$0xf0]  ;;  %v7724_v57 = vld [vmem:[#allocation5 + $0x14] sm:$0xf0]  ;;  %v5449_v58 = vld [vmem:[#allocation8 + $0xc0] sm:$0xf] }
  0x4d   :  { %v7762_v59 = vld [vmem:[#allocation8 + $0xc4] sm:$0xf0]  ;;  %v7723_v60 = vld [vmem:[#allocation5 + $0x14] sm:$0xf]  ;;  %v5299_v61 = vld [vmem:[#allocation5 + $0x18] sm:$0xf0]  ;;  %v5386_v63 = vor.u32 %v7746_v55, %v5385_v54  ;;  %v5298_v0 = vor.u32 %v7724_v57, %v5297_v52 }
  0x4e   :  { %347 = vmatpush.bf16.msra.mxu0 %v5322_v22  ;;  %584 = vmatpush.bf16.msra.mxu3 %v5466_v42  ;;  %v5289_v62 = vld [vmem:[#allocation5] sm:$0xf]  ;;  %v7722_v1 = vld [vmem:[#allocation5 + $0x4] sm:$0xf0]  ;;  %v5450_v2 = vor.u32 %v7762_v59, %v5449_v58  ;;  %v5377_v3 = vld [vmem:[#allocation8 + $0x30] sm:$0xf]  ;;  %v5302_v5 = vor.u32 %v7723_v60, %v5299_v61 }
  0x4f   :  { %360 = vmatpush.bf16.msra.mxu1 %v5326_v26  ;;  %v7744_v4 = vld [vmem:[#allocation8 + $0x34] sm:$0xf0]  ;;  %v7721_v6 = vld [vmem:[#allocation5 + $0x4] sm:$0xf]  ;;  %v5441_v7 = vld [vmem:[#allocation8 + $0xb0] sm:$0xf]  ;;  %v5290_v15 = vor.u32 %v7722_v1, %v5289_v62 }
  0x50   :  { %572 = vmatpush.bf16.msra.mxu2 %v5394_v50  ;;  %v7760_v8 = vld [vmem:[#allocation8 + $0xb4] sm:$0xf0]  ;;  %v5291_v9 = vld [vmem:[#allocation5 + $0x8] sm:$0xf0]  ;;  %v7751_v10 = vld [vmem:[#allocation8 + $0x74] sm:$0xf]  ;;  %v5378_v14 = vor.u32 %v7744_v4, %v5377_v3 }
  0x51   :  { %v5411_v11 = vld [vmem:[#allocation8 + $0x78] sm:$0xf0]  ;;  %v7767_v12 = vld [vmem:[#allocation8 + $0xf4] sm:$0xf]  ;;  %v5442_v17 = vor.u32 %v7760_v8, %v5441_v7  ;;  %v5369_v18 = vld [vmem:[#allocation8 + $0x20] sm:$0xf]  ;;  %v5294_v20 = vor.u32 %v7721_v6, %v5291_v9 }
  0x52   :  { %348 = vmatpush.bf16.msra.mxu0 %v5314_v38  ;;  %585 = vmatpush.bf16.msra.mxu3 %v5458_v53  ;;  %v5475_v13 = vld [vmem:[#allocation8 + $0xf8] sm:$0xf0]  ;;  %v7742_v19 = vld [vmem:[#allocation8 + $0x24] sm:$0xf0]  ;;  %v5414_v21 = vor.u32 %v7751_v10, %v5411_v11  ;;  %v5433_v22 = vld [vmem:[#allocation8 + $0xa0] sm:$0xf] }
  0x53   :  { %361 = vmatpush.bf16.msra.mxu1 %v5318_v43  ;;  %v240_v16 = vld [vmem:[#allocation2] sm:$0xff]  ;;  %v7758_v23 = vld [vmem:[#allocation8 + $0xa4] sm:$0xf0]  ;;  %v5478_v24 = vor.u32 %v7767_v12, %v5475_v13  ;;  %v7749_v25 = vld [vmem:[#allocation8 + $0x64] sm:$0xf]  ;;  %v5370_v30 = vor.u32 %v7742_v19, %v5369_v18 }
  0x54   :  { %573 = vmatpush.bf16.msra.mxu2 %v5386_v63  ;;  %v5403_v26 = vld [vmem:[#allocation8 + $0x68] sm:$0xf0]  ;;  %v7765_v27 = vld [vmem:[#allocation8 + $0xe4] sm:$0xf]  ;;  %v258_v28 = vpack.c.bf16 %v240_v16, %v240_v16  ;;  %v5434_v31 = vor.u32 %v7758_v23, %v5433_v22  ;;  %v5361_v32 = vld [vmem:[#allocation8 + $0x10] sm:$0xf] }
  0x55   :  { %v5467_v29 = vld [vmem:[#allocation8 + $0xe8] sm:$0xf0]  ;;  %v7740_v33 = vld [vmem:[#allocation8 + $0x14] sm:$0xf0]  ;;  %v5406_v34 = vor.u32 %v7749_v25, %v5403_v26  ;;  %v5425_v35 = vld [vmem:[#allocation8 + $0x90] sm:$0xf] }
  0x56   :  { %349 = vmatpush.bf16.msra.mxu0 %v5306_v51  ;;  %586 = vmatpush.bf16.msra.mxu3 %v5450_v2  ;;  %v7756_v36 = vld [vmem:[#allocation8 + $0x94] sm:$0xf0]  ;;  %v5470_v37 = vor.u32 %v7765_v27, %v5467_v29  ;;  %v7747_v38 = vld [vmem:[#allocation8 + $0x54] sm:$0xf]  ;;  %v5395_v39 = vld [vmem:[#allocation8 + $0x58] sm:$0xf0]  ;;  %v5362_v42 = vor.u32 %v7740_v33, %v5361_v32 }
  0x57   :  { %362 = vmatpush.bf16.msra.mxu1 %v5310_v56  ;;  %v7763_v40 = vld [vmem:[#allocation8 + $0xd4] sm:$0xf]  ;;  %v5459_v41 = vld [vmem:[#allocation8 + $0xd8] sm:$0xf0]  ;;  %v5426_v43 = vor.u32 %v7756_v36, %v5425_v35  ;;  %v5398_v44 = vor.u32 %v7747_v38, %v5395_v39  ;;  %v7745_v46 = vld [vmem:[#allocation8 + $0x44] sm:$0xf] }
  0x58   :  { %574 = vmatpush.bf16.msra.mxu2 %v5378_v14  ;;  %v5462_v45 = vor.u32 %v7763_v40, %v5459_v41  ;;  %v5387_v47 = vld [vmem:[#allocation8 + $0x48] sm:$0xf0]  ;;  %v7761_v48 = vld [vmem:[#allocation8 + $0xc4] sm:$0xf]  ;;  %v7743_v52 = vld [vmem:[#allocation8 + $0x34] sm:$0xf] }
  0x59   :  { %v5451_v49 = vld [vmem:[#allocation8 + $0xc8] sm:$0xf0]  ;;  %v5390_v50 = vor.u32 %v7745_v46, %v5387_v47  ;;  %v5379_v53 = vld [vmem:[#allocation8 + $0x38] sm:$0xf0]  ;;  %v7759_v54 = vld [vmem:[#allocation8 + $0xb4] sm:$0xf] }
  0x5a   :  { %350 = vmatpush.bf16.msra.mxu0 %v5298_v0  ;;  %587 = vmatpush.bf16.msra.mxu3 %v5442_v17  ;;  %v5454_v51 = vor.u32 %v7761_v48, %v5451_v49  ;;  %v5443_v55 = vld [vmem:[#allocation8 + $0xb8] sm:$0xf0]  ;;  %v5382_v56 = vor.u32 %v7743_v52, %v5379_v53  ;;  %v7741_v58 = vld [vmem:[#allocation8 + $0x24] sm:$0xf]  ;;  %v5371_v59 = vld [vmem:[#allocation8 + $0x28] sm:$0xf0] }
  0x5b   :  { %363 = vmatpush.bf16.msra.mxu1 %v5302_v5  ;;  %v5446_v57 = vor.u32 %v7759_v54, %v5443_v55  ;;  %v7757_v60 = vld [vmem:[#allocation8 + $0xa4] sm:$0xf]  ;;  %v5435_v61 = vld [vmem:[#allocation8 + $0xa8] sm:$0xf0]  ;;  %v5374_v62 = vor.u32 %v7741_v58, %v5371_v59  ;;  %v7739_v0 = vld [vmem:[#allocation8 + $0x14] sm:$0xf] }
  0x5c   :  { %575 = vmatpush.bf16.msra.mxu2 %v5370_v30  ;;  %v5438_v63 = vor.u32 %v7757_v60, %v5435_v61  ;;  %v5363_v1 = vld [vmem:[#allocation8 + $0x18] sm:$0xf0]  ;;  %v7755_v2 = vld [vmem:[#allocation8 + $0x94] sm:$0xf]  ;;  %v5353_v6 = vld [vmem:[#allocation8] sm:$0xf] }
  0x5d   :  { %v5427_v3 = vld [vmem:[#allocation8 + $0x98] sm:$0xf0]  ;;  %v5366_v4 = vor.u32 %v7739_v0, %v5363_v1  ;;  %v7738_v7 = vld [vmem:[#allocation8 + $0x4] sm:$0xf0]  ;;  %v5417_v9 = vld [vmem:[#allocation8 + $0x80] sm:$0xf] }
  0x5e   :  { %351 = vmatpush.bf16.msra.mxu0 %v5290_v15  ;;  %588 = vmatpush.bf16.msra.mxu3 %v5434_v31  ;;  %v5430_v5 = vor.u32 %v7755_v2, %v5427_v3  ;;  %v5354_v8 = vor.u32 %v7738_v7, %v5353_v6  ;;  %v7754_v10 = vld [vmem:[#allocation8 + $0x84] sm:$0xf0]  ;;  %v7737_v11 = vld [vmem:[#allocation8 + $0x4] sm:$0xf]  ;;  %v5355_v13 = vld [vmem:[#allocation8 + $0x8] sm:$0xf0] }
  0x5f   :  { %364 = vmatpush.bf16.msra.mxu1 %v5294_v20  ;;  %v5418_v12 = vor.u32 %v7754_v10, %v5417_v9  ;;  %v7753_v14 = vld [vmem:[#allocation8 + $0x84] sm:$0xf]  ;;  %v5419_v15 = vld [vmem:[#allocation8 + $0x88] sm:$0xf0]  ;;  %v5358_v16 = vor.u32 %v7737_v11, %v5355_v13  ;;  %v257_v18 = vld [vmem:[#allocation7] sm:$0x3] }
  0x60   :  { %576 = vmatpush.bf16.msra.mxu2 %v5362_v42  ;;  %v5422_v17 = vor.u32 %v7753_v14, %v5419_v15  ;;  %v260_v19 = vperm.slane %v257_v18, 0  ;;  %v261_v20 = vperm.slane %v257_v18, 1  ;;  %v402_v29 = vld [vmem:[#allocation10] sm:$0x3]  ;;  %v8717_v47 = vmov 256.0  }
  0x61   :  { %352 = vmatmul.bf16.vlgmr.msra.gmra.mxu0 %v258_v28  ;;  %v407_v30 = vperm.slane %v402_v29, 1  ;;  %8354 = vrcp.f32 %v8717_v47  ;;  %v7829_v52 = vld [vmem:[#allocation13 + $0x1dc] sm:$0xf0]  ;;  %v7889_v60 = vld [vmem:[#allocation13 + $0x3c4] sm:$0xf] }
  0x62   :  { %596 = vmatpush.bf16.msrb.mxu0 %v5414_v21  ;;  %365 = vmatmul.bf16.vlgmr.msra.gmra.mxu1 %v258_v28  ;;  %v5961_v53 = vld [vmem:[#allocation13 + $0x3c0] sm:$0xf]  ;;  %v5963_v61 = vld [vmem:[#allocation13 + $0x3e0] sm:$0xf0] }
  0x63   :  { %609 = vmatpush.bf16.msrb.mxu1 %v5478_v24  ;;  %589 = vmatpush.bf16.msra.mxu3 %v5426_v43  ;;  %v7893_v55 = vld [vmem:[#allocation13 + $0x3dc] sm:$0xf0]  ;;  %v5675_v6 = vld [vmem:[#allocation13 + $0x1a0] sm:$0xf0] }
  0x64   :  { %577 = vmatpush.bf16.msra.mxu2 %v5354_v8  ;;  %v5962_v58 = vor.u32 %v7893_v55, %v5961_v53  ;;  %v7821_v0 = vld [vmem:[#allocation13 + $0x19c] sm:$0xf0]  ;;  %v7881_v7 = vld [vmem:[#allocation13 + $0x384] sm:$0xf] }
  0x65   :  { %v5929_v1 = vld [vmem:[#allocation13 + $0x380] sm:$0xf]  ;;  %v5931_v9 = vld [vmem:[#allocation13 + $0x3a0] sm:$0xf0] }
  0x66   :  { %597 = vmatpush.bf16.msrb.mxu0 %v5406_v34  ;;  %v406_v34 = vperm.slane %v402_v29, 0  ;;  %v7885_v2 = vld [vmem:[#allocation13 + $0x39c] sm:$0xf0]  ;;  %v7809_v15 = vld [vmem:[#allocation13 + $0x144] sm:$0xf] }
  0x67   :  { %610 = vmatpush.bf16.msrb.mxu1 %v5470_v37  ;;  %590 = vmatpush.bf16.msra.mxu3 %v5418_v12  ;;  %v8877_v48 = vpop.eup %8354  ;;  %v5641_v10 = vld [vmem:[#allocation13 + $0x140] sm:$0xf]  ;;  %v5934_v12 = vor.u32 %v7881_v7, %v5931_v9  ;;  %v7873_v18 = vld [vmem:[#allocation13 + $0x344] sm:$0xf] }
  0x68   :  { %v8880_v49 = vmul.f32 256.0, %v8877_v48  ;;  %v7813_v11 = vld [vmem:[#allocation13 + $0x15c] sm:$0xf0]  ;;  %v7865_v29 = vld [vmem:[#allocation13 + $0x304] sm:$0xf]  ;;  %vm634_vm0 = vweird.f32 %v8877_v48 }
  0x69   :  { %v5897_v13 = vld [vmem:[#allocation13 + $0x340] sm:$0xf]  ;;  %v7841_v7 = vld [vmem:[#allocation13 + $0x244] sm:$0xf] }
  0x6a   :  { %598 = vmatpush.bf16.msrb.mxu0 %v5398_v44  ;;  %v7877_v14 = vld [vmem:[#allocation13 + $0x35c] sm:$0xf0] }
  0x6b   :  { %611 = vmatpush.bf16.msrb.mxu1 %v5462_v45  ;;  %1473 = vmatpush.bf16.msrb.mxu3 %v5962_v58  ;;  %v5801_v53 = vld [vmem:[#allocation13 + $0x280] sm:$0xf]  ;;  %v7849_v58 = vld [vmem:[#allocation13 + $0x284] sm:$0xf] }
  0x6c   :  { %v7853_v55 = vld [vmem:[#allocation13 + $0x29c] sm:$0xf0] }
  0x6e   :  { %599 = vmatpush.bf16.msrb.mxu0 %v5390_v50  ;;  %v631_v50 = vsub.f32 1.0, %v8880_v49 }
  0x6f   :  { %612 = vmatpush.bf16.msrb.mxu1 %v5454_v51  ;;  %v5705_v51 = vld [vmem:[#allocation13 + $0x1c0] sm:$0xf] }
  0x70   :  { %v5706_v54 = vor.u32 %v7829_v52, %v5705_v51  ;;  %v5545_v51 = vld [vmem:[#allocation13 + $0x80] sm:$0xf] }
  0x71   :  { %v7789_v52 = vld [vmem:[#allocation13 + $0x9c] sm:$0xf0] }
  0x72   :  { %600 = vmatpush.bf16.msrb.mxu0 %v5382_v56  ;;  %v7825_v56 = vld [vmem:[#allocation13 + $0x1c4] sm:$0xf]  ;;  %1460 = vmatpush.bf16.msrb.mxu2 %v5706_v54 }
  0x73   :  { %613 = vmatpush.bf16.msrb.mxu1 %v5446_v57  ;;  %v5707_v57 = vld [vmem:[#allocation13 + $0x1e0] sm:$0xf0] }
  0x74   :  { %v5710_v59 = vor.u32 %v7825_v56, %v5707_v57  ;;  %v7785_v56 = vld [vmem:[#allocation13 + $0x84] sm:$0xf] }
  0x75   :  { %v5547_v57 = vld [vmem:[#allocation13 + $0xa0] sm:$0xf0] }
  0x76   :  { %601 = vmatpush.bf16.msrb.mxu0 %v5374_v62  ;;  %v5673_v62 = vld [vmem:[#allocation13 + $0x180] sm:$0xf] }
  0x77   :  { %614 = vmatpush.bf16.msrb.mxu1 %v5438_v63  ;;  %v5966_v63 = vor.u32 %v7889_v60, %v5963_v61  ;;  %v5674_v3 = vor.u32 %v7821_v0, %v5673_v62  ;;  %v5546_v60 = vor.u32 %v7789_v52, %v5545_v51  ;;  %v5802_v61 = vor.u32 %v7853_v55, %v5801_v53  ;;  %v7781_v0 = vld [vmem:[#allocation13 + $0x5c] sm:$0xf0]  ;;  %v5683_v52 = vld [vmem:[#allocation13 + $0x1a8] sm:$0xf0] }
  0x78   :  { %v5550_v62 = vor.u32 %v7785_v56, %v5547_v57  ;;  %v7882_v53 = vld [vmem:[#allocation13 + $0x38c] sm:$0xf]  ;;  %v5649_v56 = vld [vmem:[#allocation13 + $0x148] sm:$0xf] }
  0x79   :  { %1461 = vmatpush.bf16.msrb.mxu2 %v5674_v3  ;;  %v7814_v57 = vld [vmem:[#allocation13 + $0x164] sm:$0xf0] }
  0x7a   :  { %602 = vmatpush.bf16.msrb.mxu0 %v5366_v4  ;;  %v5930_v4 = vor.u32 %v7885_v2, %v5929_v1  ;;  %v5769_v1 = vld [vmem:[#allocation13 + $0x240] sm:$0xf] }
  0x7b   :  { %615 = vmatpush.bf16.msrb.mxu1 %v5430_v5  ;;  %v7817_v5 = vld [vmem:[#allocation13 + $0x184] sm:$0xf] }
  0x7c   :  { %v5678_v8 = vor.u32 %v7817_v5, %v5675_v6  ;;  %1474 = vmatpush.bf16.msrb.mxu3 %v5930_v4  ;;  %v7845_v4 = vld [vmem:[#allocation13 + $0x25c] sm:$0xf0]  ;;  %v7777_v5 = vld [vmem:[#allocation13 + $0x44] sm:$0xf] }
  0x7d   :  { %v5515_v6 = vld [vmem:[#allocation13 + $0x60] sm:$0xf0] }
  0x7e   :  { %603 = vmatpush.bf16.msrb.mxu0 %v5358_v16  ;;  %v5642_v16 = vor.u32 %v7813_v11, %v5641_v10 }
  0x7f   :  { %616 = vmatpush.bf16.msrb.mxu1 %v5422_v17  ;;  %v5643_v17 = vld [vmem:[#allocation13 + $0x160] sm:$0xf0] }
  0x80   :  { %1462 = vmatpush.bf16.msrb.mxu2 %v5642_v16 }
  0x82   :  { %1486 = vmatpush.bf16.msra.mxu0 %v5710_v59  ;;  %v5803_v59 = vld [vmem:[#allocation13 + $0x2a0] sm:$0xf0] }
  0x83   :  { %1499 = vmatpush.bf16.msra.mxu1 %v5966_v63  ;;  %v5513_v63 = vld [vmem:[#allocation13 + $0x40] sm:$0xf]  ;;  %v5806_v3 = vor.u32 %v7849_v58, %v5803_v59  ;;  %v5905_v58 = vld [vmem:[#allocation13 + $0x348] sm:$0xf]  ;;  %v5650_v59 = vor.u32 %v7814_v57, %v5649_v56 }
  0x84   :  { %v5514_v10 = vor.u32 %v7781_v0, %v5513_v63  ;;  %v7774_v56 = vld [vmem:[#allocation13 + $0x24] sm:$0xf0] }
  0x85   :  { %v5745_v57 = vld [vmem:[#allocation13 + $0x208] sm:$0xf] }
  0x86   :  { %1487 = vmatpush.bf16.msra.mxu0 %v5678_v8  ;;  %v5771_v8 = vld [vmem:[#allocation13 + $0x260] sm:$0xf0] }
  0x87   :  { %1500 = vmatpush.bf16.msra.mxu1 %v5934_v12  ;;  %v5770_v12 = vor.u32 %v7845_v4, %v5769_v1  ;;  %v7874_v1 = vld [vmem:[#allocation13 + $0x34c] sm:$0xf] }
  0xde   :  { %v353_v21 = vpop.f32.mrf.mxu0 }
  0xdf   :  { %v354_v22 = vadd.f32 %v353_v21, %v260_v19  ;;  %v366_v23 = vpop.f32.mrf.mxu1  ;;  %v5899_v19 = vld [vmem:[#allocation13 + $0x360] sm:$0xf0]  ;;  %v5646_v21 = vor.u32 %v7809_v15, %v5643_v17 }
  0xe0   :  { %v367_v24 = vadd.f32 %v366_v23, %v261_v20  ;;  %v5898_v20 = vor.u32 %v7877_v14, %v5897_v13  ;;  %v7805_v23 = vld [vmem:[#allocation13 + $0x11c] sm:$0xf0]  ;;  %v5518_v13 = vor.u32 %v7777_v5, %v5515_v6  ;;  %v5774_v14 = vor.u32 %v7841_v7, %v5771_v8  ;;  %v5617_v5 = vld [vmem:[#allocation13 + $0x108] sm:$0xf] }
  0xe1   :  { %v403_v25 = vpack.c.bf16 %v354_v22, %v354_v22  ;;  %1488 = vmatpush.bf16.msra.mxu0 %v5646_v21  ;;  %v5737_v21 = vld [vmem:[#allocation13 + $0x200] sm:$0xf]  ;;  %v7806_v6 = vld [vmem:[#allocation13 + $0x124] sm:$0xf0] }
  0xe2   :  { %v404_v26 = vpack.c.bf16 %v367_v24, %v367_v24  ;;  %1475 = vmatpush.bf16.msrb.mxu3 %v5898_v20  ;;  %v7773_v20 = vld [vmem:[#allocation13 + $0x1c] sm:$0xf0]  ;;  %v5873_v7 = vld [vmem:[#allocation13 + $0x308] sm:$0xf]  ;;  %v5618_v8 = vor.u32 %v7806_v6, %v5617_v5 }
  0xe3   :  { %578 = vmatmul.bf16.vlgmr.msra.gmra.mxu2 %v403_v25  ;;  %604 = vmatmul.bf16.vlgmr.msrb.gmra.mxu0 %v403_v25  ;;  %v5902_v25 = vor.u32 %v7873_v18, %v5899_v19  ;;  %v5481_v19 = vld [vmem:[#allocation13] sm:$0xf] }
  0xe4   :  { %591 = vmatmul.bf16.vlgmr.msra.gmra.mxu3 %v404_v26  ;;  %617 = vmatmul.bf16.vlgmr.msrb.gmra.mxu1 %v404_v26  ;;  %v7869_v26 = vld [vmem:[#allocation13 + $0x31c] sm:$0xf0] }
  0xe5   :  { %1501 = vmatpush.bf16.msra.mxu1 %v5902_v25 }
  0xe6   :  { %v355_v27 = vpop.f32.mrf.mxu0 }
  0xe7   :  { %v368_v28 = vpop.f32.mrf.mxu1  ;;  %v7801_v27 = vld [vmem:[#allocation13 + $0x104] sm:$0xf] }
  0xe8   :  { %v5611_v28 = vld [vmem:[#allocation13 + $0x120] sm:$0xf0] }
 0x160   :  { %v605_v31 = vpop.f32.mrf.mxu0 }
 0x161   :  { %v618_v32 = vpop.f32.mrf.mxu1  ;;  %v606_v33 = vadd.f32 %v605_v31, %v407_v30  ;;  %v5867_v30 = vld [vmem:[#allocation13 + $0x320] sm:$0xf0] }
 0x163   :  { %v619_v36 = vadd.f32 %v618_v32, %v606_v33  ;;  %v5614_v33 = vor.u32 %v7801_v27, %v5611_v28  ;;  %v5739_v27 = vld [vmem:[#allocation13 + $0x220] sm:$0xf0]  ;;  %v5713_v28 = vld [vmem:[#allocation13 + $0x1c8] sm:$0xf] }
 0x165   :  { %v8873_v43 = vadd.f32 %v619_v36, %v367_v24  ;;  %v5865_v24 = vld [vmem:[#allocation13 + $0x300] sm:$0xf]  ;;  %1489 = vmatpush.bf16.msra.mxu0 %v5614_v33 }
 0x166   :  { %v579_v35 = vpop.f32.mrf.mxu2  ;;  %v5866_v32 = vor.u32 %v7869_v26, %v5865_v24  ;;  %v5833_v36 = vld [vmem:[#allocation13 + $0x2c0] sm:$0xf]  ;;  %v7833_v26 = vld [vmem:[#allocation13 + $0x204] sm:$0xf] }
 0x167   :  { %v580_v37 = vadd.f32 %v579_v35, %v406_v34  ;;  %v592_v38 = vpop.f32.mrf.mxu3  ;;  %v5577_v34 = vld [vmem:[#allocation13 + $0xc0] sm:$0xf] }
 0x168   :  { %v607_v39 = vpop.f32.mrf.mxu0  ;;  %v7797_v35 = vld [vmem:[#allocation13 + $0xdc] sm:$0xf0]  ;;  %1476 = vmatpush.bf16.msrb.mxu3 %v5866_v32  ;;  %v7894_v32 = vld [vmem:[#allocation13 + $0x3e4] sm:$0xf0] }
 0x169   :  { %v593_v40 = vadd.f32 %v592_v38, %v580_v37  ;;  %v620_v41 = vpop.f32.mrf.mxu1  ;;  %v632_v37 = vmul.f32 %v8877_v48, %v631_v50  ;;  %v5870_v38 = vor.u32 %v7865_v29, %v5867_v30  ;;  %v7861_v39 = vld [vmem:[#allocation13 + $0x2dc] sm:$0xf0]  ;;  %v5742_v29 = vor.u32 %v7833_v26, %v5739_v27  ;;  %v7830_v30 = vld [vmem:[#allocation13 + $0x1e4] sm:$0xf0]  ;;  %v5843_v26 = vld [vmem:[#allocation13 + $0x2e8] sm:$0xf0] }
 0x16a   :  { %v5579_v41 = vld [vmem:[#allocation13 + $0xe0] sm:$0xf0]  ;;  %v5834_v47 = vor.u32 %v7861_v39, %v5833_v36  ;;  %v5714_v33 = vor.u32 %v7830_v30, %v5713_v28  ;;  %v5715_v36 = vld [vmem:[#allocation13 + $0x1e8] sm:$0xf0]  ;;  %v5553_v28 = vld [vmem:[#allocation13 + $0x88] sm:$0xf] }
 0x16b   :  { %v8871_v42 = vadd.f32 %v593_v40, %v354_v22  ;;  %v5609_v22 = vld [vmem:[#allocation13 + $0x100] sm:$0xf]  ;;  %v7793_v40 = vld [vmem:[#allocation13 + $0xc4] sm:$0xf]  ;;  %v633_v54 = vadd.f32 %v8877_v48, %v632_v37  ;;  %1502 = vmatpush.bf16.msra.mxu1 %v5870_v38  ;;  %v7890_v37 = vld [vmem:[#allocation13 + $0x3cc] sm:$0xf] }
 0x16c   :  { %v5610_v31 = vor.u32 %v7805_v23, %v5609_v22  ;;  %v5582_v49 = vor.u32 %v7793_v40, %v5579_v41  ;;  %1477 = vmatpush.bf16.msrb.mxu3 %v5834_v47  ;;  %v7837_v22 = vld [vmem:[#allocation13 + $0x21c] sm:$0xf0]  ;;  %v7769_v23 = vld [vmem:[#allocation13 + $0x4] sm:$0xf]  ;;  %v5971_v39 = vld [vmem:[#allocation13 + $0x3e8] sm:$0xf0] }
 0x16d   :  { %v626_v44 = vadd.f32 %v8873_v43, %v8871_v42  ;;  %v8887_v2 = vsel %vm634_vm0, %v8877_v48, %v633_v54  ;;  %v5738_v24 = vor.u32 %v7837_v22, %v5737_v21  ;;  %v5681_v40 = vld [vmem:[#allocation13 + $0x188] sm:$0xf]  ;;  %v5939_v54 = vld [vmem:[#allocation13 + $0x3a8] sm:$0xf0] }
 0x16e   :  { %v581_v45 = vpop.f32.mrf.mxu2  ;;  %1463 = vmatpush.bf16.msrb.mxu2 %v5610_v31  ;;  %1490 = vmatpush.bf16.msra.mxu0 %v5582_v49  ;;  %v5969_v31 = vld [vmem:[#allocation13 + $0x3c8] sm:$0xf]  ;;  %v7818_v49 = vld [vmem:[#allocation13 + $0x18c] sm:$0xf]  ;;  %v5942_v55 = vor.u32 %v7882_v53, %v5939_v54 }
 0x16f   :  { %v594_v46 = vpop.f32.mrf.mxu3  ;;  %627 = vadd.xlane.f32.xlu0 %v626_v44  ;;  %v7857_v44 = vld [vmem:[#allocation13 + $0x2c4] sm:$0xf]  ;;  %v7822_v41 = vld [vmem:[#allocation13 + $0x1a4] sm:$0xf0]  ;;  %v7794_v22 = vld [vmem:[#allocation13 + $0xcc] sm:$0xf] }
 0x170   :  { %v5835_v45 = vld [vmem:[#allocation13 + $0x2e0] sm:$0xf0]  ;;  %v5578_v46 = vor.u32 %v7797_v35, %v5577_v34  ;;  %1478 = vmatpush.bf16.msrb.mxu3 %v5802_v61  ;;  %v5970_v34 = vor.u32 %v7894_v32, %v5969_v31  ;;  %v7826_v35 = vld [vmem:[#allocation13 + $0x1cc] sm:$0xf]  ;;  %v7886_v47 = vld [vmem:[#allocation13 + $0x3a4] sm:$0xf0] }
 0x171   :  { %v5838_v50 = vor.u32 %v7857_v44, %v5835_v45  ;;  %v5718_v38 = vor.u32 %v7826_v35, %v5715_v36  ;;  %v5974_v44 = vor.u32 %v7890_v37, %v5971_v39  ;;  %v5682_v45 = vor.u32 %v7822_v41, %v5681_v40  ;;  %v7810_v61 = vld [vmem:[#allocation13 + $0x14c] sm:$0xf]  ;;  %v5809_v30 = vld [vmem:[#allocation13 + $0x288] sm:$0xf] }
 0x172   :  { %1464 = vmatpush.bf16.msrb.mxu2 %v5578_v46  ;;  %1491 = vmatpush.bf16.msra.mxu0 %v5550_v62  ;;  %v5937_v46 = vld [vmem:[#allocation13 + $0x388] sm:$0xf]  ;;  %v5651_v62 = vld [vmem:[#allocation13 + $0x168] sm:$0xf0] }
 0x173   :  { %1503 = vmatpush.bf16.msra.mxu1 %v5838_v50  ;;  %v5938_v51 = vor.u32 %v7886_v47, %v5937_v46  ;;  %v5686_v50 = vor.u32 %v7818_v49, %v5683_v52  ;;  %v5654_v0 = vor.u32 %v7810_v61, %v5651_v62  ;;  %v7854_v32 = vld [vmem:[#allocation13 + $0x2a4] sm:$0xf0]  ;;  %v7850_v37 = vld [vmem:[#allocation13 + $0x28c] sm:$0xf] }
 0x174   :  { %1479 = vmatpush.bf16.msrb.mxu3 %v5770_v12  ;;  %v5810_v35 = vor.u32 %v7854_v32, %v5809_v30  ;;  %v5521_v40 = vld [vmem:[#allocation13 + $0x48] sm:$0xf]  ;;  %v7778_v47 = vld [vmem:[#allocation13 + $0x4c] sm:$0xf]  ;;  %v5723_v30 = vld [vmem:[#allocation13 + $0x1f0] sm:$0xf0] }
 0x175   :  { %v7782_v41 = vld [vmem:[#allocation13 + $0x64] sm:$0xf0]  ;;  %v5523_v49 = vld [vmem:[#allocation13 + $0x68] sm:$0xf0]  ;;  %v5979_v32 = vld [vmem:[#allocation13 + $0x3f0] sm:$0xf0] }
 0x176   :  { %1465 = vmatpush.bf16.msrb.mxu2 %v5546_v60  ;;  %1492 = vmatpush.bf16.msra.mxu0 %v5518_v13  ;;  %v7878_v60 = vld [vmem:[#allocation13 + $0x364] sm:$0xf0]  ;;  %v5526_v52 = vor.u32 %v7778_v47, %v5523_v49  ;;  %v7842_v53 = vld [vmem:[#allocation13 + $0x24c] sm:$0xf] }
 0x177   :  { %1504 = vmatpush.bf16.msra.mxu1 %v5806_v3  ;;  %v5906_v63 = vor.u32 %v7878_v60, %v5905_v58  ;;  %v5907_v3 = vld [vmem:[#allocation13 + $0x368] sm:$0xf0]  ;;  %v7846_v46 = vld [vmem:[#allocation13 + $0x264] sm:$0xf0] }
 0x178   :  { %1480 = vmatpush.bf16.msrb.mxu3 %v5738_v24  ;;  %v5910_v4 = vor.u32 %v7874_v1, %v5907_v3  ;;  %v5779_v54 = vld [vmem:[#allocation13 + $0x268] sm:$0xf0] }
 0x179   :  { %v7770_v60 = vld [vmem:[#allocation13 + $0xc] sm:$0xf] }
 0x17a   :  { %1466 = vmatpush.bf16.msrb.mxu2 %v5514_v10  ;;  %v7802_v10 = vld [vmem:[#allocation13 + $0x10c] sm:$0xf] }
 0x17b   :  { %1505 = vmatpush.bf16.msra.mxu1 %v5774_v14  ;;  %v7866_v14 = vld [vmem:[#allocation13 + $0x30c] sm:$0xf] }
 0x17c   :  { %1525 = vmatpush.bf16.msra.mxu3 %v5970_v34  ;;  %v5555_v34 = vld [vmem:[#allocation13 + $0xa8] sm:$0xf0] }
 0x17d   :  { %v5491_v61 = vld [vmem:[#allocation13 + $0x28] sm:$0xf0] }
 0x17e   :  { %v5747_v1 = vld [vmem:[#allocation13 + $0x228] sm:$0xf0] }
 0x17f   :  { %1506 = vmatpush.bf16.msra.mxu1 %v5742_v29  ;;  %v7790_v29 = vld [vmem:[#allocation13 + $0xa4] sm:$0xf0] }
 0x180   :  { %1526 = vmatpush.bf16.msra.mxu3 %v5938_v51  ;;  %v5554_v31 = vor.u32 %v7790_v29, %v5553_v28 }
 0x183   :  { %1551 = vmatpush.bf16.msrb.mxu1 %v5974_v44  ;;  %v5777_v44 = vld [vmem:[#allocation13 + $0x248] sm:$0xf] }
 0x184   :  { %1527 = vmatpush.bf16.msra.mxu3 %v5906_v63  ;;  %v5778_v51 = vor.u32 %v7846_v46, %v5777_v44  ;;  %v5494_v63 = vor.u32 %v7770_v60, %v5491_v61  ;;  %v5691_v44 = vld [vmem:[#allocation13 + $0x1b0] sm:$0xf0] }
 0x185   :  { %v5947_v46 = vld [vmem:[#allocation13 + $0x3b0] sm:$0xf0] }
 0x187   :  { %1552 = vmatpush.bf16.msrb.mxu1 %v5942_v55  ;;  %v5489_v55 = vld [vmem:[#allocation13 + $0x8] sm:$0xf] }
 0x188   :  { %v5490_v58 = vor.u32 %v7774_v56, %v5489_v55  ;;  %v7879_v55 = vld [vmem:[#allocation13 + $0x36c] sm:$0xf0]  ;;  %v7811_v56 = vld [vmem:[#allocation13 + $0x154] sm:$0xf] }
 0x18b   :  { %1553 = vmatpush.bf16.msrb.mxu1 %v5910_v4 }
 0x1e2   :  { %v628_v9 = vpop.xlane.xlu0 %627 }
 0x1e3   :  { %v636_v11 = vmul.f32 %v8887_v2, %v628_v9  ;;  %v7870_v9 = vld [vmem:[#allocation13 + $0x324] sm:$0xf0] }
 0x1e4   :  { %v5874_v12 = vor.u32 %v7870_v9, %v5873_v7 }
 0x1e5   :  { %v8891_v48 = vsub.f32 %v8871_v42, %v636_v11  ;;  %v8894_v15 = vsub.f32 %v8873_v43, %v636_v11  ;;  %v5482_v42 = vor.u32 %v7773_v20, %v5481_v19  ;;  %v5483_v43 = vld [vmem:[#allocation13 + $0x20] sm:$0xf0]  ;;  %v5619_v11 = vld [vmem:[#allocation13 + $0x128] sm:$0xf0]  ;;  %v7798_v19 = vld [vmem:[#allocation13 + $0xe4] sm:$0xf0] }
 0x1e6   :  { %v5486_v25 = vor.u32 %v7769_v23, %v5483_v43  ;;  %v5622_v13 = vor.u32 %v7802_v10, %v5619_v11  ;;  %v5841_v20 = vld [vmem:[#allocation13 + $0x2c8] sm:$0xf]  ;;  %1528 = vmatpush.bf16.msra.mxu3 %v5874_v12  ;;  %v5587_v23 = vld [vmem:[#allocation13 + $0xe8] sm:$0xf0] }
 0x1e7   :  { %v639_v16 = vmul.f32 %v8891_v48, %v8891_v48  ;;  %v640_v17 = vmul.f32 %v8894_v15, %v8894_v15  ;;  %1467 = vmatpush.bf16.msrb.mxu2 %v5482_v42  ;;  %v7862_v42 = vld [vmem:[#allocation13 + $0x2e4] sm:$0xf0]  ;;  %v5590_v24 = vor.u32 %v7794_v22, %v5587_v23  ;;  %v624_v11 = vld [vmem:[%s9102_s5] sm:$0x3] }
 0x1e8   :  { %1493 = vmatpush.bf16.msra.mxu0 %v5486_v25  ;;  %v5842_v43 = vor.u32 %v7862_v42, %v5841_v20  ;;  %v7858_v25 = vld [vmem:[#allocation13 + $0x2cc] sm:$0xf] }
 0x1e9   :  { %v641_v18 = vadd.f32 %v640_v17, %v639_v16  ;;  %v5875_v16 = vld [vmem:[#allocation13 + $0x328] sm:$0xf0]  ;;  %v5846_v27 = vor.u32 %v7858_v25, %v5843_v26  ;;  %v5977_v25 = vld [vmem:[#allocation13 + $0x3d0] sm:$0xf] }
 0x1ea   :  { %v5878_v17 = vor.u32 %v7866_v14, %v5875_v16  ;;  %1529 = vmatpush.bf16.msra.mxu3 %v5842_v43  ;;  %v659_v16 = vperm.slane %v624_v11, 0  ;;  %v5721_v43 = vld [vmem:[#allocation13 + $0x1d0] sm:$0xf] }
 0x1eb   :  { %642 = vadd.xlane.f32.xlu0 %v641_v18  ;;  %1512 = vmatpush.bf16.msra.mxu2 %v5714_v33  ;;  %v5585_v18 = vld [vmem:[#allocation13 + $0xc8] sm:$0xf]  ;;  %v7786_v33 = vld [vmem:[#allocation13 + $0x8c] sm:$0xf]  ;;  %v7895_v26 = vld [vmem:[#allocation13 + $0x3ec] sm:$0xf0] }
 0x1ec   :  { %1538 = vmatpush.bf16.msrb.mxu0 %v5718_v38  ;;  %v5586_v21 = vor.u32 %v7798_v19, %v5585_v18  ;;  %1554 = vmatpush.bf16.msrb.mxu1 %v5878_v17  ;;  %v5558_v36 = vor.u32 %v7786_v33, %v5555_v34  ;;  %v5811_v38 = vld [vmem:[#allocation13 + $0x2a8] sm:$0xf0]  ;;  %v660_v17 = vperm.slane %v624_v11, 1  ;;  %v5978_v34 = vor.u32 %v7895_v26, %v5977_v25  ;;  %v5593_v11 = vld [vmem:[#allocation13 + $0xd0] sm:$0xf] }
 0x1ed   :  { %v5814_v39 = vor.u32 %v7850_v37, %v5811_v38  ;;  %v5817_v26 = vld [vmem:[#allocation13 + $0x290] sm:$0xf] }
 0x1ee   :  { %1530 = vmatpush.bf16.msra.mxu3 %v5810_v35  ;;  %v5689_v35 = vld [vmem:[#allocation13 + $0x190] sm:$0xf] }
 0x1ef   :  { %1513 = vmatpush.bf16.msra.mxu2 %v5682_v45  ;;  %v5522_v45 = vor.u32 %v7782_v41, %v5521_v40  ;;  %v7887_v40 = vld [vmem:[#allocation13 + $0x3ac] sm:$0xf0]  ;;  %v7819_v41 = vld [vmem:[#allocation13 + $0x194] sm:$0xf] }
 0x1f0   :  { %1539 = vmatpush.bf16.msrb.mxu0 %v5686_v50  ;;  %1555 = vmatpush.bf16.msrb.mxu1 %v5846_v27  ;;  %v5782_v50 = vor.u32 %v7842_v53, %v5779_v54  ;;  %v7827_v27 = vld [vmem:[#allocation13 + $0x1d4] sm:$0xf]  ;;  %v5694_v53 = vor.u32 %v7819_v41, %v5691_v44  ;;  %v7847_v41 = vld [vmem:[#allocation13 + $0x26c] sm:$0xf0] }
 0x1f1   :  { %v5726_v37 = vor.u32 %v7827_v27, %v5723_v30  ;;  %v7855_v27 = vld [vmem:[#allocation13 + $0x2ac] sm:$0xf0]  ;;  %v7787_v30 = vld [vmem:[#allocation13 + $0x94] sm:$0xf] }
 0x1f2   :  { %1531 = vmatpush.bf16.msra.mxu3 %v5778_v51  ;;  %v5657_v51 = vld [vmem:[#allocation13 + $0x150] sm:$0xf]  ;;  %v7779_v44 = vld [vmem:[#allocation13 + $0x54] sm:$0xf] }
 0x1f3   :  { %1514 = vmatpush.bf16.msra.mxu2 %v5650_v59  ;;  %v7838_v59 = vld [vmem:[#allocation13 + $0x224] sm:$0xf0] }
 0x1f4   :  { %1540 = vmatpush.bf16.msrb.mxu0 %v5654_v0  ;;  %1556 = vmatpush.bf16.msrb.mxu1 %v5814_v39  ;;  %v5746_v62 = vor.u32 %v7838_v59, %v5745_v57  ;;  %v7834_v0 = vld [vmem:[#allocation13 + $0x20c] sm:$0xf]  ;;  %v5945_v39 = vld [vmem:[#allocation13 + $0x390] sm:$0xf]  ;;  %v5659_v57 = vld [vmem:[#allocation13 + $0x170] sm:$0xf0] }
 0x1f5   :  { %v5750_v3 = vor.u32 %v7834_v0, %v5747_v1  ;;  %v5946_v49 = vor.u32 %v7887_v40, %v5945_v39  ;;  %v5915_v59 = vld [vmem:[#allocation13 + $0x370] sm:$0xf0]  ;;  %v5662_v0 = vor.u32 %v7811_v56, %v5659_v57  ;;  %v5785_v40 = vld [vmem:[#allocation13 + $0x250] sm:$0xf] }
 0x1f6   :  { %1532 = vmatpush.bf16.msra.mxu3 %v5746_v62  ;;  %v5625_v62 = vld [vmem:[#allocation13 + $0x110] sm:$0xf]  ;;  %v7771_v57 = vld [vmem:[#allocation13 + $0x14] sm:$0xf] }
 0x1f7   :  { %1515 = vmatpush.bf16.msra.mxu2 %v5618_v8 }
 0x1f8   :  { %1541 = vmatpush.bf16.msrb.mxu0 %v5622_v13  ;;  %1557 = vmatpush.bf16.msrb.mxu1 %v5782_v50  ;;  %v625_v13 = vld [vmem:[#allocation11] sm:$0x3]  ;;  %v5913_v50 = vld [vmem:[#allocation13 + $0x350] sm:$0xf] }
 0x1f9   :  { %v666_v19 = vperm.slane %v625_v13, 0  ;;  %v667_v20 = vperm.slane %v625_v13, 1  ;;  %v5914_v61 = vor.u32 %v7879_v55, %v5913_v50  ;;  %v7839_v50 = vld [vmem:[#allocation13 + $0x22c] sm:$0xf0] }
 0x1fb   :  { %1516 = vmatpush.bf16.msra.mxu2 %v5586_v21 }
 0x1fc   :  { %1542 = vmatpush.bf16.msrb.mxu0 %v5590_v24  ;;  %1558 = vmatpush.bf16.msrb.mxu1 %v5750_v3  ;;  %v7831_v24 = vld [vmem:[#allocation13 + $0x1ec] sm:$0xf0] }
 0x1fd   :  { %v5881_v3 = vld [vmem:[#allocation13 + $0x310] sm:$0xf] }
 0x1ff   :  { %1517 = vmatpush.bf16.msra.mxu2 %v5554_v31  ;;  %v7891_v31 = vld [vmem:[#allocation13 + $0x3d4] sm:$0xf] }
 0x200   :  { %1543 = vmatpush.bf16.msrb.mxu0 %v5558_v36  ;;  %v7823_v36 = vld [vmem:[#allocation13 + $0x1ac] sm:$0xf0]  ;;  %v5982_v38 = vor.u32 %v7891_v31, %v5979_v32  ;;  %v5563_v31 = vld [vmem:[#allocation13 + $0xb0] sm:$0xf0] }
 0x201   :  { %v5690_v47 = vor.u32 %v7823_v36, %v5689_v35  ;;  %v7851_v32 = vld [vmem:[#allocation13 + $0x294] sm:$0xf]  ;;  %v5818_v35 = vor.u32 %v7855_v27, %v5817_v26  ;;  %v5529_v36 = vld [vmem:[#allocation13 + $0x50] sm:$0xf]  ;;  %v5921_v27 = vld [vmem:[#allocation13 + $0x358] sm:$0xf] }
 0x203   :  { %1518 = vmatpush.bf16.msra.mxu2 %v5522_v45  ;;  %v7883_v45 = vld [vmem:[#allocation13 + $0x394] sm:$0xf] }
 0x204   :  { %1544 = vmatpush.bf16.msrb.mxu0 %v5526_v52  ;;  %v7815_v52 = vld [vmem:[#allocation13 + $0x16c] sm:$0xf0]  ;;  %v5950_v54 = vor.u32 %v7883_v45, %v5947_v46  ;;  %v5531_v45 = vld [vmem:[#allocation13 + $0x70] sm:$0xf0] }
 0x205   :  { %v5658_v60 = vor.u32 %v7815_v52, %v5657_v51  ;;  %v7843_v46 = vld [vmem:[#allocation13 + $0x254] sm:$0xf]  ;;  %v5786_v52 = vor.u32 %v7847_v41, %v5785_v40  ;;  %v5534_v55 = vor.u32 %v7779_v44, %v5531_v45  ;;  %v5889_v41 = vld [vmem:[#allocation13 + $0x318] sm:$0xf]  ;;  %v7804_v45 = vld [vmem:[#allocation13 + $0x11c] sm:$0xf] }
 0x206   :  { %v7872_v44 = vld [vmem:[#allocation13 + $0x334] sm:$0xf0] }
 0x207   :  { %1519 = vmatpush.bf16.msra.mxu2 %v5490_v58  ;;  %v7875_v58 = vld [vmem:[#allocation13 + $0x354] sm:$0xf] }
 0x208   :  { %1545 = vmatpush.bf16.msrb.mxu0 %v5494_v63  ;;  %v7807_v63 = vld [vmem:[#allocation13 + $0x12c] sm:$0xf0]  ;;  %v5918_v1 = vor.u32 %v7875_v58, %v5915_v59  ;;  %v5499_v58 = vld [vmem:[#allocation13 + $0x30] sm:$0xf0] }
 0x209   :  { %v7835_v59 = vld [vmem:[#allocation13 + $0x214] sm:$0xf] }
 0x25e   :  { %v643_v4 = vpop.xlane.xlu0 %642 }
 0x25f   :  { %v644_v5 = vmul.f32 %v643_v4, %v8887_v2  ;;  %v7871_v4 = vld [vmem:[#allocation13 + $0x32c] sm:$0xf0] }
 0x261   :  { %v645_v6 = vadd.f32 1e-05, %v644_v5  ;;  %v7803_v5 = vld [vmem:[#allocation13 + $0x114] sm:$0xf] }
 0x263   :  { %8356 = vrsqrt.f32 %v645_v6  ;;  %vm652_vm2 = vweird.f32 %v645_v6 }
 0x269   :  { %v8357_v7 = vpop.eup %8356 }
 0x26a   :  { %v647_v8 = vmul.f32 %v8357_v7, %v645_v6  ;;  %vm653_vm1 = vweird.f32 %v8357_v7  ;;  %v5627_v6 = vld [vmem:[#allocation13 + $0x130] sm:$0xf0] }
 0x26b   :  { %vm654_vm3 = vmor %vm652_vm2, %vm653_vm1  ;;  %v5630_v13 = vor.u32 %v7803_v5, %v5627_v6  ;;  %v5731_v5 = vld [vmem:[#allocation13 + $0x1f8] sm:$0xf0] }
 0x26c   :  { %v648_v9 = vmul.f32 %v8357_v7, %v647_v8  ;;  %v5883_v8 = vld [vmem:[#allocation13 + $0x330] sm:$0xf0]  ;;  %v7892_v6 = vld [vmem:[#allocation13 + $0x3dc] sm:$0xf] }
 0x26e   :  { %v649_v10 = vmul.f32 0.5, %v648_v9  ;;  %v5626_v9 = vor.u32 %v7807_v63, %v5625_v62  ;;  %v7832_v62 = vld [vmem:[#allocation13 + $0x1f4] sm:$0xf0] }
 0x26f   :  { %v5985_v63 = vld [vmem:[#allocation13 + $0x3d8] sm:$0xf] }
 0x270   :  { %v650_v12 = vsub.f32 1.5, %v649_v10  ;;  %v5882_v10 = vor.u32 %v7871_v4, %v5881_v3 }
 0x272   :  { %v651_v14 = vmul.f32 %v8357_v7, %v650_v12  ;;  %v7799_v12 = vld [vmem:[#allocation13 + $0xec] sm:$0xf0] }
 0x274   :  { %v655_v18 = vsel %vm654_vm3, %v8357_v7, %v651_v14  ;;  %v7867_v7 = vld [vmem:[#allocation13 + $0x314] sm:$0xf] }
 0x275   :  { %v656_v21 = vmul.f32 %v655_v18, %v8891_v48  ;;  %v657_v42 = vmul.f32 %v655_v18, %v8894_v15  ;;  %v5722_v15 = vor.u32 %v7831_v24, %v5721_v43  ;;  %v5886_v14 = vor.u32 %v7867_v7, %v5883_v8  ;;  %v7795_v18 = vld [vmem:[#allocation13 + $0xd4] sm:$0xf]  ;;  %v7791_v43 = vld [vmem:[#allocation13 + $0xac] sm:$0xf0]  ;;  %v5987_v7 = vld [vmem:[#allocation13 + $0x3f8] sm:$0xf0] }
 0x276   :  { %v5502_v8 = vor.u32 %v7771_v57, %v5499_v58  ;;  %v7864_v57 = vld [vmem:[#allocation13 + $0x2f4] sm:$0xf0]  ;;  %v7796_v58 = vld [vmem:[#allocation13 + $0xdc] sm:$0xf] }
 0x277   :  { %v663_v22 = vmul.f32 %v659_v16, %v656_v21  ;;  %v664_v23 = vmul.f32 %v660_v17, %v657_v42  ;;  %v5849_v16 = vld [vmem:[#allocation13 + $0x2d0] sm:$0xf]  ;;  %v5851_v21 = vld [vmem:[#allocation13 + $0x2f0] sm:$0xf0]  ;;  %v5594_v42 = vor.u32 %v7799_v12, %v5593_v11  ;;  %v5697_v12 = vld [vmem:[#allocation13 + $0x198] sm:$0xf] }
 0x278   :  { %v7863_v17 = vld [vmem:[#allocation13 + $0x2ec] sm:$0xf0] }
 0x279   :  { %v8906_v28 = vadd.f32 %v666_v19, %v663_v22  ;;  %v8908_v29 = vadd.f32 %v667_v20, %v664_v23  ;;  %v5595_v19 = vld [vmem:[#allocation13 + $0xf0] sm:$0xf0]  ;;  %v5850_v22 = vor.u32 %v7863_v17, %v5849_v16  ;;  %v5561_v23 = vld [vmem:[#allocation13 + $0x90] sm:$0xf]  ;;  %v5990_v16 = vor.u32 %v7892_v6, %v5987_v7  ;;  %v5953_v17 = vld [vmem:[#allocation13 + $0x398] sm:$0xf] }
 0x27a   :  { %v7859_v20 = vld [vmem:[#allocation13 + $0x2d4] sm:$0xf]  ;;  %v5598_v24 = vor.u32 %v7795_v18, %v5595_v19  ;;  %v7888_v18 = vld [vmem:[#allocation13 + $0x3b4] sm:$0xf0]  ;;  %v7820_v19 = vld [vmem:[#allocation13 + $0x19c] sm:$0xf] }
 0x27b   :  { %v8912_v33 = vpack.c.bf16 %v8906_v28, %v8906_v28  ;;  %v8916_v48 = vpack.c.bf16 %v8908_v29, %v8908_v29  ;;  %v5854_v25 = vor.u32 %v7859_v20, %v5851_v21  ;;  %v5699_v20 = vld [vmem:[#allocation13 + $0x1b8] sm:$0xf0]  ;;  %v7856_v6 = vld [vmem:[#allocation13 + $0x2b4] sm:$0xf0] }
 0x27c   :  { %v7884_v21 = vld [vmem:[#allocation13 + $0x39c] sm:$0xf] }
 0x27d   :  { %1468 = vmatmul.bf16.vlgmr.msrb.gmra.mxu2 %v8912_v33  ;;  %1481 = vmatmul.bf16.vlgmr.msrb.gmra.mxu3 %v8916_v48  ;;  %v7788_v7 = vld [vmem:[#allocation13 + $0x9c] sm:$0xf] }
 0x27e   :  { %1494 = vmatmul.bf16.vlgmr.msra.gmra.mxu0 %v8912_v33  ;;  %1507 = vmatmul.bf16.vlgmr.msra.gmra.mxu1 %v8916_v48 }
 0x27f   :  { %1564 = vmatpush.bf16.msrb.mxu2 %v5722_v15  ;;  %1577 = vmatpush.bf16.msrb.mxu3 %v5978_v34  ;;  %v5819_v15 = vld [vmem:[#allocation13 + $0x2b0] sm:$0xf0]  ;;  %v5562_v34 = vor.u32 %v7791_v43, %v5561_v23  ;;  %v5954_v23 = vor.u32 %v7888_v18, %v5953_v17  ;;  %v5665_v43 = vld [vmem:[#allocation13 + $0x158] sm:$0xf] }
 0x280   :  { %1590 = vmatpush.bf16.msra.mxu0 %v5726_v37  ;;  %1603 = vmatpush.bf16.msra.mxu1 %v5982_v38  ;;  %v7783_v37 = vld [vmem:[#allocation13 + $0x6c] sm:$0xf0]  ;;  %v5566_v38 = vor.u32 %v7787_v30, %v5563_v31  ;;  %v5822_v39 = vor.u32 %v7851_v32, %v5819_v15  ;;  %v7880_v30 = vld [vmem:[#allocation13 + $0x374] sm:$0xf0]  ;;  %v7812_v31 = vld [vmem:[#allocation13 + $0x15c] sm:$0xf] }
 0x281   :  { %v5530_v51 = vor.u32 %v7783_v37, %v5529_v36  ;;  %v5667_v32 = vld [vmem:[#allocation13 + $0x178] sm:$0xf0]  ;;  %v5922_v36 = vor.u32 %v7880_v30, %v5921_v27  ;;  %v5633_v37 = vld [vmem:[#allocation13 + $0x118] sm:$0xf] }
 0x282   :  { %v7876_v15 = vld [vmem:[#allocation13 + $0x35c] sm:$0xf]  ;;  %v5793_v18 = vld [vmem:[#allocation13 + $0x258] sm:$0xf] }
 0x283   :  { %1565 = vmatpush.bf16.msrb.mxu2 %v5690_v47  ;;  %1578 = vmatpush.bf16.msrb.mxu3 %v5946_v49  ;;  %v5787_v47 = vld [vmem:[#allocation13 + $0x270] sm:$0xf0]  ;;  %v5497_v49 = vld [vmem:[#allocation13 + $0x10] sm:$0xf] }
 0x284   :  { %1591 = vmatpush.bf16.msra.mxu0 %v5694_v53  ;;  %1604 = vmatpush.bf16.msra.mxu1 %v5950_v54  ;;  %v7775_v53 = vld [vmem:[#allocation13 + $0x2c] sm:$0xf0]  ;;  %v5790_v56 = vor.u32 %v7843_v46, %v5787_v47  ;;  %v5635_v46 = vld [vmem:[#allocation13 + $0x138] sm:$0xf0] }
 0x285   :  { %v5753_v54 = vld [vmem:[#allocation13 + $0x210] sm:$0xf]  ;;  %v5498_v3 = vor.u32 %v7775_v53, %v5497_v49  ;;  %v7868_v47 = vld [vmem:[#allocation13 + $0x31c] sm:$0xf]  ;;  %v5601_v53 = vld [vmem:[#allocation13 + $0xd8] sm:$0xf] }
 0x286   :  { %v5754_v4 = vor.u32 %v7839_v50, %v5753_v54  ;;  %v5891_v49 = vld [vmem:[#allocation13 + $0x338] sm:$0xf0]  ;;  %v7800_v54 = vld [vmem:[#allocation13 + $0xf4] sm:$0xf0]  ;;  %v5638_v50 = vor.u32 %v7804_v45, %v5635_v46 }
 0x287   :  { %1566 = vmatpush.bf16.msrb.mxu2 %v5658_v60  ;;  %1579 = vmatpush.bf16.msrb.mxu3 %v5914_v61  ;;  %v5755_v60 = vld [vmem:[#allocation13 + $0x230] sm:$0xf0]  ;;  %v5729_v61 = vld [vmem:[#allocation13 + $0x1d8] sm:$0xf] }
 0x288   :  { %1592 = vmatpush.bf16.msra.mxu0 %v5662_v0  ;;  %1605 = vmatpush.bf16.msra.mxu1 %v5918_v1  ;;  %v7896_v0 = vld [vmem:[#allocation13 + $0x3f4] sm:$0xf0]  ;;  %v7828_v1 = vld [vmem:[#allocation13 + $0x1dc] sm:$0xf] }
 0x289   :  { %v5986_v11 = vor.u32 %v7896_v0, %v5985_v63  ;;  %v5569_v0 = vld [vmem:[#allocation13 + $0x98] sm:$0xf] }
 0x28b   :  { %1567 = vmatpush.bf16.msrb.mxu2 %v5626_v9  ;;  %1580 = vmatpush.bf16.msrb.mxu3 %v5882_v10  ;;  %v5758_v9 = vor.u32 %v7835_v59, %v5755_v60  ;;  %v5730_v10 = vor.u32 %v7832_v62, %v5729_v61  ;;  %v5603_v59 = vld [vmem:[#allocation13 + $0xf8] sm:$0xf0]  ;;  %v5602_v62 = vor.u32 %v7800_v54, %v5601_v53  ;;  %v7926_v53 = vld [vmem:[#allocation16 + $0xe4] sm:$0xf0]  ;;  %v6041_v54 = vld [vmem:[#allocation16 + $0x60] sm:$0xf] }
 0x28c   :  { %1593 = vmatpush.bf16.msra.mxu0 %v5630_v13  ;;  %1606 = vmatpush.bf16.msra.mxu1 %v5886_v14  ;;  %v7824_v13 = vld [vmem:[#allocation13 + $0x1b4] sm:$0xf0]  ;;  %v5734_v14 = vor.u32 %v7828_v1, %v5731_v5  ;;  %v7860_v60 = vld [vmem:[#allocation13 + $0x2dc] sm:$0xf] }
 0x28d   :  { %1520 = vmatmul.bf16.vlgmr.msra.gmra.mxu2 %v8912_v33  ;;  %1533 = vmatmul.bf16.vlgmr.msra.gmra.mxu3 %v8916_v48  ;;  %v5859_v61 = vld [vmem:[#allocation13 + $0x2f8] sm:$0xf0]  ;;  %v7792_v1 = vld [vmem:[#allocation13 + $0xb4] sm:$0xf0] }
 0x28e   :  { %1546 = vmatmul.bf16.vlgmr.msrb.gmra.mxu0 %v8912_v33  ;;  %1559 = vmatmul.bf16.vlgmr.msrb.gmra.mxu1 %v8916_v48  ;;  %v5825_v5 = vld [vmem:[#allocation13 + $0x298] sm:$0xf] }
 0x28f   :  { %1568 = vmatpush.bf16.msrb.mxu2 %v5594_v42  ;;  %1581 = vmatpush.bf16.msrb.mxu3 %v5850_v22  ;;  %v5955_v42 = vld [vmem:[#allocation13 + $0x3b8] sm:$0xf0]  ;;  %v5698_v22 = vor.u32 %v7824_v13, %v5697_v12  ;;  %v5826_v12 = vor.u32 %v7856_v6, %v5825_v5  ;;  %v5537_v13 = vld [vmem:[#allocation13 + $0x58] sm:$0xf] }
 0x290   :  { %1594 = vmatpush.bf16.msra.mxu0 %v5598_v24  ;;  %1607 = vmatpush.bf16.msra.mxu1 %v5854_v25  ;;  %v7816_v24 = vld [vmem:[#allocation13 + $0x174] sm:$0xf0]  ;;  %v5702_v25 = vor.u32 %v7820_v19, %v5699_v20  ;;  %v5958_v26 = vor.u32 %v7884_v21, %v5955_v42  ;;  %v7780_v20 = vld [vmem:[#allocation13 + $0x5c] sm:$0xf] }
 0x291   :  { %v7848_v19 = vld [vmem:[#allocation13 + $0x274] sm:$0xf0]  ;;  %v5539_v21 = vld [vmem:[#allocation13 + $0x78] sm:$0xf0] }
 0x292   :  { %v7844_v42 = vld [vmem:[#allocation13 + $0x25c] sm:$0xf]  ;;  %v5542_v27 = vor.u32 %v7780_v20, %v5539_v21  ;;  %v6017_v20 = vld [vmem:[#allocation16 + $0x30] sm:$0xf]  ;;  %v6217_v21 = vld [vmem:[#allocation16 + $0x1c0] sm:$0xf] }
 0x293   :  { %1569 = vmatpush.bf16.msrb.mxu2 %v5562_v34  ;;  %1582 = vmatpush.bf16.msrb.mxu3 %v5818_v35  ;;  %v5923_v34 = vld [vmem:[#allocation13 + $0x378] sm:$0xf0]  ;;  %v5666_v35 = vor.u32 %v7816_v24, %v5665_v43  ;;  %v5794_v43 = vor.u32 %v7848_v19, %v5793_v18  ;;  %v5505_v24 = vld [vmem:[#allocation13 + $0x18] sm:$0xf] }
 0x294   :  { %1595 = vmatpush.bf16.msra.mxu0 %v5566_v38  ;;  %1608 = vmatpush.bf16.msra.mxu1 %v5822_v39  ;;  %v7808_v38 = vld [vmem:[#allocation13 + $0x134] sm:$0xf0]  ;;  %v5670_v39 = vor.u32 %v7812_v31, %v5667_v32  ;;  %v5926_v40 = vor.u32 %v7876_v15, %v5923_v34  ;;  %v7772_v32 = vld [vmem:[#allocation13 + $0x1c] sm:$0xf] }
 0x295   :  { %v7840_v31 = vld [vmem:[#allocation13 + $0x234] sm:$0xf0]  ;;  %v5507_v15 = vld [vmem:[#allocation13 + $0x38] sm:$0xf0] }
 0x296   :  { %v7836_v34 = vld [vmem:[#allocation13 + $0x21c] sm:$0xf] }
 0x297   :  { %1570 = vmatpush.bf16.msrb.mxu2 %v5530_v51  ;;  %1583 = vmatpush.bf16.msrb.mxu3 %v5786_v52  ;;  %v5634_v51 = vor.u32 %v7808_v38, %v5633_v37  ;;  %v5890_v52 = vor.u32 %v7872_v44, %v5889_v41  ;;  %v7928_v37 = vld [vmem:[#allocation16 + $0xf4] sm:$0xf0]  ;;  %v6049_v38 = vld [vmem:[#allocation16 + $0x70] sm:$0xf]  ;;  %v5510_v44 = vor.u32 %v7772_v32, %v5507_v15  ;;  %v7918_v15 = vld [vmem:[#allocation16 + $0xa4] sm:$0xf0] }
 0x298   :  { %1596 = vmatpush.bf16.msra.mxu0 %v5534_v55  ;;  %1609 = vmatpush.bf16.msra.mxu1 %v5790_v56  ;;  %v5894_v55 = vor.u32 %v7868_v47, %v5891_v49  ;;  %v5857_v56 = vld [vmem:[#allocation13 + $0x2d8] sm:$0xf]  ;;  %v6105_v47 = vld [vmem:[#allocation16 + $0xe0] sm:$0xf]  ;;  %v7952_v32 = vld [vmem:[#allocation16 + $0x1b4] sm:$0xf0] }
 0x299   :  { %v5858_v63 = vor.u32 %v7864_v57, %v5857_v56  ;;  %v6106_v57 = vor.u32 %v7926_v53, %v6105_v47  ;;  %v7914_v47 = vld [vmem:[#allocation16 + $0x84] sm:$0xf0] }
 0x29a   :  { %v7898_v53 = vld [vmem:[#allocation16 + $0x4] sm:$0xf0] }
 0x29b   :  { %1571 = vmatpush.bf16.msrb.mxu2 %v5498_v3  ;;  %1584 = vmatpush.bf16.msrb.mxu3 %v5754_v4  ;;  %v5606_v3 = vor.u32 %v7796_v58, %v5603_v59  ;;  %v5862_v4 = vor.u32 %v7860_v60, %v5859_v61  ;;  %v7924_v58 = vld [vmem:[#allocation16 + $0xd4] sm:$0xf0]  ;;  %v6233_v60 = vld [vmem:[#allocation16 + $0x1e0] sm:$0xf]  ;;  %v7958_v61 = vld [vmem:[#allocation16 + $0x1e4] sm:$0xf0] }
 0x29c   :  { %1597 = vmatpush.bf16.msra.mxu0 %v5502_v8  ;;  %1610 = vmatpush.bf16.msra.mxu1 %v5758_v9  ;;  %v5571_v8 = vld [vmem:[#allocation13 + $0xb8] sm:$0xf0]  ;;  %v6234_v5 = vor.u32 %v7958_v61, %v6233_v60  ;;  %v7990_v61 = vld [vmem:[#allocation16 + $0x2e4] sm:$0xf0] }
 0x29d   :  { %v7852_v9 = vld [vmem:[#allocation13 + $0x29c] sm:$0xf] }
 0x29e   :  { %1572 = vmatmul.bf16.vlgmr.msrb.gmra.mxu2 %v8912_v33  ;;  %1585 = vmatmul.bf16.vlgmr.msrb.gmra.mxu3 %v8916_v48 }
 0x29f   :  { %1616 = vmatpush.bf16.msra.mxu2 %v5730_v10  ;;  %1629 = vmatpush.bf16.msra.mxu3 %v5986_v11  ;;  %v5827_v10 = vld [vmem:[#allocation13 + $0x2b8] sm:$0xf0]  ;;  %v5570_v11 = vor.u32 %v7792_v1, %v5569_v0  ;;  %v6177_v0 = vld [vmem:[#allocation16 + $0x170] sm:$0xf]  ;;  %v7944_v1 = vld [vmem:[#allocation16 + $0x174] sm:$0xf0] }
 0x2a0   :  { %1642 = vmatpush.bf16.msrb.mxu0 %v5734_v14  ;;  %1655 = vmatpush.bf16.msrb.mxu1 %v5990_v16  ;;  %v7784_v14 = vld [vmem:[#allocation13 + $0x74] sm:$0xf0]  ;;  %v5574_v16 = vor.u32 %v7788_v7, %v5571_v8  ;;  %v5830_v17 = vor.u32 %v7852_v9, %v5827_v10  ;;  %v6178_v6 = vor.u32 %v7944_v1, %v6177_v0  ;;  %v6025_v9 = vld [vmem:[#allocation16 + $0x40] sm:$0xf]  ;;  %v6225_v10 = vld [vmem:[#allocation16 + $0x1d0] sm:$0xf] }
 0x2a1   :  { %1598 = vmatmul.bf16.vlgmr.msra.gmra.mxu0 %v8912_v33  ;;  %1611 = vmatmul.bf16.vlgmr.msra.gmra.mxu1 %v8916_v48  ;;  %v6353_v1 = vld [vmem:[#allocation16 + $0x2d0] sm:$0xf] }
 0x2a3   :  { %1617 = vmatpush.bf16.msra.mxu2 %v5698_v22  ;;  %1630 = vmatpush.bf16.msra.mxu3 %v5954_v23  ;;  %v5795_v22 = vld [vmem:[#allocation13 + $0x278] sm:$0xf0]  ;;  %v5538_v23 = vor.u32 %v7784_v14, %v5537_v13  ;;  %v6169_v13 = vld [vmem:[#allocation16 + $0x160] sm:$0xf]  ;;  %v7942_v14 = vld [vmem:[#allocation16 + $0x164] sm:$0xf0] }
 0x2a4   :  { %1643 = vmatpush.bf16.msrb.mxu0 %v5702_v25  ;;  %1656 = vmatpush.bf16.msrb.mxu1 %v5958_v26  ;;  %v7776_v25 = vld [vmem:[#allocation13 + $0x34] sm:$0xf0]  ;;  %v5798_v30 = vor.u32 %v7844_v42, %v5795_v22  ;;  %v7904_v22 = vld [vmem:[#allocation16 + $0x34] sm:$0xf0] }
 0x2a5   :  { %v5761_v26 = vld [vmem:[#allocation13 + $0x218] sm:$0xf] }
 0x2a6   :  { %v5762_v41 = vor.u32 %v7840_v31, %v5761_v26  ;;  %v7954_v42 = vld [vmem:[#allocation16 + $0x1c4] sm:$0xf0]  ;;  %v6209_v31 = vld [vmem:[#allocation16 + $0x1b0] sm:$0xf] }
 0x2a7   :  { %1618 = vmatpush.bf16.msra.mxu2 %v5666_v35  ;;  %1631 = vmatpush.bf16.msra.mxu3 %v5922_v36  ;;  %v5763_v35 = vld [vmem:[#allocation13 + $0x238] sm:$0xf0]  ;;  %v6113_v36 = vld [vmem:[#allocation16 + $0xf0] sm:$0xf] }
 0x2a8   :  { %1644 = vmatpush.bf16.msrb.mxu0 %v5670_v39  ;;  %1657 = vmatpush.bf16.msrb.mxu1 %v5926_v40  ;;  %v7912_v39 = vld [vmem:[#allocation16 + $0x74] sm:$0xf0]  ;;  %v5506_v40 = vor.u32 %v7776_v25, %v5505_v24  ;;  %v5766_v45 = vor.u32 %v7836_v34, %v5763_v35  ;;  %v6114_v46 = vor.u32 %v7928_v37, %v6113_v36  ;;  %v6009_v34 = vld [vmem:[#allocation16 + $0x20] sm:$0xf]  ;;  %v7902_v35 = vld [vmem:[#allocation16 + $0x24] sm:$0xf0] }
 0x2a9   :  { %v6050_v49 = vor.u32 %v7912_v39, %v6049_v38  ;;  %v6218_v25 = vor.u32 %v7954_v42, %v6217_v21  ;;  %v6210_v36 = vor.u32 %v7952_v32, %v6209_v31  ;;  %v6065_v38 = vld [vmem:[#allocation16 + $0x90] sm:$0xf]  ;;  %v6010_v39 = vor.u32 %v7902_v35, %v6009_v34  ;;  %v7936_v42 = vld [vmem:[#allocation16 + $0x134] sm:$0xf0]  ;;  %v6329_v31 = vld [vmem:[#allocation16 + $0x2a0] sm:$0xf] }
 0x2aa   :  { %v6145_v21 = vld [vmem:[#allocation16 + $0x130] sm:$0xf]  ;;  %v7934_v34 = vld [vmem:[#allocation16 + $0x124] sm:$0xf0] }
 0x2ab   :  { %1619 = vmatpush.bf16.msra.mxu2 %v5634_v51  ;;  %1632 = vmatpush.bf16.msra.mxu3 %v5890_v52  ;;  %v6241_v51 = vld [vmem:[#allocation16 + $0x1f0] sm:$0xf]  ;;  %v7960_v52 = vld [vmem:[#allocation16 + $0x1f4] sm:$0xf0]  ;;  %v7982_v35 = vld [vmem:[#allocation16 + $0x2a4] sm:$0xf0] }
 0x2ac   :  { %1645 = vmatpush.bf16.msrb.mxu0 %v5638_v50  ;;  %1658 = vmatpush.bf16.msrb.mxu1 %v5894_v55  ;;  %v7910_v50 = vld [vmem:[#allocation16 + $0x64] sm:$0xf0]  ;;  %v6097_v55 = vld [vmem:[#allocation16 + $0xd0] sm:$0xf]  ;;  %v6242_v56 = vor.u32 %v7960_v52, %v6241_v51  ;;  %v5993_v52 = vld [vmem:[#allocation16] sm:$0xf] }
 0x2ad   :  { %v6042_v59 = vor.u32 %v7910_v50, %v6041_v54  ;;  %v6098_v7 = vor.u32 %v7924_v58, %v6097_v55  ;;  %v6369_v51 = vld [vmem:[#allocation16 + $0x2f0] sm:$0xf]  ;;  %v7992_v54 = vld [vmem:[#allocation16 + $0x2f4] sm:$0xf0] }
 0x2ae   :  { %v6305_v50 = vld [vmem:[#allocation16 + $0x270] sm:$0xf]  ;;  %v7976_v55 = vld [vmem:[#allocation16 + $0x274] sm:$0xf0]  ;;  %v6370_v58 = vor.u32 %v7992_v54, %v6369_v51 }
 0x2af   :  { %1620 = vmatpush.bf16.msra.mxu2 %v5602_v62  ;;  %1633 = vmatpush.bf16.msra.mxu3 %v5858_v63  ;;  %v6033_v62 = vld [vmem:[#allocation16 + $0x50] sm:$0xf]  ;;  %v7908_v63 = vld [vmem:[#allocation16 + $0x54] sm:$0xf0]  ;;  %v6306_v60 = vor.u32 %v7976_v55, %v6305_v50 }
 0x2b0   :  { %1646 = vmatpush.bf16.msrb.mxu0 %v5606_v3  ;;  %1659 = vmatpush.bf16.msrb.mxu1 %v5862_v4  ;;  %v6089_v3 = vld [vmem:[#allocation16 + $0xc0] sm:$0xf]  ;;  %v7922_v4 = vld [vmem:[#allocation16 + $0xc4] sm:$0xf0]  ;;  %v6034_v8 = vor.u32 %v7908_v63, %v6033_v62  ;;  %v7932_v51 = vld [vmem:[#allocation16 + $0x114] sm:$0xf0] }
 0x2b1   :  { %v6090_v18 = vor.u32 %v7922_v4, %v6089_v3  ;;  %v6297_v62 = vld [vmem:[#allocation16 + $0x260] sm:$0xf]  ;;  %v7974_v63 = vld [vmem:[#allocation16 + $0x264] sm:$0xf0]  ;;  %v7988_v4 = vld [vmem:[#allocation16 + $0x2d4] sm:$0xf0] }
 0x2b2   :  { %v6298_v3 = vor.u32 %v7974_v63, %v6297_v62  ;;  %v6257_v55 = vld [vmem:[#allocation16 + $0x210] sm:$0xf]  ;;  %v6121_v63 = vld [vmem:[#allocation16 + $0x100] sm:$0xf] }
 0x2b3   :  { %1621 = vmatpush.bf16.msra.mxu2 %v5570_v11  ;;  %1634 = vmatpush.bf16.msra.mxu3 %v5826_v12  ;;  %v7956_v11 = vld [vmem:[#allocation16 + $0x1d4] sm:$0xf0]  ;;  %v7906_v12 = vld [vmem:[#allocation16 + $0x44] sm:$0xf0] }
 0x2b4   :  { %1647 = vmatpush.bf16.msrb.mxu0 %v5574_v16  ;;  %1660 = vmatpush.bf16.msrb.mxu1 %v5830_v17  ;;  %v6081_v16 = vld [vmem:[#allocation16 + $0xb0] sm:$0xf]  ;;  %v6226_v17 = vor.u32 %v7956_v11, %v6225_v10  ;;  %v6026_v19 = vor.u32 %v7906_v12, %v6025_v9  ;;  %v6153_v10 = vld [vmem:[#allocation16 + $0x140] sm:$0xf]  ;;  %v7938_v11 = vld [vmem:[#allocation16 + $0x144] sm:$0xf0] }
 0x2b5   :  { %v7986_v12 = vld [vmem:[#allocation16 + $0x2c4] sm:$0xf0] }
 0x2b7   :  { %1622 = vmatpush.bf16.msra.mxu2 %v5538_v23  ;;  %1635 = vmatpush.bf16.msra.mxu3 %v5794_v43  ;;  %v6161_v23 = vld [vmem:[#allocation16 + $0x150] sm:$0xf]  ;;  %v7940_v43 = vld [vmem:[#allocation16 + $0x154] sm:$0xf0] }
 0x2b8   :  { %1648 = vmatpush.bf16.msrb.mxu0 %v5542_v27  ;;  %1661 = vmatpush.bf16.msrb.mxu1 %v5798_v30  ;;  %v6162_v24 = vor.u32 %v7940_v43, %v6161_v23  ;;  %v6073_v27 = vld [vmem:[#allocation16 + $0xa0] sm:$0xf]  ;;  %v6018_v30 = vor.u32 %v7904_v22, %v6017_v20  ;;  %v7984_v22 = vld [vmem:[#allocation16 + $0x2b4] sm:$0xf0]  ;;  %v6146_v23 = vor.u32 %v7936_v42, %v6145_v21  ;;  %v6273_v43 = vld [vmem:[#allocation16 + $0x230] sm:$0xf] }
 0x2b9   :  { %v6074_v37 = vor.u32 %v7918_v15, %v6073_v27  ;;  %v6137_v15 = vld [vmem:[#allocation16 + $0x120] sm:$0xf]  ;;  %v8004_v21 = vld [vmem:[#allocation16 + $0x354] sm:$0xf0] }
 0x2bb   :  { %1623 = vmatpush.bf16.msra.mxu2 %v5506_v40  ;;  %1636 = vmatpush.bf16.msra.mxu3 %v5762_v41  ;;  %v7916_v40 = vld [vmem:[#allocation16 + $0x94] sm:$0xf0]  ;;  %v6001_v41 = vld [vmem:[#allocation16 + $0x10] sm:$0xf] }
 0x2bc   :  { %1649 = vmatpush.bf16.msrb.mxu0 %v5510_v44  ;;  %1662 = vmatpush.bf16.msrb.mxu1 %v5766_v45  ;;  %v7900_v44 = vld [vmem:[#allocation16 + $0x14] sm:$0xf0]  ;;  %v6066_v45 = vor.u32 %v7916_v40, %v6065_v38  ;;  %v7966_v38 = vld [vmem:[#allocation16 + $0x224] sm:$0xf0] }
 0x2bd   :  { %v7946_v40 = vld [vmem:[#allocation16 + $0x184] sm:$0xf0] }
 0x2be   :  { %1624 = vmatmul.bf16.vlgmr.msra.gmra.mxu2 %v8912_v33  ;;  %1637 = vmatmul.bf16.vlgmr.msra.gmra.mxu3 %v8916_v48 }
 0x2bf   :  { %2471 = vmatpush.bf16.msrb.mxu3 %v6114_v46  ;;  %2458 = vmatpush.bf16.msrb.mxu2 %v6050_v49  ;;  %v6057_v46 = vld [vmem:[#allocation16 + $0x80] sm:$0xf]  ;;  %v6002_v49 = vor.u32 %v7900_v44, %v6001_v41  ;;  %v6497_v44 = vld [vmem:[#allocation16 + $0x3f0] sm:$0xf] }
 0x2c0   :  { %1650 = vmatmul.bf16.vlgmr.msrb.gmra.mxu0 %v8912_v33  ;;  %1663 = vmatmul.bf16.vlgmr.msrb.gmra.mxu1 %v8916_v48  ;;  %v6170_v33 = vor.u32 %v7942_v14, %v6169_v13  ;;  %v7920_v48 = vld [vmem:[#allocation16 + $0xb4] sm:$0xf0]  ;;  %v6154_v13 = vor.u32 %v7938_v11, %v6153_v10  ;;  %v6281_v14 = vld [vmem:[#allocation16 + $0x240] sm:$0xf] }
 0x2c1   :  { %2497 = vmatpush.bf16.msra.mxu1 %v6242_v56  ;;  %2484 = vmatpush.bf16.msra.mxu0 %v6178_v6  ;;  %v6082_v26 = vor.u32 %v7920_v48, %v6081_v16  ;;  %v6058_v56 = vor.u32 %v7914_v47, %v6057_v46  ;;  %v7972_v6 = vld [vmem:[#allocation16 + $0x254] sm:$0xf0]  ;;  %v6201_v16 = vld [vmem:[#allocation16 + $0x1a0] sm:$0xf]  ;;  %v7950_v48 = vld [vmem:[#allocation16 + $0x1a4] sm:$0xf0] }
 0x2c2   :  { %v8024_v47 = vld [vmem:[#allocation16 + $0x3f4] sm:$0xf0] }
 0x2c3   :  { %2472 = vmatpush.bf16.msrb.mxu3 %v6106_v57  ;;  %2459 = vmatpush.bf16.msrb.mxu2 %v6042_v59  ;;  %v5994_v57 = vor.u32 %v7898_v53, %v5993_v52  ;;  %v6361_v59 = vld [vmem:[#allocation16 + $0x2e0] sm:$0xf]  ;;  %v6321_v52 = vld [vmem:[#allocation16 + $0x290] sm:$0xf]  ;;  %v7980_v53 = vld [vmem:[#allocation16 + $0x294] sm:$0xf0]  ;;  %v6498_v54 = vor.u32 %v8024_v47, %v6497_v44 }
 0x2c4   :  { %v6362_v0 = vor.u32 %v7990_v61, %v6361_v59  ;;  %v6322_v59 = vor.u32 %v7980_v53, %v6321_v52  ;;  %v8020_v10 = vld [vmem:[#allocation16 + $0x3d4] sm:$0xf0] }
 0x2c5   :  { %2498 = vmatpush.bf16.msra.mxu1 %v6234_v5  ;;  %2485 = vmatpush.bf16.msra.mxu0 %v6170_v33  ;;  %v6289_v5 = vld [vmem:[#allocation16 + $0x250] sm:$0xf]  ;;  %v7970_v33 = vld [vmem:[#allocation16 + $0x244] sm:$0xf0] }
 0x2c6   :  { %v6290_v9 = vor.u32 %v7972_v6, %v6289_v5  ;;  %v6282_v20 = vor.u32 %v7970_v33, %v6281_v14  ;;  %v7962_v5 = vld [vmem:[#allocation16 + $0x204] sm:$0xf0]  ;;  %v6433_v6 = vld [vmem:[#allocation16 + $0x370] sm:$0xf]  ;;  %v6425_v14 = vld [vmem:[#allocation16 + $0x360] sm:$0xf] }
 0x2c7   :  { %2473 = vmatpush.bf16.msrb.mxu3 %v6098_v7  ;;  %2460 = vmatpush.bf16.msrb.mxu2 %v6034_v8  ;;  %v6354_v7 = vor.u32 %v7988_v4, %v6353_v1  ;;  %v6345_v8 = vld [vmem:[#allocation16 + $0x2c0] sm:$0xf]  ;;  %v7978_v1 = vld [vmem:[#allocation16 + $0x284] sm:$0xf0] }
 0x2c8   :  { %v6249_v4 = vld [vmem:[#allocation16 + $0x200] sm:$0xf]  ;;  %v8006_v33 = vld [vmem:[#allocation16 + $0x364] sm:$0xf0] }
 0x2c9   :  { %2499 = vmatpush.bf16.msra.mxu1 %v6226_v17  ;;  %2486 = vmatpush.bf16.msra.mxu0 %v6162_v24  ;;  %v6202_v17 = vor.u32 %v7950_v48, %v6201_v16  ;;  %v7968_v24 = vld [vmem:[#allocation16 + $0x234] sm:$0xf0]  ;;  %v6426_v16 = vor.u32 %v8006_v33, %v6425_v14  ;;  %v6473_v48 = vld [vmem:[#allocation16 + $0x3c0] sm:$0xf]  ;;  %v6043_v14 = vld [vmem:[#allocation16 + $0x68] sm:$0xf0] }
 0x2ca   :  { %v6274_v32 = vor.u32 %v7968_v24, %v6273_v43 }
 0x2cb   :  { %2474 = vmatpush.bf16.msrb.mxu3 %v6090_v18  ;;  %2461 = vmatpush.bf16.msrb.mxu2 %v6026_v19  ;;  %v6346_v18 = vor.u32 %v7986_v12, %v6345_v8  ;;  %v6337_v19 = vld [vmem:[#allocation16 + $0x2b0] sm:$0xf]  ;;  %v6250_v12 = vor.u32 %v7962_v5, %v6249_v4 }
 0x2cd   :  { %2500 = vmatpush.bf16.msra.mxu1 %v6218_v25  ;;  %2487 = vmatpush.bf16.msra.mxu0 %v6154_v13  ;;  %v6193_v25 = vld [vmem:[#allocation16 + $0x190] sm:$0xf] }
 0x2cf   :  { %2475 = vmatpush.bf16.msrb.mxu3 %v6082_v26  ;;  %2462 = vmatpush.bf16.msrb.mxu2 %v6018_v30  ;;  %v7948_v26 = vld [vmem:[#allocation16 + $0x194] sm:$0xf0]  ;;  %v6338_v30 = vor.u32 %v7984_v22, %v6337_v19  ;;  %v8934_v19 = vld [vmem:[#allocation14] sm:$0xff] }
 0x2d0   :  { %v6194_v27 = vor.u32 %v7948_v26, %v6193_v25  ;;  %v6465_v22 = vld [vmem:[#allocation16 + $0x3b0] sm:$0xf]  ;;  %v805_v43 = vperm.slane %v8934_v19, 1  ;;  %v6409_v25 = vld [vmem:[#allocation16 + $0x340] sm:$0xf] }
 0x2d1   :  { %2501 = vmatpush.bf16.msra.mxu1 %v6210_v36  ;;  %2488 = vmatpush.bf16.msra.mxu0 %v6146_v23  ;;  %v6138_v36 = vor.u32 %v7934_v34, %v6137_v15  ;;  %v8016_v23 = vld [vmem:[#allocation16 + $0x3b4] sm:$0xf0]  ;;  %v8002_v26 = vld [vmem:[#allocation16 + $0x344] sm:$0xf0] }
 0x2d2   :  { %v6466_v24 = vor.u32 %v8016_v23, %v6465_v22  ;;  %v8014_v15 = vld [vmem:[#allocation16 + $0x3a4] sm:$0xf0]  ;;  %v7921_v22 = vld [vmem:[#allocation16 + $0xc4] sm:$0xf]  ;;  %v6091_v23 = vld [vmem:[#allocation16 + $0xc8] sm:$0xf0] }
 0x2d3   :  { %2476 = vmatpush.bf16.msrb.mxu3 %v6074_v37  ;;  %2463 = vmatpush.bf16.msrb.mxu2 %v6010_v39  ;;  %v6265_v37 = vld [vmem:[#allocation16 + $0x220] sm:$0xf] }
 0x2d4   :  { %v6185_v39 = vld [vmem:[#allocation16 + $0x180] sm:$0xf]  ;;  %v6266_v46 = vor.u32 %v7966_v38, %v6265_v37  ;;  %v6401_v37 = vld [vmem:[#allocation16 + $0x330] sm:$0xf]  ;;  %v8000_v38 = vld [vmem:[#allocation16 + $0x334] sm:$0xf0] }
 0x2d5   :  { %2502 = vmatpush.bf16.msra.mxu1 %v6202_v17  ;;  %2489 = vmatpush.bf16.msra.mxu0 %v6138_v36  ;;  %v6186_v41 = vor.u32 %v7946_v40, %v6185_v39  ;;  %v8018_v17 = vld [vmem:[#allocation16 + $0x3c4] sm:$0xf0]  ;;  %v804_v36 = vperm.slane %v8934_v19, 0  ;;  %v7927_v40 = vld [vmem:[#allocation16 + $0xf4] sm:$0xf]  ;;  %v6402_v44 = vor.u32 %v8000_v38, %v6401_v37 }
 0x2d6   :  { %v7959_v37 = vld [vmem:[#allocation16 + $0x1f4] sm:$0xf]  ;;  %v6243_v38 = vld [vmem:[#allocation16 + $0x1f8] sm:$0xf0] }
 0x2d7   :  { %2477 = vmatpush.bf16.msrb.mxu3 %v6066_v45  ;;  %2464 = vmatpush.bf16.msrb.mxu2 %v6002_v49  ;;  %v6330_v45 = vor.u32 %v7982_v35, %v6329_v31  ;;  %v6129_v49 = vld [vmem:[#allocation16 + $0x110] sm:$0xf] }
 0x2d8   :  { %v6130_v50 = vor.u32 %v7932_v51, %v6129_v49 }
 0x2d9   :  { %2503 = vmatpush.bf16.msra.mxu1 %v6194_v27  ;;  %v6410_v27 = vor.u32 %v8002_v26, %v6409_v25  ;;  %v7907_v26 = vld [vmem:[#allocation16 + $0x54] sm:$0xf] }
 0x2da   :  { %2490 = vmatpush.bf16.msra.mxu0 %v6130_v50  ;;  %v6393_v50 = vld [vmem:[#allocation16 + $0x320] sm:$0xf] }
 0x2db   :  { %2478 = vmatpush.bf16.msrb.mxu3 %v6058_v56  ;;  %2465 = vmatpush.bf16.msrb.mxu2 %v5994_v57  ;;  %v7964_v56 = vld [vmem:[#allocation16 + $0x214] sm:$0xf0]  ;;  %v6489_v57 = vld [vmem:[#allocation16 + $0x3e0] sm:$0xf] }
 0x2dc   :  { %v6258_v61 = vor.u32 %v7964_v56, %v6257_v55  ;;  %v7998_v55 = vld [vmem:[#allocation16 + $0x324] sm:$0xf0] }
 0x2dd   :  { %2504 = vmatpush.bf16.msra.mxu1 %v6186_v41  ;;  %v6115_v41 = vld [vmem:[#allocation16 + $0xf8] sm:$0xf0] }
 0x2df   :  { %2523 = vmatpush.bf16.msra.mxu3 %v6370_v58  ;;  %2510 = vmatpush.bf16.msra.mxu2 %v6306_v60  ;;  %v8022_v58 = vld [vmem:[#allocation16 + $0x3e4] sm:$0xf0]  ;;  %v6313_v60 = vld [vmem:[#allocation16 + $0x280] sm:$0xf] }
 0x2e0   :  { %v6490_v62 = vor.u32 %v8022_v58, %v6489_v57  ;;  %v6314_v11 = vor.u32 %v7978_v1, %v6313_v60  ;;  %v7925_v57 = vld [vmem:[#allocation16 + $0xe4] sm:$0xf]  ;;  %v6107_v58 = vld [vmem:[#allocation16 + $0xe8] sm:$0xf0]  ;;  %v6394_v60 = vor.u32 %v7998_v55, %v6393_v50  ;;  %v6441_v1 = vld [vmem:[#allocation16 + $0x380] sm:$0xf] }
 0x2e1   :  { %2549 = vmatpush.bf16.msrb.mxu1 %v6498_v54  ;;  %v6118_v54 = vor.u32 %v7927_v40, %v6115_v41  ;;  %v6027_v40 = vld [vmem:[#allocation16 + $0x48] sm:$0xf0]  ;;  %v7903_v50 = vld [vmem:[#allocation16 + $0x34] sm:$0xf] }
 0x2e3   :  { %2524 = vmatpush.bf16.msra.mxu3 %v6362_v0  ;;  %2511 = vmatpush.bf16.msra.mxu2 %v6298_v3  ;;  %v7930_v0 = vld [vmem:[#allocation16 + $0x104] sm:$0xf0] }
 0x2e4   :  { %v6122_v3 = vor.u32 %v7930_v0, %v6121_v63  ;;  %v6051_v0 = vld [vmem:[#allocation16 + $0x78] sm:$0xf0] }
 0x2e5   :  { %2550 = vmatpush.bf16.msrb.mxu1 %v6490_v62 }
 0x2e6   :  { %2491 = vmatpush.bf16.msra.mxu0 %v6122_v3  ;;  %v8010_v3 = vld [vmem:[#allocation16 + $0x384] sm:$0xf0] }
 0x2e7   :  { %2525 = vmatpush.bf16.msra.mxu3 %v6354_v7  ;;  %2512 = vmatpush.bf16.msra.mxu2 %v6290_v9  ;;  %v8008_v7 = vld [vmem:[#allocation16 + $0x374] sm:$0xf0]  ;;  %v6481_v9 = vld [vmem:[#allocation16 + $0x3d0] sm:$0xf]  ;;  %v6442_v4 = vor.u32 %v8010_v3, %v6441_v1 }
 0x2e8   :  { %v6434_v8 = vor.u32 %v8008_v7, %v6433_v6  ;;  %v6482_v13 = vor.u32 %v8020_v10, %v6481_v9  ;;  %v6110_v6 = vor.u32 %v7925_v57, %v6107_v58  ;;  %v6385_v7 = vld [vmem:[#allocation16 + $0x310] sm:$0xf]  ;;  %v7923_v9 = vld [vmem:[#allocation16 + $0xd4] sm:$0xf]  ;;  %v6099_v10 = vld [vmem:[#allocation16 + $0xd8] sm:$0xf0] }
 0x2ea   :  { %2536 = vmatpush.bf16.msrb.mxu0 %v6434_v8  ;;  %2551 = vmatpush.bf16.msrb.mxu1 %v6482_v13  ;;  %v7909_v13 = vld [vmem:[#allocation16 + $0x64] sm:$0xf] }
 0x2eb   :  { %2526 = vmatpush.bf16.msra.mxu3 %v6346_v18  ;;  %2513 = vmatpush.bf16.msra.mxu2 %v6282_v20  ;;  %v6474_v18 = vor.u32 %v8018_v17, %v6473_v48  ;;  %v6417_v20 = vld [vmem:[#allocation16 + $0x350] sm:$0xf]  ;;  %v807_v17 = vperm.slane %v8934_v19, 3 }
 0x2ec   :  { %v6418_v42 = vor.u32 %v8004_v21, %v6417_v20  ;;  %v6377_v20 = vld [vmem:[#allocation16 + $0x300] sm:$0xf]  ;;  %v7994_v21 = vld [vmem:[#allocation16 + $0x304] sm:$0xf0] }
 0x2ee   :  { %2537 = vmatpush.bf16.msrb.mxu0 %v6426_v16  ;;  %2552 = vmatpush.bf16.msrb.mxu1 %v6474_v18  ;;  %v6102_v18 = vor.u32 %v7923_v9, %v6099_v10  ;;  %v6011_v9 = vld [vmem:[#allocation16 + $0x28] sm:$0xf0] }
 0x2ef   :  { %2527 = vmatpush.bf16.msra.mxu3 %v6338_v30  ;;  %2514 = vmatpush.bf16.msra.mxu2 %v6274_v32  ;;  %v6457_v32 = vld [vmem:[#allocation16 + $0x3a0] sm:$0xf] }
 0x2f0   :  { %v6458_v35 = vor.u32 %v8014_v15, %v6457_v32  ;;  %v6094_v32 = vor.u32 %v7921_v22, %v6091_v23  ;;  %v7919_v15 = vld [vmem:[#allocation16 + $0xb4] sm:$0xf] }
 0x2f1   :  { %v7899_v22 = vld [vmem:[#allocation16 + $0x14] sm:$0xf] }
 0x2f2   :  { %2538 = vmatpush.bf16.msrb.mxu0 %v6418_v42  ;;  %2553 = vmatpush.bf16.msrb.mxu1 %v6466_v24  ;;  %v6046_v42 = vor.u32 %v7909_v13, %v6043_v14  ;;  %v6227_v13 = vld [vmem:[#allocation16 + $0x1d8] sm:$0xf0] }
 0x2f3   :  { %2528 = vmatpush.bf16.msra.mxu3 %v6330_v45  ;;  %2515 = vmatpush.bf16.msra.mxu2 %v6266_v46  ;;  %v6449_v45 = vld [vmem:[#allocation16 + $0x390] sm:$0xf]  ;;  %v8012_v46 = vld [vmem:[#allocation16 + $0x394] sm:$0xf0] }
 0x2f4   :  { %v6450_v52 = vor.u32 %v8012_v46, %v6449_v45 }
 0x2f6   :  { %2539 = vmatpush.bf16.msrb.mxu0 %v6410_v27  ;;  %2554 = vmatpush.bf16.msrb.mxu1 %v6458_v35  ;;  %v6035_v27 = vld [vmem:[#allocation16 + $0x58] sm:$0xf0] }
 0x2f7   :  { %2529 = vmatpush.bf16.msra.mxu3 %v6322_v59  ;;  %2516 = vmatpush.bf16.msra.mxu2 %v6258_v61  ;;  %v7911_v59 = vld [vmem:[#allocation16 + $0x74] sm:$0xf]  ;;  %v6038_v35 = vor.u32 %v7907_v26, %v6035_v27  ;;  %v6219_v26 = vld [vmem:[#allocation16 + $0x1c8] sm:$0xf0] }
 0x2f8   :  { %v6054_v8 = vor.u32 %v7911_v59, %v6051_v0  ;;  %v6019_v59 = vld [vmem:[#allocation16 + $0x38] sm:$0xf0]  ;;  %v7939_v27 = vld [vmem:[#allocation16 + $0x154] sm:$0xf] }
 0x2f9   :  { %v6022_v3 = vor.u32 %v7903_v50, %v6019_v59 }
 0x2fa   :  { %2540 = vmatpush.bf16.msrb.mxu0 %v6402_v44  ;;  %2555 = vmatpush.bf16.msrb.mxu1 %v6450_v52 }
 0x2fb   :  { %2530 = vmatpush.bf16.msra.mxu3 %v6314_v11  ;;  %2517 = vmatpush.bf16.msra.mxu2 %v6250_v12  ;;  %v1495_v30 = vpop.f32.mrf.mxu0  ;;  %v1508_v31 = vpop.f32.mrf.mxu1  ;;  %v7996_v11 = vld [vmem:[#allocation16 + $0x314] sm:$0xf0] }
 0x2fc   :  { %v1496_v34 = vadd.f32 %v1495_v30, %v805_v43  ;;  %v6386_v33 = vor.u32 %v7996_v11, %v6385_v7  ;;  %v6378_v43 = vor.u32 %v7994_v21, %v6377_v20  ;;  %v7955_v11 = vld [vmem:[#allocation16 + $0x1d4] sm:$0xf]  ;;  %v7913_v21 = vld [vmem:[#allocation16 + $0x84] sm:$0xf] }
 0x2fd   :  { %v6230_v23 = vor.u32 %v7955_v11, %v6227_v13 }
 0x2fe   :  { %v1509_v39 = vadd.f32 %v1508_v31, %v1496_v34  ;;  %2541 = vmatpush.bf16.msrb.mxu0 %v6394_v60  ;;  %2556 = vmatpush.bf16.msrb.mxu1 %v6442_v4  ;;  %v806_v31 = vperm.slane %v8934_v19, 2  ;;  %v7957_v60 = vld [vmem:[#allocation16 + $0x1e4] sm:$0xf]  ;;  %v7915_v4 = vld [vmem:[#allocation16 + $0x94] sm:$0xf] }
 0x300   :  { %v1669_v47 = vmax.f32 %v1509_v39, 0.0  ;;  %v1469_v49 = vpop.f32.mrf.mxu2  ;;  %v1482_v51 = vpop.f32.mrf.mxu3  ;;  %v7905_v39 = vld [vmem:[#allocation16 + $0x44] sm:$0xf] }
 0x301   :  { %v1470_v53 = vadd.f32 %v1469_v49, %v804_v36  ;;  %v6083_v36 = vld [vmem:[#allocation16 + $0xb8] sm:$0xf0]  ;;  %v6246_v49 = vor.u32 %v7959_v37, %v6243_v38  ;;  %v6030_v52 = vor.u32 %v7905_v39, %v6027_v40  ;;  %v7991_v38 = vld [vmem:[#allocation16 + $0x2f4] sm:$0xf]  ;;  %v7897_v39 = vld [vmem:[#allocation16 + $0x4] sm:$0xf] }
 0x302   :  { %v8938_v56 = vpack.c.bf16 %v1669_v47, %v1669_v47  ;;  %2542 = vmatpush.bf16.msrb.mxu0 %v6386_v33  ;;  %v6086_v47 = vor.u32 %v7919_v15, %v6083_v36  ;;  %v5995_v40 = vld [vmem:[#allocation16 + $0x8] sm:$0xf0] }
 0x303   :  { %v1483_v61 = vadd.f32 %v1482_v51, %v1470_v53  ;;  %v1497_v62 = vpop.f32.mrf.mxu0  ;;  %v1510_v63 = vpop.f32.mrf.mxu1  ;;  %v7917_v53 = vld [vmem:[#allocation16 + $0xa4] sm:$0xf] }
 0x304   :  { %2479 = vmatmul.bf16.vlgmr.msrb.gmra.mxu3 %v8938_v56  ;;  %v7943_v62 = vld [vmem:[#allocation16 + $0x174] sm:$0xf]  ;;  %v6179_v63 = vld [vmem:[#allocation16 + $0x178] sm:$0xf0] }
 0x305   :  { %v1668_v5 = vmax.f32 %v1483_v61, 0.0  ;;  %2575 = vmatpush.bf16.msrb.mxu3 %v6118_v54  ;;  %v6075_v54 = vld [vmem:[#allocation16 + $0xa8] sm:$0xf0]  ;;  %v6182_v10 = vor.u32 %v7943_v62, %v6179_v63  ;;  %v7975_v63 = vld [vmem:[#allocation16 + $0x274] sm:$0xf] }
 0x306   :  { %2543 = vmatpush.bf16.msrb.mxu0 %v6378_v43  ;;  %v6235_v61 = vld [vmem:[#allocation16 + $0x1e8] sm:$0xf0]  ;;  %v6078_v1 = vor.u32 %v7917_v53, %v6075_v54  ;;  %v6003_v43 = vld [vmem:[#allocation16 + $0x18] sm:$0xf0] }
 0x307   :  { %v8941_v12 = vpack.c.bf16 %v1668_v5, %v1668_v5  ;;  %v6067_v5 = vld [vmem:[#allocation16 + $0x98] sm:$0xf0]  ;;  %v6238_v7 = vor.u32 %v7957_v60, %v6235_v61  ;;  %v6006_v36 = vor.u32 %v7899_v22, %v6003_v43  ;;  %v7989_v61 = vld [vmem:[#allocation16 + $0x2e4] sm:$0xf]  ;;  %v6363_v62 = vld [vmem:[#allocation16 + $0x2e8] sm:$0xf0] }
 0x308   :  { %v1471_v16 = vpop.f32.mrf.mxu2  ;;  %v1484_v48 = vpop.f32.mrf.mxu3  ;;  %v6366_v13 = vor.u32 %v7989_v61, %v6363_v62  ;;  %v6195_v22 = vld [vmem:[#allocation16 + $0x198] sm:$0xf0] }
 0x309   :  { %2466 = vmatmul.bf16.vlgmr.msrb.gmra.mxu2 %v8941_v12  ;;  %2576 = vmatpush.bf16.msrb.mxu3 %v6110_v6  ;;  %v7901_v6 = vld [vmem:[#allocation16 + $0x24] sm:$0xf]  ;;  %v6171_v48 = vld [vmem:[#allocation16 + $0x168] sm:$0xf0]  ;;  %v6275_v61 = vld [vmem:[#allocation16 + $0x238] sm:$0xf0] }
 0x30a   :  { %2562 = vmatpush.bf16.msrb.mxu2 %v6054_v8  ;;  %v7941_v16 = vld [vmem:[#allocation16 + $0x164] sm:$0xf]  ;;  %v6014_v20 = vor.u32 %v7901_v6, %v6011_v9  ;;  %v7935_v9 = vld [vmem:[#allocation16 + $0x134] sm:$0xf] }
 0x30b   :  { %v1547_v24 = vpop.f32.mrf.mxu0  ;;  %v1560_v25 = vpop.f32.mrf.mxu1  ;;  %v7949_v6 = vld [vmem:[#allocation16 + $0x1a4] sm:$0xf] }
 0x30c   :  { %v1548_v30 = vadd.f32 %v1547_v24, %v807_v17  ;;  %v809_v17 = vperm.slane %v8934_v19, 5  ;;  %v6174_v24 = vor.u32 %v7941_v16, %v6171_v48  ;;  %v6355_v16 = vld [vmem:[#allocation16 + $0x2d8] sm:$0xf0]  ;;  %v7973_v48 = vld [vmem:[#allocation16 + $0x264] sm:$0xf] }
 0x30d   :  { %2577 = vmatpush.bf16.msrb.mxu3 %v6102_v18  ;;  %v6070_v18 = vor.u32 %v7915_v4, %v6067_v5  ;;  %v6307_v5 = vld [vmem:[#allocation16 + $0x278] sm:$0xf0] }
 0x30e   :  { %v1561_v34 = vadd.f32 %v1560_v25, %v1548_v30  ;;  %2563 = vmatpush.bf16.msrb.mxu2 %v6046_v42  ;;  %v6059_v42 = vld [vmem:[#allocation16 + $0x88] sm:$0xf0]  ;;  %v7953_v25 = vld [vmem:[#allocation16 + $0x1c4] sm:$0xf]  ;;  %v6163_v30 = vld [vmem:[#allocation16 + $0x158] sm:$0xf0] }
 0x30f   :  { %v6062_v15 = vor.u32 %v7913_v21, %v6059_v42  ;;  %v6222_v37 = vor.u32 %v7953_v25, %v6219_v26  ;;  %v7947_v42 = vld [vmem:[#allocation16 + $0x194] sm:$0xf]  ;;  %v6139_v25 = vld [vmem:[#allocation16 + $0x128] sm:$0xf0] }
 0x310   :  { %v1671_v41 = vmax.f32 %v1561_v34, 0.0  ;;  %v1521_v44 = vpop.f32.mrf.mxu2  ;;  %v1534_v45 = vpop.f32.mrf.mxu3 }
 0x311   :  { %v1522_v46 = vadd.f32 %v1521_v44, %v806_v31  ;;  %2578 = vmatpush.bf16.msrb.mxu3 %v6094_v32 }
 0x312   :  { %v8946_v51 = vpack.c.bf16 %v1671_v41, %v1671_v41  ;;  %2564 = vmatpush.bf16.msrb.mxu2 %v6038_v35  ;;  %v808_v35 = vperm.slane %v8934_v19, 4  ;;  %v6166_v41 = vor.u32 %v7939_v27, %v6163_v30  ;;  %v7985_v30 = vld [vmem:[#allocation16 + $0x2c4] sm:$0xf] }
 0x313   :  { %v1535_v55 = vadd.f32 %v1534_v45, %v1522_v46  ;;  %v1549_v57 = vpop.f32.mrf.mxu0  ;;  %v1562_v58 = vpop.f32.mrf.mxu1  ;;  %v6371_v45 = vld [vmem:[#allocation16 + $0x2f8] sm:$0xf0]  ;;  %v7951_v46 = vld [vmem:[#allocation16 + $0x1b4] sm:$0xf] }
 0x314   :  { %2505 = vmatmul.bf16.vlgmr.msra.gmra.mxu1 %v8946_v51  ;;  %v6374_v58 = vor.u32 %v7991_v38, %v6371_v45  ;;  %v7931_v38 = vld [vmem:[#allocation16 + $0x114] sm:$0xf]  ;;  %v6339_v45 = vld [vmem:[#allocation16 + $0x2b8] sm:$0xf0] }
 0x315   :  { %v1670_v0 = vmax.f32 %v1535_v55, 0.0  ;;  %2579 = vmatpush.bf16.msrb.mxu3 %v6086_v47  ;;  %2601 = vmatpush.bf16.msra.mxu1 %v6246_v49  ;;  %v6211_v47 = vld [vmem:[#allocation16 + $0x1b8] sm:$0xf0]  ;;  %v7937_v49 = vld [vmem:[#allocation16 + $0x144] sm:$0xf]  ;;  %v5998_v55 = vor.u32 %v7897_v39, %v5995_v40 }
 0x316   :  { %2565 = vmatpush.bf16.msrb.mxu2 %v6030_v52  ;;  %v6155_v52 = vld [vmem:[#allocation16 + $0x148] sm:$0xf0]  ;;  %v6214_v59 = vor.u32 %v7951_v46, %v6211_v47  ;;  %v6131_v39 = vld [vmem:[#allocation16 + $0x118] sm:$0xf0]  ;;  %v7969_v47 = vld [vmem:[#allocation16 + $0x244] sm:$0xf] }
 0x317   :  { %v8949_v8 = vpack.c.bf16 %v1670_v0, %v1670_v0  ;;  %v6158_v0 = vor.u32 %v7937_v49, %v6155_v52  ;;  %v6283_v49 = vld [vmem:[#allocation16 + $0x248] sm:$0xf0]  ;;  %v6134_v52 = vor.u32 %v7931_v38, %v6131_v39 }
 0x318   :  { %v1523_v14 = vpop.f32.mrf.mxu2  ;;  %v1536_v33 = vpop.f32.mrf.mxu3 }
 0x319   :  { %2492 = vmatmul.bf16.vlgmr.msra.gmra.mxu0 %v8949_v8  ;;  %2580 = vmatpush.bf16.msrb.mxu3 %v6078_v1  ;;  %v6310_v14 = vor.u32 %v7975_v63, %v6307_v5  ;;  %v7987_v33 = vld [vmem:[#allocation16 + $0x2d4] sm:$0xf]  ;;  %v811_v63 = vperm.slane %v8934_v19, 7  ;;  %v7965_v5 = vld [vmem:[#allocation16 + $0x224] sm:$0xf] }
 0x31a   :  { %2566 = vmatpush.bf16.msrb.mxu2 %v6022_v3  ;;  %2602 = vmatpush.bf16.msra.mxu1 %v6238_v7  ;;  %v6203_v7 = vld [vmem:[#allocation16 + $0x1a8] sm:$0xf0]  ;;  %v6358_v26 = vor.u32 %v7987_v33, %v6355_v16  ;;  %v8023_v16 = vld [vmem:[#allocation16 + $0x3f4] sm:$0xf] }
 0x31b   :  { %2588 = vmatpush.bf16.msra.mxu0 %v6182_v10  ;;  %v6147_v10 = vld [vmem:[#allocation16 + $0x138] sm:$0xf0]  ;;  %v6315_v33 = vld [vmem:[#allocation16 + $0x288] sm:$0xf0] }
 0x31c   :  { %v6150_v21 = vor.u32 %v7935_v9, %v6147_v10 }
 0x31d   :  { %2581 = vmatpush.bf16.msrb.mxu3 %v6070_v18 }
 0x31e   :  { %v1599_v31 = vpop.f32.mrf.mxu0  ;;  %v1612_v32 = vpop.f32.mrf.mxu1  ;;  %2567 = vmatpush.bf16.msrb.mxu2 %v6014_v20  ;;  %2603 = vmatpush.bf16.msra.mxu1 %v6230_v23  ;;  %v6299_v20 = vld [vmem:[#allocation16 + $0x268] sm:$0xf0] }
 0x31f   :  { %v1600_v34 = vadd.f32 %v1599_v31, %v809_v17  ;;  %2589 = vmatpush.bf16.msra.mxu0 %v6174_v24  ;;  %v6206_v17 = vor.u32 %v7949_v6, %v6203_v7  ;;  %v7933_v24 = vld [vmem:[#allocation16 + $0x124] sm:$0xf]  ;;  %v6302_v27 = vor.u32 %v7973_v48, %v6299_v20  ;;  %v6347_v31 = vld [vmem:[#allocation16 + $0x2c8] sm:$0xf0]  ;;  %v7963_v20 = vld [vmem:[#allocation16 + $0x214] sm:$0xf] }
 0x320   :  { %v6350_v40 = vor.u32 %v7985_v30, %v6347_v31  ;;  %v6267_v6 = vld [vmem:[#allocation16 + $0x228] sm:$0xf0]  ;;  %v7961_v30 = vld [vmem:[#allocation16 + $0x204] sm:$0xf] }
 0x321   :  { %v1613_v44 = vadd.f32 %v1612_v32, %v1600_v34  ;;  %2582 = vmatpush.bf16.msrb.mxu3 %v6062_v15  ;;  %v1573_v54 = vpop.f32.mrf.mxu2  ;;  %v1586_v50 = vpop.f32.mrf.mxu3  ;;  %v7971_v32 = vld [vmem:[#allocation16 + $0x254] sm:$0xf]  ;;  %v6198_v15 = vor.u32 %v7947_v42, %v6195_v22  ;;  %v6291_v34 = vld [vmem:[#allocation16 + $0x258] sm:$0xf0] }
 0x322   :  { %2568 = vmatpush.bf16.msrb.mxu2 %v6006_v36  ;;  %2604 = vmatpush.bf16.msra.mxu1 %v6222_v37  ;;  %v1574_v57 = vadd.f32 %v1573_v54, %v808_v35  ;;  %v6142_v35 = vor.u32 %v7933_v24, %v6139_v25  ;;  %v7945_v36 = vld [vmem:[#allocation16 + $0x184] sm:$0xf]  ;;  %v6187_v37 = vld [vmem:[#allocation16 + $0x188] sm:$0xf0] }
 0x323   :  { %v1673_v53 = vmax.f32 %v1613_v44, 0.0  ;;  %2590 = vmatpush.bf16.msra.mxu0 %v6166_v41  ;;  %v6294_v41 = vor.u32 %v7971_v32, %v6291_v34  ;;  %v7983_v44 = vld [vmem:[#allocation16 + $0x2b4] sm:$0xf]  ;;  %v6190_v46 = vor.u32 %v7945_v36, %v6187_v37  ;;  %v6123_v54 = vld [vmem:[#allocation16 + $0x108] sm:$0xf0] }
 0x324   :  { %v1587_v1 = vadd.f32 %v1586_v50, %v1574_v57  ;;  %v6342_v50 = vor.u32 %v7983_v44, %v6339_v45  ;;  %v7981_v57 = vld [vmem:[#allocation16 + $0x2a4] sm:$0xf]  ;;  %v6251_v34 = vld [vmem:[#allocation16 + $0x208] sm:$0xf0]  ;;  %v6435_v36 = vld [vmem:[#allocation16 + $0x378] sm:$0xf0] }
 0x325   :  { %v8954_v60 = vpack.c.bf16 %v1673_v53, %v1673_v53  ;;  %v7929_v53 = vld [vmem:[#allocation16 + $0x104] sm:$0xf]  ;;  %v6254_v39 = vor.u32 %v7961_v30, %v6251_v34  ;;  %v6483_v44 = vld [vmem:[#allocation16 + $0x3d8] sm:$0xf0] }
 0x326   :  { %v1601_v3 = vpop.f32.mrf.mxu0  ;;  %v1614_v4 = vpop.f32.mrf.mxu1  ;;  %2569 = vmatpush.bf16.msrb.mxu2 %v5998_v55  ;;  %v1672_v11 = vmax.f32 %v1587_v1, 0.0  ;;  %2605 = vmatpush.bf16.msra.mxu1 %v6214_v59  ;;  %v6286_v55 = vor.u32 %v7969_v47, %v6283_v49  ;;  %v7967_v59 = vld [vmem:[#allocation16 + $0x234] sm:$0xf]  ;;  %v6126_v62 = vor.u32 %v7929_v53, %v6123_v54  ;;  %v6427_v47 = vld [vmem:[#allocation16 + $0x368] sm:$0xf0] }
 0x327   :  { %2531 = vmatmul.bf16.vlgmr.msra.gmra.mxu3 %v8954_v60  ;;  %2591 = vmatpush.bf16.msra.mxu0 %v6158_v0  ;;  %v6278_v1 = vor.u32 %v7967_v59, %v6275_v61  ;;  %v7979_v3 = vld [vmem:[#allocation16 + $0x294] sm:$0xf]  ;;  %v6323_v4 = vld [vmem:[#allocation16 + $0x298] sm:$0xf0] }
 0x328   :  { %2627 = vmatpush.bf16.msra.mxu3 %v6374_v58  ;;  %v8957_v18 = vpack.c.bf16 %v1672_v11, %v1672_v11  ;;  %v6331_v58 = vld [vmem:[#allocation16 + $0x2a8] sm:$0xf0]  ;;  %v810_v11 = vperm.slane %v8934_v19, 6  ;;  %v8015_v61 = vld [vmem:[#allocation16 + $0x3b4] sm:$0xf] }
 0x329   :  { %v1575_v23 = vpop.f32.mrf.mxu2  ;;  %v1588_v43 = vpop.f32.mrf.mxu3  ;;  %v6334_v0 = vor.u32 %v7981_v57, %v6331_v58  ;;  %v8003_v57 = vld [vmem:[#allocation16 + $0x354] sm:$0xf]  ;;  %v6419_v58 = vld [vmem:[#allocation16 + $0x358] sm:$0xf0] }
 0x32a   :  { %2518 = vmatmul.bf16.vlgmr.msra.gmra.mxu2 %v8957_v18  ;;  %2606 = vmatpush.bf16.msra.mxu1 %v6206_v17  ;;  %v6499_v17 = vld [vmem:[#allocation16 + $0x3f8] sm:$0xf0] }
 0x32b   :  { %2614 = vmatpush.bf16.msra.mxu2 %v6310_v14  ;;  %2592 = vmatpush.bf16.msra.mxu0 %v6150_v21  ;;  %v7977_v14 = vld [vmem:[#allocation16 + $0x284] sm:$0xf]  ;;  %v6259_v21 = vld [vmem:[#allocation16 + $0x218] sm:$0xf0] }
 0x32c   :  { %2628 = vmatpush.bf16.msra.mxu3 %v6366_v13  ;;  %v6270_v13 = vor.u32 %v7965_v5, %v6267_v6  ;;  %v6318_v43 = vor.u32 %v7977_v14, %v6315_v33  ;;  %v6262_v25 = vor.u32 %v7963_v20, %v6259_v21  ;;  %v6459_v5 = vld [vmem:[#allocation16 + $0x3a8] sm:$0xf0]  ;;  %v7999_v6 = vld [vmem:[#allocation16 + $0x334] sm:$0xf]  ;;  %v6387_v20 = vld [vmem:[#allocation16 + $0x318] sm:$0xf0] }
 0x32e   :  { %2607 = vmatpush.bf16.msra.mxu1 %v6198_v15 }
 0x32f   :  { %2615 = vmatpush.bf16.msra.mxu2 %v6302_v27  ;;  %2593 = vmatpush.bf16.msra.mxu0 %v6142_v35  ;;  %v6491_v27 = vld [vmem:[#allocation16 + $0x3e8] sm:$0xf0]  ;;  %v8007_v35 = vld [vmem:[#allocation16 + $0x374] sm:$0xf] }
 0x330   :  { %2629 = vmatpush.bf16.msra.mxu3 %v6358_v26  ;;  %v8021_v26 = vld [vmem:[#allocation16 + $0x3e4] sm:$0xf] }
 0x331   :  { %v6494_v38 = vor.u32 %v8021_v26, %v6491_v27 }
 0x332   :  { %2608 = vmatpush.bf16.msra.mxu1 %v6190_v46  ;;  %v8005_v46 = vld [vmem:[#allocation16 + $0x364] sm:$0xf] }
 0x333   :  { %2616 = vmatpush.bf16.msra.mxu2 %v6294_v41  ;;  %2594 = vmatpush.bf16.msra.mxu0 %v6134_v52  ;;  %v8019_v41 = vld [vmem:[#allocation16 + $0x3d4] sm:$0xf]  ;;  %v6430_v54 = vor.u32 %v8005_v46, %v6427_v47 }
 0x334   :  { %2630 = vmatpush.bf16.msra.mxu3 %v6350_v40  ;;  %v6438_v40 = vor.u32 %v8007_v35, %v6435_v36  ;;  %v6486_v53 = vor.u32 %v8019_v41, %v6483_v44 }
 0x337   :  { %2583 = vmatmul.bf16.vlgmr.msrb.gmra.mxu3 %v8938_v56  ;;  %2617 = vmatpush.bf16.msra.mxu2 %v6286_v55  ;;  %v6326_v56 = vor.u32 %v7979_v3, %v6323_v4  ;;  %v6475_v55 = vld [vmem:[#allocation16 + $0x3c8] sm:$0xf0]  ;;  %v8013_v4 = vld [vmem:[#allocation16 + $0x3a4] sm:$0xf] }
 0x338   :  { %2631 = vmatpush.bf16.msra.mxu3 %v6342_v50  ;;  %2595 = vmatpush.bf16.msra.mxu0 %v6126_v62  ;;  %v8017_v50 = vld [vmem:[#allocation16 + $0x3c4] sm:$0xf]  ;;  %v6467_v62 = vld [vmem:[#allocation16 + $0x3b8] sm:$0xf0] }
 0x339   :  { %v6478_v59 = vor.u32 %v8017_v50, %v6475_v55 }
 0x33a   :  { %2570 = vmatmul.bf16.vlgmr.msrb.gmra.mxu2 %v8941_v12  ;;  %v6502_v12 = vor.u32 %v8023_v16, %v6499_v17  ;;  %v8009_v16 = vld [vmem:[#allocation16 + $0x384] sm:$0xf]  ;;  %v7995_v17 = vld [vmem:[#allocation16 + $0x314] sm:$0xf] }
 0x33b   :  { %2618 = vmatpush.bf16.msra.mxu2 %v6278_v1  ;;  %v6470_v1 = vor.u32 %v8015_v61, %v6467_v62  ;;  %v6390_v21 = vor.u32 %v7995_v17, %v6387_v20  ;;  %v6561_v17 = vld [vmem:[#allocation8 + $0x170] sm:$0xf]  ;;  %v8040_v20 = vld [vmem:[#allocation8 + $0x174] sm:$0xf0] }
 0x33c   :  { %2632 = vmatpush.bf16.msra.mxu3 %v6334_v0  ;;  %v6411_v0 = vld [vmem:[#allocation16 + $0x348] sm:$0xf0] }
 0x33d   :  { %v1651_v7 = vpop.f32.mrf.mxu0  ;;  %v1664_v9 = vpop.f32.mrf.mxu1 }
 0x33e   :  { %v1652_v10 = vadd.f32 %v1651_v7, %v811_v63  ;;  %v8001_v63 = vld [vmem:[#allocation16 + $0x344] sm:$0xf]  ;;  %v6403_v7 = vld [vmem:[#allocation16 + $0x338] sm:$0xf0] }
 0x33f   :  { %2619 = vmatpush.bf16.msra.mxu2 %v6270_v13  ;;  %v6414_v3 = vor.u32 %v8001_v63, %v6411_v0  ;;  %v6395_v13 = vld [vmem:[#allocation16 + $0x328] sm:$0xf0] }
 0x340   :  { %v1665_v48 = vadd.f32 %v1664_v9, %v1652_v10  ;;  %2633 = vmatpush.bf16.msra.mxu3 %v6326_v56  ;;  %v6462_v9 = vor.u32 %v8013_v4, %v6459_v5  ;;  %v8011_v10 = vld [vmem:[#allocation16 + $0x394] sm:$0xf]  ;;  %v7997_v56 = vld [vmem:[#allocation16 + $0x324] sm:$0xf] }
 0x341   :  { %v1625_v22 = vpop.f32.mrf.mxu2  ;;  %v1638_v23 = vpop.f32.mrf.mxu3  ;;  %v6398_v33 = vor.u32 %v7997_v56, %v6395_v13 }
 0x342   :  { %v1675_v42 = vmax.f32 %v1665_v48, 0.0  ;;  %v1626_v24 = vadd.f32 %v1625_v22, %v810_v11  ;;  %v6451_v11 = vld [vmem:[#allocation16 + $0x398] sm:$0xf0]  ;;  %v6443_v48 = vld [vmem:[#allocation16 + $0x388] sm:$0xf0] }
 0x343   :  { %2620 = vmatpush.bf16.msra.mxu2 %v6262_v25  ;;  %v6454_v14 = vor.u32 %v8011_v10, %v6451_v11  ;;  %v6379_v22 = vld [vmem:[#allocation16 + $0x308] sm:$0xf0] }
 0x344   :  { %v8964_v19 = vpack.c.bf16 %v1675_v42, %v1675_v42  ;;  %v1639_v31 = vadd.f32 %v1638_v23, %v1626_v24  ;;  %2634 = vmatpush.bf16.msra.mxu3 %v6318_v43  ;;  %v7993_v42 = vld [vmem:[#allocation16 + $0x304] sm:$0xf] }
 0x345   :  { %v1653_v32 = vpop.f32.mrf.mxu0  ;;  %v1666_v15 = vpop.f32.mrf.mxu1  ;;  %v6382_v23 = vor.u32 %v7993_v42, %v6379_v22  ;;  %v8056_v42 = vld [vmem:[#allocation8 + $0x1f4] sm:$0xf0]  ;;  %v8039_v22 = vld [vmem:[#allocation8 + $0x174] sm:$0xf] }
 0x346   :  { %2557 = vmatmul.bf16.vlgmr.msrb.gmra.mxu1 %v8964_v19  ;;  %v1674_v37 = vmax.f32 %v1639_v31, 0.0 }
 0x347   :  { %2653 = vmatpush.bf16.msrb.mxu1 %v6502_v12  ;;  %2635 = vmatmul.bf16.vlgmr.msra.gmra.mxu3 %v8954_v60  ;;  %v6422_v60 = vor.u32 %v8003_v57, %v6419_v58 }
 0x348   :  { %v1811_v45 = vpack.c.bf16 %v1674_v37, %v1674_v37  ;;  %2621 = vmatpush.bf16.msra.mxu2 %v6254_v39 }
 0x349   :  { %v1627_v49 = vpop.f32.mrf.mxu2  ;;  %v1640_v52 = vpop.f32.mrf.mxu3 }
 0x34a   :  { %2544 = vmatmul.bf16.vlgmr.msrb.gmra.mxu0 %v1811_v45 }
 0x34b   :  { %2654 = vmatpush.bf16.msrb.mxu1 %v6494_v38  ;;  %2640 = vmatpush.bf16.msrb.mxu0 %v6438_v40 }
 0x34c   :  { %2622 = vmatmul.bf16.vlgmr.msra.gmra.mxu2 %v8957_v18  ;;  %v6406_v18 = vor.u32 %v7999_v6, %v6403_v7 }
 0x34f   :  { %2655 = vmatpush.bf16.msrb.mxu1 %v6486_v53  ;;  %2641 = vmatpush.bf16.msrb.mxu0 %v6430_v54 }
 0x353   :  { %2656 = vmatpush.bf16.msrb.mxu1 %v6478_v59  ;;  %2642 = vmatpush.bf16.msrb.mxu0 %v6422_v60 }
 0x356   :  { %2609 = vmatmul.bf16.vlgmr.msra.gmra.mxu1 %v8946_v51  ;;  %v6446_v51 = vor.u32 %v8009_v16, %v6443_v48 }
 0x357   :  { %2657 = vmatpush.bf16.msrb.mxu1 %v6470_v1  ;;  %2643 = vmatpush.bf16.msrb.mxu0 %v6414_v3 }
 0x35a   :  { %2596 = vmatmul.bf16.vlgmr.msra.gmra.mxu0 %v8949_v8  ;;  %v1804_v8 = vld [vmem:[%s9107_s10] sm:$0x3] }
 0x35b   :  { %2658 = vmatpush.bf16.msrb.mxu1 %v6462_v9  ;;  %2644 = vmatpush.bf16.msrb.mxu0 %v6406_v18  ;;  %v1814_v24 = vperm.slane %v1804_v8, 0  ;;  %v1815_v54 = vperm.slane %v1804_v8, 1 }
 0x35f   :  { %2659 = vmatpush.bf16.msrb.mxu1 %v6454_v14  ;;  %2645 = vmatpush.bf16.msrb.mxu0 %v6398_v33 }
 0x363   :  { %2660 = vmatpush.bf16.msrb.mxu1 %v6446_v51  ;;  %2646 = vmatpush.bf16.msrb.mxu0 %v6390_v21  ;;  %v6625_v51 = vld [vmem:[#allocation8 + $0x1f0] sm:$0xf]  ;;  %v6562_v21 = vor.u32 %v8040_v20, %v6561_v17  ;;  %v8047_v20 = vld [vmem:[#allocation8 + $0x1b4] sm:$0xf] }
 0x364   :  { %v6626_v8 = vor.u32 %v8056_v42, %v6625_v51  ;;  %v6595_v51 = vld [vmem:[#allocation8 + $0x1b8] sm:$0xf0]  ;;  %v6521_v42 = vld [vmem:[#allocation8 + $0x120] sm:$0xf] }
 0x365   :  { %2911 = vmatpush.bf16.msrb.mxu2 %v6562_v21  ;;  %v6598_v21 = vor.u32 %v8047_v20, %v6595_v51 }
 0x366   :  { %2661 = vmatmul.bf16.vlgmr.msrb.gmra.mxu1 %v8964_v19  ;;  %2924 = vmatpush.bf16.msrb.mxu3 %v6626_v8 }
 0x367   :  { %2647 = vmatpush.bf16.msrb.mxu0 %v6382_v23  ;;  %v6563_v23 = vld [vmem:[#allocation8 + $0x178] sm:$0xf0] }
 0x36a   :  { %2648 = vmatmul.bf16.vlgmr.msrb.gmra.mxu0 %v1811_v45 }
 0x387   :  { %v2480_v43 = vpop.f32.mrf.mxu3 }
 0x38c   :  { %v2467_v12 = vpop.f32.mrf.mxu2 }
 0x38d   :  { %v2468_v25 = vadd.f32 %v2467_v12, %v1814_v24  ;;  %v8055_v24 = vld [vmem:[#allocation8 + $0x1f4] sm:$0xf]  ;;  %v6627_v12 = vld [vmem:[#allocation8 + $0x1f8] sm:$0xf0] }
 0x38f   :  { %v2482_v26 = vpop.f32.mrf.mxu3  ;;  %v2481_v27 = vadd.f32 %v2480_v43, %v2468_v25  ;;  %v6566_v43 = vor.u32 %v8039_v22, %v6563_v23  ;;  %v6630_v25 = vor.u32 %v8055_v24, %v6627_v12  ;;  %v8030_v22 = vld [vmem:[#allocation8 + $0x124] sm:$0xf0]  ;;  %v6585_v23 = vld [vmem:[#allocation8 + $0x1a0] sm:$0xf]  ;;  %v8029_v24 = vld [vmem:[#allocation8 + $0x124] sm:$0xf] }
 0x390   :  { %v6522_v8 = vor.u32 %v8030_v22, %v6521_v42  ;;  %v6523_v12 = vld [vmem:[#allocation8 + $0x128] sm:$0xf0] }
 0x391   :  { %v2506_v30 = vpop.f32.mrf.mxu1  ;;  %2937 = vmatpush.bf16.msra.mxu0 %v6566_v43  ;;  %2950 = vmatpush.bf16.msra.mxu1 %v6630_v25  ;;  %v8046_v43 = vld [vmem:[#allocation8 + $0x1a4] sm:$0xf0] }
 0x392   :  { %v6586_v25 = vor.u32 %v8046_v43, %v6585_v23 }
 0x394   :  { %v2469_v31 = vpop.f32.mrf.mxu2 }
 0x396   :  { %v2493_v32 = vpop.f32.mrf.mxu0 }
 0x397   :  { %v2494_v15 = vadd.f32 %v2493_v32, %v2481_v27 }
 0x399   :  { %v2508_v34 = vpop.f32.mrf.mxu1  ;;  %v2507_v35 = vadd.f32 %v2506_v30, %v2494_v15  ;;  %v6553_v15 = vld [vmem:[#allocation8 + $0x160] sm:$0xf] }
 0x39a   :  { %v8038_v34 = vld [vmem:[#allocation8 + $0x164] sm:$0xf0] }
 0x39e   :  { %v2495_v36 = vpop.f32.mrf.mxu0 }
 0x39f   :  { %v6554_v36 = vor.u32 %v8038_v34, %v6553_v15  ;;  %v8028_v15 = vld [vmem:[#allocation8 + $0x114] sm:$0xf0]  ;;  %v6577_v34 = vld [vmem:[#allocation8 + $0x190] sm:$0xf] }
 0x3a1   :  { %2912 = vmatpush.bf16.msrb.mxu2 %v6554_v36  ;;  %v8044_v36 = vld [vmem:[#allocation8 + $0x194] sm:$0xf0] }
 0x3aa   :  { %v2532_v19 = vpop.f32.mrf.mxu3 }
 0x3ad   :  { %v2519_v37 = vpop.f32.mrf.mxu2 }
 0x3ae   :  { %v2520_v0 = vadd.f32 %v2519_v37, %v2507_v35  ;;  %v6617_v35 = vld [vmem:[#allocation8 + $0x1e0] sm:$0xf]  ;;  %v8037_v37 = vld [vmem:[#allocation8 + $0x164] sm:$0xf] }
 0x3b0   :  { %v2533_v4 = vadd.f32 %v2532_v19, %v2520_v0  ;;  %v8054_v19 = vld [vmem:[#allocation8 + $0x1e4] sm:$0xf0] }
 0x3b2   :  { %v2534_v38 = vpop.f32.mrf.mxu3 }
 0x3b3   :  { %v6555_v38 = vld [vmem:[#allocation8 + $0x168] sm:$0xf0] }
 0x3b5   :  { %v2521_v39 = vpop.f32.mrf.mxu2 }
 0x3b6   :  { %v6618_v39 = vor.u32 %v8054_v19, %v6617_v35  ;;  %v8027_v19 = vld [vmem:[#allocation8 + $0x114] sm:$0xf] }
 0x3b8   :  { %2925 = vmatpush.bf16.msrb.mxu3 %v6618_v39 }
 0x3ba   :  { %v2584_v40 = vpop.f32.mrf.mxu3 }
 0x3bd   :  { %v2571_v41 = vpop.f32.mrf.mxu2 }
 0x3be   :  { %v2572_v58 = vadd.f32 %v2571_v41, %v1815_v54  ;;  %v8053_v41 = vld [vmem:[#allocation8 + $0x1e4] sm:$0xf]  ;;  %v8035_v54 = vld [vmem:[#allocation8 + $0x154] sm:$0xf] }
 0x3c0   :  { %v2585_v60 = vadd.f32 %v2584_v40, %v2572_v58  ;;  %v6558_v40 = vor.u32 %v8037_v37, %v6555_v38  ;;  %v8051_v58 = vld [vmem:[#allocation8 + $0x1d4] sm:$0xf]  ;;  %v6515_v37 = vld [vmem:[#allocation8 + $0x118] sm:$0xf0]  ;;  %v6578_v38 = vor.u32 %v8044_v36, %v6577_v34  ;;  %v8117_v36 = vld [vmem:[#allocation13 + $0x5dc] sm:$0xf0] }
 0x3c1   :  { %v6518_v39 = vor.u32 %v8027_v19, %v6515_v37  ;;  %v7114_v19 = vld [vmem:[#allocation13 + $0x7c0] sm:$0xf] }
 0x3c2   :  { %v2586_v45 = vpop.f32.mrf.mxu3  ;;  %2938 = vmatpush.bf16.msra.mxu0 %v6558_v40  ;;  %v8043_v40 = vld [vmem:[#allocation8 + $0x194] sm:$0xf] }
 0x3c3   :  { %v2558_v44 = vpop.f32.mrf.mxu1 }
 0x3c5   :  { %v2573_v47 = vpop.f32.mrf.mxu2 }
 0x3c6   :  { %v8036_v47 = vld [vmem:[#allocation8 + $0x154] sm:$0xf0] }
 0x3c7   :  { %v2545_v46 = vpop.f32.mrf.mxu0 }
 0x3c8   :  { %v2546_v7 = vadd.f32 %v2545_v46, %v2533_v4  ;;  %v6545_v46 = vld [vmem:[#allocation8 + $0x150] sm:$0xf]  ;;  %v6539_v4 = vld [vmem:[#allocation8 + $0x148] sm:$0xf0] }
 0x3ca   :  { %v2636_v52 = vpop.f32.mrf.mxu3  ;;  %v2559_v10 = vadd.f32 %v2558_v44, %v2546_v7  ;;  %v6619_v44 = vld [vmem:[#allocation8 + $0x1e8] sm:$0xf0]  ;;  %v8049_v7 = vld [vmem:[#allocation8 + $0x1c4] sm:$0xf] }
 0x3cb   :  { %v2560_v49 = vpop.f32.mrf.mxu1  ;;  %v6622_v45 = vor.u32 %v8053_v41, %v6619_v44  ;;  %v6579_v41 = vld [vmem:[#allocation8 + $0x198] sm:$0xf0]  ;;  %v6505_v44 = vld [vmem:[#allocation8 + $0x100] sm:$0xf] }
 0x3cc   :  { %v2666_v14 = vadd.f32 %v2559_v10, %v8906_v28  ;;  %v6609_v49 = vld [vmem:[#allocation8 + $0x1d0] sm:$0xf] }
 0x3cd   :  { %2951 = vmatpush.bf16.msra.mxu1 %v6622_v45  ;;  %v6529_v10 = vld [vmem:[#allocation8 + $0x130] sm:$0xf]  ;;  %v6582_v45 = vor.u32 %v8043_v40, %v6579_v41  ;;  %v6860_v40 = vld [vmem:[#allocation13 + $0x5e0] sm:$0xf0] }
 0x3cf   :  { %v2547_v53 = vpop.f32.mrf.mxu0  ;;  %v2623_v50 = vpop.f32.mrf.mxu2 }
 0x3d0   :  { %v8052_v53 = vld [vmem:[#allocation8 + $0x1d4] sm:$0xf0] }
 0x3d2   :  { %v2638_v57 = vpop.f32.mrf.mxu3 }
 0x3d3   :  { %v2610_v55 = vpop.f32.mrf.mxu1 }
 0x3d7   :  { %v2597_v59 = vpop.f32.mrf.mxu0  ;;  %v2625_v61 = vpop.f32.mrf.mxu2 }
 0x3d8   :  { %v2598_v62 = vadd.f32 %v2597_v59, %v2585_v60  ;;  %v6611_v59 = vld [vmem:[#allocation8 + $0x1d8] sm:$0xf0]  ;;  %v6537_v61 = vld [vmem:[#allocation8 + $0x140] sm:$0xf] }
 0x3d9   :  { %v6614_v60 = vor.u32 %v8051_v58, %v6611_v59  ;;  %v6571_v58 = vld [vmem:[#allocation8 + $0x188] sm:$0xf0] }
 0x3da   :  { %v2611_v1 = vadd.f32 %v2610_v55, %v2598_v62  ;;  %v6610_v55 = vor.u32 %v8052_v53, %v6609_v49  ;;  %v8034_v62 = vld [vmem:[#allocation8 + $0x144] sm:$0xf0] }
 0x3db   :  { %v2612_v63 = vpop.f32.mrf.mxu1  ;;  %2952 = vmatpush.bf16.msra.mxu1 %v6614_v60  ;;  %v6538_v0 = vor.u32 %v8034_v62, %v6537_v61  ;;  %v8042_v49 = vld [vmem:[#allocation8 + $0x184] sm:$0xf0] }
 0x3dc   :  { %v2624_v6 = vadd.f32 %v2623_v50, %v2611_v1  ;;  %v6547_v50 = vld [vmem:[#allocation8 + $0x158] sm:$0xf0]  ;;  %2926 = vmatpush.bf16.msrb.mxu3 %v6610_v55  ;;  %v6601_v63 = vld [vmem:[#allocation8 + $0x1c0] sm:$0xf]  ;;  %v8050_v1 = vld [vmem:[#allocation8 + $0x1c4] sm:$0xf0] }
 0x3dd   :  { %v6550_v57 = vor.u32 %v8035_v54, %v6547_v50  ;;  %v8025_v54 = vld [vmem:[#allocation8 + $0x104] sm:$0xf]  ;;  %v6507_v50 = vld [vmem:[#allocation8 + $0x108] sm:$0xf0] }
 0x3de   :  { %v2637_v9 = vadd.f32 %v2636_v52, %v2624_v6  ;;  %v6546_v52 = vor.u32 %v8036_v47, %v6545_v46  ;;  %v8026_v46 = vld [vmem:[#allocation8 + $0x104] sm:$0xf0]  ;;  %v6569_v47 = vld [vmem:[#allocation8 + $0x180] sm:$0xf]  ;;  %v8041_v55 = vld [vmem:[#allocation8 + $0x184] sm:$0xf] }
 0x3df   :  { %v2599_v3 = vpop.f32.mrf.mxu0  ;;  %2939 = vmatpush.bf16.msra.mxu0 %v6550_v57  ;;  %v6570_v53 = vor.u32 %v8042_v49, %v6569_v47  ;;  %v6510_v57 = vor.u32 %v8025_v54, %v6507_v50  ;;  %v6574_v59 = vor.u32 %v8041_v55, %v6571_v58  ;;  %v6826_v47 = vld [vmem:[#allocation13 + $0x580] sm:$0xf]  ;;  %v6828_v58 = vld [vmem:[#allocation13 + $0x5a0] sm:$0xf0] }
 0x3e0   :  { %2913 = vmatpush.bf16.msrb.mxu2 %v6546_v52  ;;  %v8033_v3 = vld [vmem:[#allocation8 + $0x144] sm:$0xf]  ;;  %v6506_v52 = vor.u32 %v8026_v46, %v6505_v44  ;;  %v7116_v46 = vld [vmem:[#allocation13 + $0x7e0] sm:$0xf0]  ;;  %v8173_v54 = vld [vmem:[#allocation13 + $0x79c] sm:$0xf0] }
 0x3e1   :  { %v6542_v6 = vor.u32 %v8033_v3, %v6539_v4 }
 0x3e3   :  { %v2662_v5 = vpop.f32.mrf.mxu1  ;;  %2940 = vmatpush.bf16.msra.mxu0 %v6542_v6 }
 0x3e4   :  { %2914 = vmatpush.bf16.msrb.mxu2 %v6538_v0 }
 0x3e7   :  { %v2649_v18 = vpop.f32.mrf.mxu0 }
 0x3e8   :  { %v2650_v11 = vadd.f32 %v2649_v18, %v2637_v9  ;;  %v6603_v9 = vld [vmem:[#allocation8 + $0x1c8] sm:$0xf0] }
 0x3e9   :  { %v6606_v18 = vor.u32 %v8049_v7, %v6603_v9  ;;  %v2669_v7 = vld [vmem:[#allocation19] sm:$0x3] }
 0x3ea   :  { %v2663_v56 = vadd.f32 %v2662_v5, %v2650_v11  ;;  %v6602_v5 = vor.u32 %v8050_v1, %v6601_v63  ;;  %v8032_v11 = vld [vmem:[#allocation8 + $0x134] sm:$0xf0] }
 0x3eb   :  { %v2664_v13 = vpop.f32.mrf.mxu1  ;;  %2953 = vmatpush.bf16.msra.mxu1 %v6606_v18 }
 0x3ec   :  { %v2667_v33 = vadd.f32 %v2663_v56, %v8908_v29  ;;  %2927 = vmatpush.bf16.msrb.mxu3 %v6602_v5  ;;  %v6593_v56 = vld [vmem:[#allocation8 + $0x1b0] sm:$0xf]  ;;  %v6530_v13 = vor.u32 %v8032_v11, %v6529_v10  ;;  %v2668_v5 = vld [vmem:[#allocation17] sm:$0x3] }
 0x3ed   :  { %v2696_v9 = vperm.slane %v2668_v5, 0  ;;  %v2697_v18 = vperm.slane %v2668_v5, 1 }
 0x3ee   :  { %v2670_v16 = vadd.f32 %v2667_v33, %v2666_v14  ;;  %2915 = vmatpush.bf16.msrb.mxu2 %v6530_v13  ;;  %v2703_v13 = vperm.slane %v2669_v7, 0 }
 0x3ef   :  { %v2651_v48 = vpop.f32.mrf.mxu0  ;;  %2954 = vmatpush.bf16.msra.mxu1 %v6598_v21  ;;  %v2743_v21 = vld [vmem:[#allocation10 + $0x2] sm:$0x3] }
 0x3f0   :  { %2671 = vadd.xlane.f32.xlu1 %v2670_v16  ;;  %v6531_v16 = vld [vmem:[#allocation8 + $0x138] sm:$0xf0]  ;;  %v2748_v42 = vperm.slane %v2743_v21, 1 }
 0x3f2   :  { %2916 = vmatpush.bf16.msrb.mxu2 %v6522_v8 }
 0x463   :  { %v2672_v28 = vpop.xlane.xlu1 %2671 }
 0x464   :  { %v2673_v29 = vmul.f32 %v2672_v28, %v8887_v2  ;;  %v6526_v28 = vor.u32 %v8029_v24, %v6523_v12 }
 0x466   :  { %v8978_v26 = vsub.f32 %v2666_v14, %v2673_v29  ;;  %v8980_v27 = vsub.f32 %v2667_v33, %v2673_v29  ;;  %v8048_v14 = vld [vmem:[#allocation8 + $0x1b4] sm:$0xf0]  ;;  %v8031_v33 = vld [vmem:[#allocation8 + $0x134] sm:$0xf]  ;;  %v8045_v29 = vld [vmem:[#allocation8 + $0x1a4] sm:$0xf] }
 0x467   :  { %v6594_v48 = vor.u32 %v8048_v14, %v6593_v56  ;;  %v6534_v17 = vor.u32 %v8031_v33, %v6531_v16  ;;  %v2704_v14 = vperm.slane %v2669_v7, 1  ;;  %v8161_v7 = vld [vmem:[#allocation13 + $0x744] sm:$0xf] }
 0x468   :  { %v2676_v30 = vmul.f32 %v8978_v26, %v8978_v26  ;;  %v2677_v31 = vmul.f32 %v8980_v27, %v8980_v27 }
 0x469   :  { %2928 = vmatpush.bf16.msrb.mxu3 %v6594_v48  ;;  %2941 = vmatpush.bf16.msra.mxu0 %v6534_v17 }
 0x46a   :  { %v2678_v32 = vadd.f32 %v2677_v31, %v2676_v30  ;;  %v6587_v30 = vld [vmem:[#allocation8 + $0x1a8] sm:$0xf0] }
 0x46b   :  { %v6590_v31 = vor.u32 %v8045_v29, %v6587_v30 }
 0x46c   :  { %2679 = vadd.xlane.f32.xlu1 %v2678_v32  ;;  %v6513_v32 = vld [vmem:[#allocation8 + $0x110] sm:$0xf] }
 0x46d   :  { %2929 = vmatpush.bf16.msrb.mxu3 %v6586_v25  ;;  %2942 = vmatpush.bf16.msra.mxu0 %v6526_v28  ;;  %v6514_v35 = vor.u32 %v8028_v15, %v6513_v32 }
 0x46e   :  { %2955 = vmatpush.bf16.msra.mxu1 %v6590_v31 }
 0x46f   :  { %2917 = vmatpush.bf16.msrb.mxu2 %v6514_v35  ;;  %v6858_v35 = vld [vmem:[#allocation13 + $0x5c0] sm:$0xf] }
 0x470   :  { %v6859_v37 = vor.u32 %v8117_v36, %v6858_v35  ;;  %v6954_v35 = vld [vmem:[#allocation13 + $0x680] sm:$0xf] }
 0x471   :  { %2930 = vmatpush.bf16.msrb.mxu3 %v6578_v38  ;;  %2943 = vmatpush.bf16.msra.mxu0 %v6518_v39  ;;  %v8181_v38 = vld [vmem:[#allocation13 + $0x7dc] sm:$0xf0]  ;;  %v8113_v39 = vld [vmem:[#allocation13 + $0x5c4] sm:$0xf] }
 0x472   :  { %2956 = vmatpush.bf16.msra.mxu1 %v6582_v45  ;;  %v7115_v41 = vor.u32 %v8181_v38, %v7114_v19  ;;  %v6863_v44 = vor.u32 %v8113_v39, %v6860_v40  ;;  %v8177_v45 = vld [vmem:[#allocation13 + $0x7c4] sm:$0xf]  ;;  %v8141_v19 = vld [vmem:[#allocation13 + $0x69c] sm:$0xf0] }
 0x473   :  { %2918 = vmatpush.bf16.msrb.mxu2 %v6506_v52  ;;  %v7119_v49 = vor.u32 %v8177_v45, %v7116_v46  ;;  %v8109_v52 = vld [vmem:[#allocation13 + $0x59c] sm:$0xf0]  ;;  %v6700_v38 = vld [vmem:[#allocation13 + $0x4a0] sm:$0xf0] }
 0x474   :  { %v6827_v50 = vor.u32 %v8109_v52, %v6826_v47  ;;  %v8137_v39 = vld [vmem:[#allocation13 + $0x684] sm:$0xf]  ;;  %v6666_v46 = vld [vmem:[#allocation13 + $0x440] sm:$0xf] }
 0x475   :  { %2931 = vmatpush.bf16.msrb.mxu3 %v6570_v53  ;;  %2944 = vmatpush.bf16.msra.mxu0 %v6510_v57  ;;  %v7082_v53 = vld [vmem:[#allocation13 + $0x780] sm:$0xf]  ;;  %v8105_v57 = vld [vmem:[#allocation13 + $0x584] sm:$0xf] }
 0x476   :  { %2957 = vmatpush.bf16.msra.mxu1 %v6574_v59  ;;  %v7083_v55 = vor.u32 %v8173_v54, %v7082_v53  ;;  %v8169_v59 = vld [vmem:[#allocation13 + $0x784] sm:$0xf]  ;;  %v8069_v47 = vld [vmem:[#allocation13 + $0x45c] sm:$0xf0] }
 0x477   :  { %3798 = vmatpush.bf16.msra.mxu2 %v6859_v37  ;;  %v8073_v37 = vld [vmem:[#allocation13 + $0x484] sm:$0xf]  ;;  %v8133_v53 = vld [vmem:[#allocation13 + $0x65c] sm:$0xf0] }
 0x478   :  { %v6956_v40 = vld [vmem:[#allocation13 + $0x6a0] sm:$0xf0]  ;;  %v6703_v45 = vor.u32 %v8073_v37, %v6700_v38  ;;  %v6802_v37 = vld [vmem:[#allocation13 + $0x548] sm:$0xf] }
 0x479   :  { %3811 = vmatpush.bf16.msra.mxu3 %v7115_v41  ;;  %3824 = vmatpush.bf16.msrb.mxu0 %v6863_v44  ;;  %v6955_v44 = vor.u32 %v8141_v19, %v6954_v35  ;;  %v6959_v52 = vor.u32 %v8137_v39, %v6956_v40  ;;  %v8065_v54 = vld [vmem:[#allocation13 + $0x444] sm:$0xf]  ;;  %v7092_v35 = vld [vmem:[#allocation13 + $0x7a8] sm:$0xf0]  ;;  %v8102_v38 = vld [vmem:[#allocation13 + $0x564] sm:$0xf0] }
 0x47a   :  { %3837 = vmatpush.bf16.msrb.mxu1 %v7119_v49  ;;  %v6922_v49 = vld [vmem:[#allocation13 + $0x640] sm:$0xf]  ;;  %v7058_v39 = vld [vmem:[#allocation13 + $0x748] sm:$0xf]  ;;  %v6803_v40 = vor.u32 %v8102_v38, %v6802_v37 }
 0x47b   :  { %3799 = vmatpush.bf16.msra.mxu2 %v6827_v50  ;;  %v6668_v50 = vld [vmem:[#allocation13 + $0x460] sm:$0xf0]  ;;  %v8062_v37 = vld [vmem:[#allocation13 + $0x424] sm:$0xf0] }
 0x47c   :  { %v6898_v38 = vld [vmem:[#allocation13 + $0x608] sm:$0xf] }
 0x47d   :  { %3812 = vmatpush.bf16.msra.mxu3 %v7083_v55  ;;  %v8129_v55 = vld [vmem:[#allocation13 + $0x644] sm:$0xf] }
 0x4df   :  { %v2680_v60 = vpop.xlane.xlu1 %2679 }
 0x4e0   :  { %v2681_v61 = vmul.f32 %v2680_v60, %v8887_v2  ;;  %v6831_v60 = vor.u32 %v8105_v57, %v6828_v58  ;;  %v6924_v57 = vld [vmem:[#allocation13 + $0x660] sm:$0xf0] }
 0x4e2   :  { %v2682_v62 = vadd.f32 1e-05, %v2681_v61  ;;  %v7084_v61 = vld [vmem:[#allocation13 + $0x7a0] sm:$0xf0]  ;;  %3825 = vmatpush.bf16.msrb.mxu0 %v6831_v60 }
 0x4e4   :  { %8358 = vrsqrt.f32 %v2682_v62  ;;  %vm2689_vm5 = vweird.f32 %v2682_v62 }
 0x4ea   :  { %v8359_v63 = vpop.eup %8358 }
 0x4eb   :  { %v2684_v0 = vmul.f32 %v8359_v63, %v2682_v62  ;;  %vm2690_vm4 = vweird.f32 %v8359_v63  ;;  %v6794_v62 = vld [vmem:[#allocation13 + $0x540] sm:$0xf] }
 0x4ec   :  { %vm2691_vm6 = vmor %vm2689_vm5, %vm2690_vm4 }
 0x4ed   :  { %v2685_v1 = vmul.f32 %v8359_v63, %v2684_v0  ;;  %v7087_v0 = vor.u32 %v8169_v59, %v7084_v61  ;;  %v6667_v59 = vor.u32 %v8069_v47, %v6666_v46  ;;  %v6923_v61 = vor.u32 %v8133_v53, %v6922_v49  ;;  %v8162_v49 = vld [vmem:[#allocation13 + $0x74c] sm:$0xf] }
 0x4ef   :  { %v2686_v3 = vmul.f32 0.5, %v2685_v1  ;;  %v7050_v1 = vld [vmem:[#allocation13 + $0x740] sm:$0xf]  ;;  %3838 = vmatpush.bf16.msrb.mxu1 %v7087_v0 }
 0x4f1   :  { %v2687_v4 = vsub.f32 1.5, %v2686_v3  ;;  %v8165_v3 = vld [vmem:[#allocation13 + $0x75c] sm:$0xf0] }
 0x4f3   :  { %v2688_v6 = vmul.f32 %v8359_v63, %v2687_v4  ;;  %v8097_v4 = vld [vmem:[#allocation13 + $0x544] sm:$0xf] }
 0x4f5   :  { %v2692_v10 = vsel %vm2691_vm6, %v8359_v63, %v2688_v6  ;;  %v8101_v63 = vld [vmem:[#allocation13 + $0x55c] sm:$0xf0]  ;;  %v6796_v6 = vld [vmem:[#allocation13 + $0x560] sm:$0xf0] }
 0x4f6   :  { %v2693_v11 = vmul.f32 %v2692_v10, %v8978_v26  ;;  %v2694_v56 = vmul.f32 %v2692_v10, %v8980_v27  ;;  %v2747_v26 = vperm.slane %v2743_v21, 0  ;;  %v6795_v5 = vor.u32 %v8101_v63, %v6794_v62 }
 0x4f7   :  { %v6799_v10 = vor.u32 %v8097_v4, %v6796_v6  ;;  %v6671_v62 = vor.u32 %v8065_v54, %v6668_v50  ;;  %v6927_v63 = vor.u32 %v8129_v55, %v6924_v57  ;;  %v6634_v6 = vld [vmem:[#allocation13 + $0x400] sm:$0xf]  ;;  %v6770_v54 = vld [vmem:[#allocation13 + $0x508] sm:$0xf] }
 0x4f8   :  { %v2700_v33 = vmul.f32 %v2696_v9, %v2693_v11  ;;  %v2701_v16 = vmul.f32 %v2697_v18, %v2694_v56  ;;  %v7052_v9 = vld [vmem:[#allocation13 + $0x760] sm:$0xf0]  ;;  %v7051_v18 = vor.u32 %v8165_v3, %v7050_v1  ;;  %v6762_v11 = vld [vmem:[#allocation13 + $0x500] sm:$0xf]  ;;  %3800 = vmatpush.bf16.msra.mxu2 %v6795_v5  ;;  %v8094_v50 = vld [vmem:[#allocation13 + $0x524] sm:$0xf0] }
 0x4f9   :  { %v8093_v56 = vld [vmem:[#allocation13 + $0x51c] sm:$0xf0]  ;;  %3826 = vmatpush.bf16.msrb.mxu0 %v6799_v10  ;;  %v8057_v10 = vld [vmem:[#allocation13 + $0x404] sm:$0xf]  ;;  %v7026_v55 = vld [vmem:[#allocation13 + $0x708] sm:$0xf]  ;;  %v6771_v57 = vor.u32 %v8094_v50, %v6770_v54 }
 0x4fa   :  { %v2707_v48 = vadd.f32 %v2703_v13, %v2700_v33  ;;  %v2708_v17 = vadd.f32 %v2704_v14, %v2701_v16  ;;  %v7018_v13 = vld [vmem:[#allocation13 + $0x700] sm:$0xf]  ;;  %v7055_v14 = vor.u32 %v8161_v7, %v7052_v9  ;;  %v8089_v16 = vld [vmem:[#allocation13 + $0x504] sm:$0xf]  ;;  %3813 = vmatpush.bf16.msra.mxu3 %v7051_v18 }
 0x4fb   :  { %v8157_v33 = vld [vmem:[#allocation13 + $0x71c] sm:$0xf0] }
 0x4fc   :  { %v2744_v20 = vpack.c.bf16 %v2707_v48, %v2707_v48  ;;  %v2745_v51 = vpack.c.bf16 %v2708_v17, %v2708_v17  ;;  %v7019_v21 = vor.u32 %v8157_v33, %v7018_v13  ;;  %3839 = vmatpush.bf16.msrb.mxu1 %v7055_v14  ;;  %v8061_v7 = vld [vmem:[#allocation13 + $0x41c] sm:$0xf0]  ;;  %v8121_v13 = vld [vmem:[#allocation13 + $0x604] sm:$0xf]  ;;  %v6866_v33 = vld [vmem:[#allocation13 + $0x5c8] sm:$0xf] }
 0x4fd   :  { %v6890_v9 = vld [vmem:[#allocation13 + $0x600] sm:$0xf]  ;;  %v6892_v14 = vld [vmem:[#allocation13 + $0x620] sm:$0xf0] }
 0x4fe   :  { %2919 = vmatmul.bf16.vlgmr.msrb.gmra.mxu2 %v2744_v20  ;;  %2932 = vmatmul.bf16.vlgmr.msrb.gmra.mxu3 %v2745_v51  ;;  %v8125_v18 = vld [vmem:[#allocation13 + $0x61c] sm:$0xf0] }
 0x4ff   :  { %2945 = vmatmul.bf16.vlgmr.msra.gmra.mxu0 %v2744_v20  ;;  %2958 = vmatmul.bf16.vlgmr.msra.gmra.mxu1 %v2745_v51  ;;  %v7020_v20 = vld [vmem:[#allocation13 + $0x720] sm:$0xf0]  ;;  %v6763_v51 = vor.u32 %v8093_v56, %v6762_v11  ;;  %v6891_v11 = vor.u32 %v8125_v18, %v6890_v9  ;;  %v8082_v18 = vld [vmem:[#allocation13 + $0x4cc] sm:$0xf] }
 0x500   :  { %3814 = vmatpush.bf16.msra.mxu3 %v7019_v21 }
 0x501   :  { %3801 = vmatpush.bf16.msra.mxu2 %v6763_v51 }
 0x57c   :  { %v2946_v22 = vpop.f32.mrf.mxu0  ;;  %v2959_v23 = vpop.f32.mrf.mxu1 }
 0x57d   :  { %v2947_v8 = vadd.f32 %v2946_v22, %v2748_v42  ;;  %v6730_v22 = vld [vmem:[#allocation13 + $0x4c0] sm:$0xf] }
 0x57f   :  { %v2960_v24 = vadd.f32 %v2959_v23, %v2947_v8  ;;  %v8085_v23 = vld [vmem:[#allocation13 + $0x4dc] sm:$0xf0] }
 0x580   :  { %v6986_v8 = vld [vmem:[#allocation13 + $0x6c0] sm:$0xf] }
 0x581   :  { %v2920_v43 = vpop.f32.mrf.mxu2  ;;  %v2933_v27 = vpop.f32.mrf.mxu3  ;;  %v8991_v31 = vadd.f32 %v2960_v24, %v2708_v17  ;;  %v8153_v17 = vld [vmem:[#allocation13 + $0x704] sm:$0xf] }
 0x582   :  { %v2921_v12 = vadd.f32 %v2920_v43, %v2747_v26  ;;  %v7023_v26 = vor.u32 %v8153_v17, %v7020_v20  ;;  %v8149_v43 = vld [vmem:[#allocation13 + $0x6dc] sm:$0xf0]  ;;  %v6732_v24 = vld [vmem:[#allocation13 + $0x4e0] sm:$0xf0]  ;;  %v7122_v17 = vld [vmem:[#allocation13 + $0x7c8] sm:$0xf] }
 0x583   :  { %v8182_v20 = vld [vmem:[#allocation13 + $0x7e4] sm:$0xf0] }
 0x584   :  { %v2934_v25 = vadd.f32 %v2933_v27, %v2921_v12  ;;  %v2948_v28 = vpop.f32.mrf.mxu0  ;;  %v2961_v29 = vpop.f32.mrf.mxu1  ;;  %v8081_v27 = vld [vmem:[#allocation13 + $0x4c4] sm:$0xf]  ;;  %3840 = vmatpush.bf16.msrb.mxu1 %v7023_v26  ;;  %v7123_v21 = vor.u32 %v8182_v20, %v7122_v17  ;;  %v7124_v26 = vld [vmem:[#allocation13 + $0x7e8] sm:$0xf0]  ;;  %v8142_v20 = vld [vmem:[#allocation13 + $0x6a4] sm:$0xf0] }
 0x585   :  { %v8145_v12 = vld [vmem:[#allocation13 + $0x6c4] sm:$0xf]  ;;  %v6731_v28 = vor.u32 %v8085_v23, %v6730_v22  ;;  %v6987_v29 = vor.u32 %v8149_v43, %v6986_v8  ;;  %v6868_v22 = vld [vmem:[#allocation13 + $0x5e8] sm:$0xf0]  ;;  %v6834_v43 = vld [vmem:[#allocation13 + $0x588] sm:$0xf] }
 0x586   :  { %v8989_v30 = vadd.f32 %v2934_v25, %v2707_v48  ;;  %v6764_v48 = vld [vmem:[#allocation13 + $0x520] sm:$0xf0]  ;;  %v8178_v23 = vld [vmem:[#allocation13 + $0x7cc] sm:$0xf] }
 0x587   :  { %v6767_v42 = vor.u32 %v8089_v16, %v6764_v48  ;;  %v6988_v25 = vld [vmem:[#allocation13 + $0x6e0] sm:$0xf0]  ;;  %3802 = vmatpush.bf16.msra.mxu2 %v6731_v28  ;;  %3815 = vmatpush.bf16.msra.mxu3 %v6987_v29  ;;  %v6895_v16 = vor.u32 %v8121_v13, %v6892_v14  ;;  %v8118_v48 = vld [vmem:[#allocation13 + $0x5e4] sm:$0xf0]  ;;  %v8106_v29 = vld [vmem:[#allocation13 + $0x58c] sm:$0xf] }
 0x588   :  { %v2969_v32 = vadd.f32 %v8991_v31, %v8989_v30  ;;  %v6991_v36 = vor.u32 %v8145_v12, %v6988_v25  ;;  %v6867_v51 = vor.u32 %v8118_v48, %v6866_v33  ;;  %v7090_v25 = vld [vmem:[#allocation13 + $0x788] sm:$0xf]  ;;  %v6996_v13 = vld [vmem:[#allocation13 + $0x6e8] sm:$0xf0] }
 0x589   :  { %v2922_v15 = vpop.f32.mrf.mxu2  ;;  %v2935_v34 = vpop.f32.mrf.mxu3  ;;  %3827 = vmatpush.bf16.msrb.mxu0 %v6767_v42  ;;  %v8114_v42 = vld [vmem:[#allocation13 + $0x5cc] sm:$0xf]  ;;  %v8174_v28 = vld [vmem:[#allocation13 + $0x7a4] sm:$0xf0] }
 0x58a   :  { %2970 = vadd.xlane.f32.xlu2 %v2969_v32  ;;  %v6735_v32 = vor.u32 %v8081_v27, %v6732_v24  ;;  %v6698_v15 = vld [vmem:[#allocation13 + $0x480] sm:$0xf]  ;;  %3841 = vmatpush.bf16.msrb.mxu1 %v6991_v36  ;;  %v6871_v8 = vor.u32 %v8114_v42, %v6868_v22  ;;  %v8110_v27 = vld [vmem:[#allocation13 + $0x5a4] sm:$0xf0]  ;;  %v7127_v24 = vor.u32 %v8178_v23, %v7124_v26  ;;  %v8138_v23 = vld [vmem:[#allocation13 + $0x68c] sm:$0xf] }
 0x58b   :  { %v8077_v34 = vld [vmem:[#allocation13 + $0x49c] sm:$0xf0]  ;;  %3816 = vmatpush.bf16.msra.mxu3 %v6955_v44  ;;  %v6835_v12 = vor.u32 %v8110_v27, %v6834_v43  ;;  %v8098_v44 = vld [vmem:[#allocation13 + $0x54c] sm:$0xf]  ;;  %v6706_v33 = vld [vmem:[#allocation13 + $0x488] sm:$0xf] }
 0x58c   :  { %v6699_v41 = vor.u32 %v8077_v34, %v6698_v15  ;;  %v6836_v15 = vld [vmem:[#allocation13 + $0x5a8] sm:$0xf0]  ;;  %v6962_v48 = vld [vmem:[#allocation13 + $0x688] sm:$0xf] }
 0x58d   :  { %3828 = vmatpush.bf16.msrb.mxu0 %v6735_v32  ;;  %v7091_v32 = vor.u32 %v8174_v28, %v7090_v25  ;;  %v8170_v34 = vld [vmem:[#allocation13 + $0x78c] sm:$0xf]  ;;  %v6839_v36 = vor.u32 %v8106_v29, %v6836_v15  ;;  %v6963_v42 = vor.u32 %v8142_v20, %v6962_v48  ;;  %v6674_v43 = vld [vmem:[#allocation13 + $0x448] sm:$0xf]  ;;  %v6876_v48 = vld [vmem:[#allocation13 + $0x5f0] sm:$0xf0] }
 0x58e   :  { %3803 = vmatpush.bf16.msra.mxu2 %v6699_v41  ;;  %3842 = vmatpush.bf16.msrb.mxu1 %v6959_v52  ;;  %v7095_v19 = vor.u32 %v8170_v34, %v7092_v35  ;;  %v8166_v41 = vld [vmem:[#allocation13 + $0x764] sm:$0xf0]  ;;  %v7060_v52 = vld [vmem:[#allocation13 + $0x768] sm:$0xf0]  ;;  %v7132_v20 = vld [vmem:[#allocation13 + $0x7f0] sm:$0xf0] }
 0x58f   :  { %3817 = vmatpush.bf16.msra.mxu3 %v6923_v61  ;;  %v7059_v46 = vor.u32 %v8166_v41, %v7058_v39  ;;  %v7063_v53 = vor.u32 %v8162_v49, %v7060_v52  ;;  %v8070_v27 = vld [vmem:[#allocation13 + $0x464] sm:$0xf0]  ;;  %v8066_v28 = vld [vmem:[#allocation13 + $0x44c] sm:$0xf] }
 0x590   :  { %v8134_v25 = vld [vmem:[#allocation13 + $0x664] sm:$0xf0]  ;;  %v6676_v29 = vld [vmem:[#allocation13 + $0x468] sm:$0xf0] }
 0x591   :  { %3829 = vmatpush.bf16.msrb.mxu0 %v6703_v45  ;;  %v6804_v45 = vld [vmem:[#allocation13 + $0x568] sm:$0xf0]  ;;  %v6679_v15 = vor.u32 %v8066_v28, %v6676_v29 }
 0x592   :  { %3804 = vmatpush.bf16.msra.mxu2 %v6667_v59  ;;  %3843 = vmatpush.bf16.msrb.mxu1 %v6927_v63  ;;  %v6807_v47 = vor.u32 %v8098_v44, %v6804_v45  ;;  %v8090_v59 = vld [vmem:[#allocation13 + $0x50c] sm:$0xf] }
 0x593   :  { %3818 = vmatpush.bf16.msra.mxu3 %v6891_v11  ;;  %v8154_v63 = vld [vmem:[#allocation13 + $0x70c] sm:$0xf] }
 0x594   :  { %v8130_v34 = vld [vmem:[#allocation13 + $0x64c] sm:$0xf] }
 0x595   :  { %3830 = vmatpush.bf16.msrb.mxu0 %v6671_v62  ;;  %v6932_v35 = vld [vmem:[#allocation13 + $0x668] sm:$0xf0] }
 0x596   :  { %3844 = vmatpush.bf16.msrb.mxu1 %v6895_v16  ;;  %v8078_v16 = vld [vmem:[#allocation13 + $0x4a4] sm:$0xf0]  ;;  %v8058_v41 = vld [vmem:[#allocation13 + $0x40c] sm:$0xf] }
 0x597   :  { %3863 = vmatpush.bf16.msrb.mxu3 %v7123_v21  ;;  %v6707_v17 = vor.u32 %v8078_v16, %v6706_v33  ;;  %v6708_v21 = vld [vmem:[#allocation13 + $0x4a8] sm:$0xf0] }
 0x598   :  { %v6644_v44 = vld [vmem:[#allocation13 + $0x428] sm:$0xf0] }
 0x599   :  { %v6900_v49 = vld [vmem:[#allocation13 + $0x628] sm:$0xf0] }
 0x59a   :  { %3889 = vmatpush.bf16.msra.mxu1 %v7127_v24  ;;  %v6930_v24 = vld [vmem:[#allocation13 + $0x648] sm:$0xf] }
 0x59b   :  { %3864 = vmatpush.bf16.msrb.mxu3 %v7091_v32  ;;  %v6931_v32 = vor.u32 %v8134_v25, %v6930_v24  ;;  %v6844_v24 = vld [vmem:[#allocation13 + $0x5b0] sm:$0xf0] }
 0x59c   :  { %v7100_v25 = vld [vmem:[#allocation13 + $0x7b0] sm:$0xf0] }
 0x59e   :  { %3890 = vmatpush.bf16.msra.mxu1 %v7095_v19  ;;  %v6642_v19 = vld [vmem:[#allocation13 + $0x408] sm:$0xf] }
 0x59f   :  { %3865 = vmatpush.bf16.msrb.mxu3 %v7059_v46  ;;  %v6643_v39 = vor.u32 %v8062_v37, %v6642_v19  ;;  %v6647_v46 = vor.u32 %v8058_v41, %v6644_v44  ;;  %v8167_v19 = vld [vmem:[#allocation13 + $0x76c] sm:$0xf0]  ;;  %v8099_v37 = vld [vmem:[#allocation13 + $0x554] sm:$0xf] }
 0x5a2   :  { %3891 = vmatpush.bf16.msra.mxu1 %v7063_v53 }
 0x5fd   :  { %v2971_v58 = vpop.xlane.xlu2 %2970 }
 0x5fe   :  { %v2972_v60 = vmul.f32 %v2971_v58, %v8887_v2  ;;  %v8158_v58 = vld [vmem:[#allocation13 + $0x724] sm:$0xf0] }
 0x5ff   :  { %v7027_v61 = vor.u32 %v8158_v58, %v7026_v55 }
 0x600   :  { %v8997_v0 = vsub.f32 %v8989_v30, %v2972_v60  ;;  %v9000_v1 = vsub.f32 %v8991_v31, %v2972_v60  ;;  %v6635_v30 = vor.u32 %v8061_v7, %v6634_v6  ;;  %v6636_v31 = vld [vmem:[#allocation13 + $0x420] sm:$0xf0]  ;;  %v6772_v60 = vld [vmem:[#allocation13 + $0x528] sm:$0xf0]  ;;  %v8086_v6 = vld [vmem:[#allocation13 + $0x4e4] sm:$0xf0] }
 0x601   :  { %v6639_v56 = vor.u32 %v8057_v10, %v6636_v31  ;;  %v6775_v62 = vor.u32 %v8090_v59, %v6772_v60  ;;  %v6994_v7 = vld [vmem:[#allocation13 + $0x6c8] sm:$0xf]  ;;  %3866 = vmatpush.bf16.msrb.mxu3 %v7027_v61  ;;  %v6740_v10 = vld [vmem:[#allocation13 + $0x4e8] sm:$0xf0]  ;;  %v6631_v60 = vld [vmem:[%s9102_s5 + $0x2] sm:$0x3] }
 0x602   :  { %v2975_v3 = vmul.f32 %v8997_v0, %v8997_v0  ;;  %v2976_v4 = vmul.f32 %v9000_v1, %v9000_v1  ;;  %3805 = vmatpush.bf16.msra.mxu2 %v6635_v30  ;;  %v8150_v30 = vld [vmem:[#allocation13 + $0x6e4] sm:$0xf0]  ;;  %v6743_v11 = vor.u32 %v8082_v18, %v6740_v10 }
 0x603   :  { %3831 = vmatpush.bf16.msrb.mxu0 %v6639_v56  ;;  %v6995_v31 = vor.u32 %v8150_v30, %v6994_v7  ;;  %v8146_v56 = vld [vmem:[#allocation13 + $0x6cc] sm:$0xf] }
 0x604   :  { %v2977_v5 = vadd.f32 %v2976_v4, %v2975_v3  ;;  %v7028_v3 = vld [vmem:[#allocation13 + $0x728] sm:$0xf0]  ;;  %v6999_v14 = vor.u32 %v8146_v56, %v6996_v13  ;;  %v7130_v56 = vld [vmem:[#allocation13 + $0x7d0] sm:$0xf] }
 0x605   :  { %v7031_v4 = vor.u32 %v8154_v63, %v7028_v3  ;;  %3867 = vmatpush.bf16.msrb.mxu3 %v6995_v31  ;;  %v2995_v3 = vperm.slane %v6631_v60, 0  ;;  %v6874_v31 = vld [vmem:[#allocation13 + $0x5d0] sm:$0xf] }
 0x606   :  { %2978 = vadd.xlane.f32.xlu2 %v2977_v5  ;;  %3850 = vmatpush.bf16.msrb.mxu2 %v6867_v51  ;;  %v6738_v5 = vld [vmem:[#allocation13 + $0x4c8] sm:$0xf]  ;;  %v8074_v51 = vld [vmem:[#allocation13 + $0x48c] sm:$0xf]  ;;  %v8183_v13 = vld [vmem:[#allocation13 + $0x7ec] sm:$0xf0] }
 0x607   :  { %3876 = vmatpush.bf16.msra.mxu0 %v6871_v8  ;;  %v6739_v9 = vor.u32 %v8086_v6, %v6738_v5  ;;  %3892 = vmatpush.bf16.msra.mxu1 %v7031_v4  ;;  %v6711_v22 = vor.u32 %v8074_v51, %v6708_v21  ;;  %v6964_v8 = vld [vmem:[#allocation13 + $0x6a8] sm:$0xf0]  ;;  %v2996_v4 = vperm.slane %v6631_v60, 1  ;;  %v7131_v21 = vor.u32 %v8183_v13, %v7130_v56  ;;  %v6746_v60 = vld [vmem:[#allocation13 + $0x4d0] sm:$0xf] }
 0x608   :  { %v6967_v26 = vor.u32 %v8138_v23, %v6964_v8  ;;  %v6970_v13 = vld [vmem:[#allocation13 + $0x690] sm:$0xf] }
 0x609   :  { %3868 = vmatpush.bf16.msrb.mxu3 %v6963_v42  ;;  %v6842_v42 = vld [vmem:[#allocation13 + $0x590] sm:$0xf] }
 0x60a   :  { %3851 = vmatpush.bf16.msrb.mxu2 %v6835_v12  ;;  %v6675_v12 = vor.u32 %v8070_v27, %v6674_v43  ;;  %v8175_v43 = vld [vmem:[#allocation13 + $0x7ac] sm:$0xf0]  ;;  %v8107_v27 = vld [vmem:[#allocation13 + $0x594] sm:$0xf] }
 0x60b   :  { %3877 = vmatpush.bf16.msra.mxu0 %v6839_v36  ;;  %3893 = vmatpush.bf16.msra.mxu1 %v6999_v14  ;;  %v6935_v36 = vor.u32 %v8130_v34, %v6932_v35  ;;  %v8115_v14 = vld [vmem:[#allocation13 + $0x5d4] sm:$0xf]  ;;  %v6847_v34 = vor.u32 %v8107_v27, %v6844_v24  ;;  %v8135_v27 = vld [vmem:[#allocation13 + $0x66c] sm:$0xf0] }
 0x60c   :  { %v6879_v23 = vor.u32 %v8115_v14, %v6876_v48  ;;  %v8143_v14 = vld [vmem:[#allocation13 + $0x6ac] sm:$0xf0]  ;;  %v8075_v48 = vld [vmem:[#allocation13 + $0x494] sm:$0xf] }
 0x60d   :  { %3869 = vmatpush.bf16.msrb.mxu3 %v6931_v32  ;;  %v6810_v32 = vld [vmem:[#allocation13 + $0x550] sm:$0xf]  ;;  %v8067_v24 = vld [vmem:[#allocation13 + $0x454] sm:$0xf] }
 0x60e   :  { %3852 = vmatpush.bf16.msrb.mxu2 %v6803_v40  ;;  %v8126_v40 = vld [vmem:[#allocation13 + $0x624] sm:$0xf0] }
 0x60f   :  { %3878 = vmatpush.bf16.msra.mxu0 %v6807_v47  ;;  %3894 = vmatpush.bf16.msra.mxu1 %v6967_v26  ;;  %v6899_v45 = vor.u32 %v8126_v40, %v6898_v38  ;;  %v8122_v47 = vld [vmem:[#allocation13 + $0x60c] sm:$0xf]  ;;  %v7098_v26 = vld [vmem:[#allocation13 + $0x790] sm:$0xf]  ;;  %v6812_v38 = vld [vmem:[#allocation13 + $0x570] sm:$0xf0] }
 0x610   :  { %v6903_v52 = vor.u32 %v8122_v47, %v6900_v49  ;;  %v7099_v29 = vor.u32 %v8175_v43, %v7098_v26  ;;  %v7068_v40 = vld [vmem:[#allocation13 + $0x770] sm:$0xf0]  ;;  %v6815_v47 = vor.u32 %v8099_v37, %v6812_v38  ;;  %v6938_v43 = vld [vmem:[#allocation13 + $0x650] sm:$0xf] }
 0x611   :  { %3870 = vmatpush.bf16.msrb.mxu3 %v6899_v45  ;;  %v6778_v45 = vld [vmem:[#allocation13 + $0x510] sm:$0xf]  ;;  %v8059_v38 = vld [vmem:[#allocation13 + $0x414] sm:$0xf] }
 0x612   :  { %3853 = vmatpush.bf16.msrb.mxu2 %v6771_v57 }
 0x613   :  { %3879 = vmatpush.bf16.msra.mxu0 %v6775_v62  ;;  %3895 = vmatpush.bf16.msra.mxu1 %v6935_v36  ;;  %v2968_v62 = vld [vmem:[#allocation11 + $0x2] sm:$0x3]  ;;  %v7066_v36 = vld [vmem:[#allocation13 + $0x750] sm:$0xf] }
 0x614   :  { %v3002_v6 = vperm.slane %v2968_v62, 0  ;;  %v3003_v7 = vperm.slane %v2968_v62, 1  ;;  %v7067_v44 = vor.u32 %v8167_v19, %v7066_v36  ;;  %v8127_v36 = vld [vmem:[#allocation13 + $0x62c] sm:$0xf0] }
 0x616   :  { %3854 = vmatpush.bf16.msrb.mxu2 %v6739_v9 }
 0x617   :  { %3880 = vmatpush.bf16.msra.mxu0 %v6743_v11  ;;  %3896 = vmatpush.bf16.msra.mxu1 %v6903_v52  ;;  %v8119_v11 = vld [vmem:[#allocation13 + $0x5ec] sm:$0xf0] }
 0x618   :  { %v7034_v52 = vld [vmem:[#allocation13 + $0x710] sm:$0xf] }
 0x61a   :  { %3855 = vmatpush.bf16.msrb.mxu2 %v6707_v17  ;;  %v8179_v17 = vld [vmem:[#allocation13 + $0x7d4] sm:$0xf] }
 0x61b   :  { %3881 = vmatpush.bf16.msra.mxu0 %v6711_v22  ;;  %v8111_v22 = vld [vmem:[#allocation13 + $0x5ac] sm:$0xf0]  ;;  %v7135_v8 = vor.u32 %v8179_v17, %v7132_v20  ;;  %v6716_v17 = vld [vmem:[#allocation13 + $0x4b0] sm:$0xf0] }
 0x61c   :  { %v6843_v28 = vor.u32 %v8111_v22, %v6842_v42  ;;  %v8139_v20 = vld [vmem:[#allocation13 + $0x694] sm:$0xf]  ;;  %v6971_v42 = vor.u32 %v8143_v14, %v6970_v13  ;;  %v6682_v22 = vld [vmem:[#allocation13 + $0x450] sm:$0xf]  ;;  %v7074_v14 = vld [vmem:[#allocation13 + $0x758] sm:$0xf] }
 0x61e   :  { %3856 = vmatpush.bf16.msrb.mxu2 %v6675_v12  ;;  %v8171_v12 = vld [vmem:[#allocation13 + $0x794] sm:$0xf] }
 0x61f   :  { %3882 = vmatpush.bf16.msra.mxu0 %v6679_v15  ;;  %v8103_v15 = vld [vmem:[#allocation13 + $0x56c] sm:$0xf0]  ;;  %v7103_v35 = vor.u32 %v8171_v12, %v7100_v25  ;;  %v6684_v12 = vld [vmem:[#allocation13 + $0x470] sm:$0xf0] }
 0x620   :  { %v6811_v41 = vor.u32 %v8103_v15, %v6810_v32  ;;  %v8131_v25 = vld [vmem:[#allocation13 + $0x654] sm:$0xf]  ;;  %v6939_v15 = vor.u32 %v8135_v27, %v6938_v43  ;;  %v6687_v19 = vor.u32 %v8067_v24, %v6684_v12  ;;  %v7042_v27 = vld [vmem:[#allocation13 + $0x718] sm:$0xf]  ;;  %v8092_v12 = vld [vmem:[#allocation13 + $0x51c] sm:$0xf] }
 0x621   :  { %v8160_v24 = vld [vmem:[#allocation13 + $0x734] sm:$0xf0] }
 0x622   :  { %3857 = vmatpush.bf16.msrb.mxu2 %v6643_v39  ;;  %v8163_v39 = vld [vmem:[#allocation13 + $0x754] sm:$0xf] }
 0x623   :  { %3883 = vmatpush.bf16.msra.mxu0 %v6647_v46  ;;  %v8095_v46 = vld [vmem:[#allocation13 + $0x52c] sm:$0xf0]  ;;  %v7071_v49 = vor.u32 %v8163_v39, %v7068_v40  ;;  %v6652_v39 = vld [vmem:[#allocation13 + $0x430] sm:$0xf0] }
 0x624   :  { %v8123_v40 = vld [vmem:[#allocation13 + $0x614] sm:$0xf] }
 0x679   :  { %v2979_v53 = vpop.xlane.xlu2 %2978 }
 0x67a   :  { %v2980_v54 = vmul.f32 %v2979_v53, %v8887_v2  ;;  %v8159_v53 = vld [vmem:[#allocation13 + $0x72c] sm:$0xf0] }
 0x67c   :  { %v2981_v50 = vadd.f32 1e-05, %v2980_v54  ;;  %v8091_v54 = vld [vmem:[#allocation13 + $0x514] sm:$0xf] }
 0x67e   :  { %8360 = vrsqrt.f32 %v2981_v50  ;;  %vm2988_vm8 = vweird.f32 %v2981_v50 }
 0x684   :  { %v8361_v55 = vpop.eup %8360 }
 0x685   :  { %v2983_v57 = vmul.f32 %v8361_v55, %v2981_v50  ;;  %vm2989_vm7 = vweird.f32 %v8361_v55  ;;  %v6780_v50 = vld [vmem:[#allocation13 + $0x530] sm:$0xf0] }
 0x686   :  { %vm2990_vm9 = vmor %vm2988_vm8, %vm2989_vm7  ;;  %v6783_v62 = vor.u32 %v8091_v54, %v6780_v50  ;;  %v6884_v54 = vld [vmem:[#allocation13 + $0x5f8] sm:$0xf0] }
 0x687   :  { %v2984_v58 = vmul.f32 %v8361_v55, %v2983_v57  ;;  %v7036_v57 = vld [vmem:[#allocation13 + $0x730] sm:$0xf0]  ;;  %v8180_v50 = vld [vmem:[#allocation13 + $0x7dc] sm:$0xf] }
 0x689   :  { %v2985_v59 = vmul.f32 0.5, %v2984_v58  ;;  %v6779_v58 = vor.u32 %v8095_v46, %v6778_v45  ;;  %v8120_v45 = vld [vmem:[#allocation13 + $0x5f4] sm:$0xf0] }
 0x68a   :  { %v7138_v46 = vld [vmem:[#allocation13 + $0x7d8] sm:$0xf] }
 0x68b   :  { %v2986_v61 = vsub.f32 1.5, %v2985_v59  ;;  %v7035_v59 = vor.u32 %v8159_v53, %v7034_v52 }
 0x68d   :  { %v2987_v63 = vmul.f32 %v8361_v55, %v2986_v61  ;;  %v8087_v61 = vld [vmem:[#allocation13 + $0x4ec] sm:$0xf0] }
 0x68f   :  { %v2991_v5 = vsel %vm2990_vm9, %v8361_v55, %v2987_v63  ;;  %v8155_v55 = vld [vmem:[#allocation13 + $0x714] sm:$0xf] }
 0x690   :  { %v2992_v9 = vmul.f32 %v2991_v5, %v8997_v0  ;;  %v2993_v30 = vmul.f32 %v2991_v5, %v9000_v1  ;;  %v6875_v1 = vor.u32 %v8119_v11, %v6874_v31  ;;  %v7039_v63 = vor.u32 %v8155_v55, %v7036_v57  ;;  %v8083_v5 = vld [vmem:[#allocation13 + $0x4d4] sm:$0xf]  ;;  %v8079_v31 = vld [vmem:[#allocation13 + $0x4ac] sm:$0xf0]  ;;  %v7140_v55 = vld [vmem:[#allocation13 + $0x7f8] sm:$0xf0] }
 0x691   :  { %v6655_v57 = vor.u32 %v8059_v38, %v6652_v39  ;;  %v8152_v38 = vld [vmem:[#allocation13 + $0x6f4] sm:$0xf0]  ;;  %v8084_v39 = vld [vmem:[#allocation13 + $0x4dc] sm:$0xf] }
 0x692   :  { %v2999_v18 = vmul.f32 %v2995_v3, %v2992_v9  ;;  %v3000_v10 = vmul.f32 %v2996_v4, %v2993_v30  ;;  %v7002_v3 = vld [vmem:[#allocation13 + $0x6d0] sm:$0xf]  ;;  %v7004_v9 = vld [vmem:[#allocation13 + $0x6f0] sm:$0xf0]  ;;  %v6747_v30 = vor.u32 %v8087_v61, %v6746_v60  ;;  %v6850_v61 = vld [vmem:[#allocation13 + $0x598] sm:$0xf] }
 0x693   :  { %v8151_v4 = vld [vmem:[#allocation13 + $0x6ec] sm:$0xf0] }
 0x694   :  { %v9012_v33 = vadd.f32 %v3002_v6, %v2999_v18  ;;  %v9014_v16 = vadd.f32 %v3003_v7, %v3000_v10  ;;  %v6748_v6 = vld [vmem:[#allocation13 + $0x4f0] sm:$0xf0]  ;;  %v7003_v18 = vor.u32 %v8151_v4, %v7002_v3  ;;  %v6714_v10 = vld [vmem:[#allocation13 + $0x490] sm:$0xf]  ;;  %v7143_v3 = vor.u32 %v8180_v50, %v7140_v55  ;;  %v7106_v4 = vld [vmem:[#allocation13 + $0x798] sm:$0xf] }
 0x695   :  { %v8147_v7 = vld [vmem:[#allocation13 + $0x6d4] sm:$0xf]  ;;  %v6751_v11 = vor.u32 %v8083_v5, %v6748_v6  ;;  %v8176_v5 = vld [vmem:[#allocation13 + $0x7b4] sm:$0xf0]  ;;  %v8108_v6 = vld [vmem:[#allocation13 + $0x59c] sm:$0xf] }
 0x696   :  { %v9018_v51 = vpack.c.bf16 %v9012_v33, %v9012_v33  ;;  %v9022_v0 = vpack.c.bf16 %v9014_v16, %v9014_v16  ;;  %v7007_v56 = vor.u32 %v8147_v7, %v7004_v9  ;;  %v6852_v7 = vld [vmem:[#allocation13 + $0x5b8] sm:$0xf0]  ;;  %v8144_v50 = vld [vmem:[#allocation13 + $0x6b4] sm:$0xf0] }
 0x697   :  { %v8172_v9 = vld [vmem:[#allocation13 + $0x79c] sm:$0xf] }
 0x698   :  { %3806 = vmatmul.bf16.vlgmr.msra.gmra.mxu2 %v9018_v51  ;;  %3819 = vmatmul.bf16.vlgmr.msra.gmra.mxu3 %v9022_v0  ;;  %v8076_v55 = vld [vmem:[#allocation13 + $0x49c] sm:$0xf] }
 0x699   :  { %3832 = vmatmul.bf16.vlgmr.msrb.gmra.mxu0 %v9018_v51  ;;  %3845 = vmatmul.bf16.vlgmr.msrb.gmra.mxu1 %v9022_v0 }
 0x69a   :  { %3902 = vmatpush.bf16.msra.mxu2 %v6875_v1  ;;  %3915 = vmatpush.bf16.msra.mxu3 %v7131_v21  ;;  %v6972_v1 = vld [vmem:[#allocation13 + $0x6b0] sm:$0xf0]  ;;  %v6715_v21 = vor.u32 %v8079_v31, %v6714_v10  ;;  %v7107_v10 = vor.u32 %v8176_v5, %v7106_v4  ;;  %v6818_v31 = vld [vmem:[#allocation13 + $0x558] sm:$0xf] }
 0x69b   :  { %3928 = vmatpush.bf16.msrb.mxu0 %v6879_v23  ;;  %3941 = vmatpush.bf16.msrb.mxu1 %v7135_v8  ;;  %v8071_v23 = vld [vmem:[#allocation13 + $0x46c] sm:$0xf0]  ;;  %v6719_v8 = vor.u32 %v8075_v48, %v6716_v17  ;;  %v6975_v26 = vor.u32 %v8139_v20, %v6972_v1  ;;  %v8168_v48 = vld [vmem:[#allocation13 + $0x774] sm:$0xf0]  ;;  %v8100_v17 = vld [vmem:[#allocation13 + $0x55c] sm:$0xf] }
 0x69c   :  { %v6683_v32 = vor.u32 %v8071_v23, %v6682_v22  ;;  %v6820_v20 = vld [vmem:[#allocation13 + $0x578] sm:$0xf0]  ;;  %v7075_v22 = vor.u32 %v8168_v48, %v7074_v14  ;;  %v6786_v23 = vld [vmem:[#allocation13 + $0x518] sm:$0xf] }
 0x69d   :  { %v8164_v1 = vld [vmem:[#allocation13 + $0x75c] sm:$0xf]  ;;  %v6946_v5 = vld [vmem:[#allocation13 + $0x658] sm:$0xf] }
 0x69e   :  { %3903 = vmatpush.bf16.msra.mxu2 %v6843_v28  ;;  %3916 = vmatpush.bf16.msra.mxu3 %v7099_v29  ;;  %v6940_v28 = vld [vmem:[#allocation13 + $0x670] sm:$0xf0]  ;;  %v6650_v29 = vld [vmem:[#allocation13 + $0x410] sm:$0xf] }
 0x69f   :  { %3929 = vmatpush.bf16.msrb.mxu0 %v6847_v34  ;;  %3942 = vmatpush.bf16.msrb.mxu1 %v7103_v35  ;;  %v8063_v34 = vld [vmem:[#allocation13 + $0x42c] sm:$0xf0]  ;;  %v6943_v37 = vor.u32 %v8131_v25, %v6940_v28  ;;  %v6788_v25 = vld [vmem:[#allocation13 + $0x538] sm:$0xf0] }
 0x6a0   :  { %v6906_v35 = vld [vmem:[#allocation13 + $0x610] sm:$0xf]  ;;  %v6651_v52 = vor.u32 %v8063_v34, %v6650_v29  ;;  %v8156_v28 = vld [vmem:[#allocation13 + $0x71c] sm:$0xf]  ;;  %v6754_v34 = vld [vmem:[#allocation13 + $0x4d8] sm:$0xf] }
 0x6a1   :  { %v6907_v53 = vor.u32 %v8127_v36, %v6906_v35  ;;  %v7044_v29 = vld [vmem:[#allocation13 + $0x738] sm:$0xf0]  ;;  %v8088_v35 = vld [vmem:[#allocation13 + $0x4f4] sm:$0xf0]  ;;  %v6791_v36 = vor.u32 %v8092_v12, %v6788_v25 }
 0x6a2   :  { %3904 = vmatpush.bf16.msra.mxu2 %v6811_v41  ;;  %3917 = vmatpush.bf16.msra.mxu3 %v7067_v44  ;;  %v6908_v41 = vld [vmem:[#allocation13 + $0x630] sm:$0xf0]  ;;  %v6882_v44 = vld [vmem:[#allocation13 + $0x5d8] sm:$0xf] }
 0x6a3   :  { %3930 = vmatpush.bf16.msrb.mxu0 %v6815_v47  ;;  %3943 = vmatpush.bf16.msrb.mxu1 %v7071_v49  ;;  %v8184_v47 = vld [vmem:[#allocation13 + $0x7f4] sm:$0xf0]  ;;  %v8116_v49 = vld [vmem:[#allocation13 + $0x5dc] sm:$0xf] }
 0x6a4   :  { %v7139_v60 = vor.u32 %v8184_v47, %v7138_v46  ;;  %v6722_v47 = vld [vmem:[#allocation13 + $0x498] sm:$0xf] }
 0x6a6   :  { %3905 = vmatpush.bf16.msra.mxu2 %v6779_v58  ;;  %3918 = vmatpush.bf16.msra.mxu3 %v7035_v59  ;;  %v6911_v58 = vor.u32 %v8123_v40, %v6908_v41  ;;  %v6883_v59 = vor.u32 %v8120_v45, %v6882_v44  ;;  %v6756_v40 = vld [vmem:[#allocation13 + $0x4f8] sm:$0xf0]  ;;  %v6755_v45 = vor.u32 %v8088_v35, %v6754_v34  ;;  %v8214_v34 = vld [vmem:[#allocation16 + $0x4e4] sm:$0xf0]  ;;  %v7195_v35 = vld [vmem:[#allocation16 + $0x460] sm:$0xf] }
 0x6a7   :  { %3931 = vmatpush.bf16.msrb.mxu0 %v6783_v62  ;;  %3944 = vmatpush.bf16.msrb.mxu1 %v7039_v63  ;;  %v8112_v62 = vld [vmem:[#allocation13 + $0x5b4] sm:$0xf0]  ;;  %v6887_v63 = vor.u32 %v8116_v49, %v6884_v54  ;;  %v8148_v41 = vld [vmem:[#allocation13 + $0x6dc] sm:$0xf] }
 0x6a8   :  { %3858 = vmatmul.bf16.vlgmr.msrb.gmra.mxu2 %v9018_v51  ;;  %3871 = vmatmul.bf16.vlgmr.msrb.gmra.mxu3 %v9022_v0  ;;  %v7012_v44 = vld [vmem:[#allocation13 + $0x6f8] sm:$0xf0]  ;;  %v8080_v49 = vld [vmem:[#allocation13 + $0x4b4] sm:$0xf0] }
 0x6a9   :  { %3884 = vmatmul.bf16.vlgmr.msra.gmra.mxu0 %v9018_v51  ;;  %3897 = vmatmul.bf16.vlgmr.msra.gmra.mxu1 %v9022_v0  ;;  %v6978_v54 = vld [vmem:[#allocation13 + $0x698] sm:$0xf] }
 0x6aa   :  { %3906 = vmatpush.bf16.msra.mxu2 %v6747_v30  ;;  %3919 = vmatpush.bf16.msra.mxu3 %v7003_v18  ;;  %v7108_v30 = vld [vmem:[#allocation13 + $0x7b8] sm:$0xf0]  ;;  %v6851_v18 = vor.u32 %v8112_v62, %v6850_v61  ;;  %v6979_v61 = vor.u32 %v8144_v50, %v6978_v54  ;;  %v6690_v62 = vld [vmem:[#allocation13 + $0x458] sm:$0xf] }
 0x6ab   :  { %3932 = vmatpush.bf16.msrb.mxu0 %v6751_v11  ;;  %3945 = vmatpush.bf16.msrb.mxu1 %v7007_v56  ;;  %v8104_v11 = vld [vmem:[#allocation13 + $0x574] sm:$0xf0]  ;;  %v6855_v56 = vor.u32 %v8108_v6, %v6852_v7  ;;  %v7111_v13 = vor.u32 %v8172_v9, %v7108_v30  ;;  %v8068_v7 = vld [vmem:[#allocation13 + $0x45c] sm:$0xf] }
 0x6ac   :  { %v8136_v6 = vld [vmem:[#allocation13 + $0x674] sm:$0xf0]  ;;  %v6692_v9 = vld [vmem:[#allocation13 + $0x478] sm:$0xf0] }
 0x6ad   :  { %v8132_v30 = vld [vmem:[#allocation13 + $0x65c] sm:$0xf]  ;;  %v6695_v14 = vor.u32 %v8068_v7, %v6692_v9  ;;  %v7171_v7 = vld [vmem:[#allocation16 + $0x430] sm:$0xf]  ;;  %v7371_v9 = vld [vmem:[#allocation16 + $0x5c0] sm:$0xf] }
 0x6ae   :  { %3907 = vmatpush.bf16.msra.mxu2 %v6715_v21  ;;  %3920 = vmatpush.bf16.msra.mxu3 %v6971_v42  ;;  %v7076_v21 = vld [vmem:[#allocation13 + $0x778] sm:$0xf0]  ;;  %v6819_v42 = vor.u32 %v8104_v11, %v6818_v31  ;;  %v6947_v31 = vor.u32 %v8136_v6, %v6946_v5  ;;  %v6658_v11 = vld [vmem:[#allocation13 + $0x418] sm:$0xf] }
 0x6af   :  { %3933 = vmatpush.bf16.msrb.mxu0 %v6719_v8  ;;  %3946 = vmatpush.bf16.msrb.mxu1 %v6975_v26  ;;  %v8096_v8 = vld [vmem:[#allocation13 + $0x534] sm:$0xf0]  ;;  %v6823_v26 = vor.u32 %v8100_v17, %v6820_v20  ;;  %v7079_v43 = vor.u32 %v8164_v1, %v7076_v21  ;;  %v8060_v20 = vld [vmem:[#allocation13 + $0x41c] sm:$0xf] }
 0x6b0   :  { %v8128_v17 = vld [vmem:[#allocation13 + $0x634] sm:$0xf0]  ;;  %v6660_v1 = vld [vmem:[#allocation13 + $0x438] sm:$0xf0] }
 0x6b1   :  { %v8124_v21 = vld [vmem:[#allocation13 + $0x61c] sm:$0xf] }
 0x6b2   :  { %3908 = vmatpush.bf16.msra.mxu2 %v6683_v32  ;;  %3921 = vmatpush.bf16.msra.mxu3 %v6939_v15  ;;  %v6787_v32 = vor.u32 %v8096_v8, %v6786_v23  ;;  %v7043_v15 = vor.u32 %v8160_v24, %v7042_v27  ;;  %v8216_v23 = vld [vmem:[#allocation16 + $0x4f4] sm:$0xf0]  ;;  %v7203_v8 = vld [vmem:[#allocation16 + $0x470] sm:$0xf]  ;;  %v6663_v24 = vor.u32 %v8060_v20, %v6660_v1  ;;  %v8206_v1 = vld [vmem:[#allocation16 + $0x4a4] sm:$0xf0] }
 0x6b3   :  { %3934 = vmatpush.bf16.msrb.mxu0 %v6687_v19  ;;  %3947 = vmatpush.bf16.msrb.mxu1 %v6943_v37  ;;  %v7047_v19 = vor.u32 %v8156_v28, %v7044_v29  ;;  %v7010_v37 = vld [vmem:[#allocation13 + $0x6d8] sm:$0xf]  ;;  %v7259_v28 = vld [vmem:[#allocation16 + $0x4e0] sm:$0xf]  ;;  %v8240_v20 = vld [vmem:[#allocation16 + $0x5b4] sm:$0xf0] }
 0x6b4   :  { %v7011_v46 = vor.u32 %v8152_v38, %v7010_v37  ;;  %v7260_v38 = vor.u32 %v8214_v34, %v7259_v28  ;;  %v8202_v28 = vld [vmem:[#allocation16 + $0x484] sm:$0xf0] }
 0x6b5   :  { %v8186_v34 = vld [vmem:[#allocation16 + $0x404] sm:$0xf0] }
 0x6b6   :  { %3909 = vmatpush.bf16.msra.mxu2 %v6651_v52  ;;  %3922 = vmatpush.bf16.msra.mxu3 %v6907_v53  ;;  %v6759_v52 = vor.u32 %v8084_v39, %v6756_v40  ;;  %v7015_v53 = vor.u32 %v8148_v41, %v7012_v44  ;;  %v8212_v39 = vld [vmem:[#allocation16 + $0x4d4] sm:$0xf0]  ;;  %v7387_v41 = vld [vmem:[#allocation16 + $0x5e0] sm:$0xf]  ;;  %v8246_v44 = vld [vmem:[#allocation16 + $0x5e4] sm:$0xf0] }
 0x6b7   :  { %3935 = vmatpush.bf16.msrb.mxu0 %v6655_v57  ;;  %3948 = vmatpush.bf16.msrb.mxu1 %v6911_v58  ;;  %v6724_v57 = vld [vmem:[#allocation13 + $0x4b8] sm:$0xf0]  ;;  %v7388_v54 = vor.u32 %v8246_v44, %v7387_v41  ;;  %v8278_v44 = vld [vmem:[#allocation16 + $0x6e4] sm:$0xf0] }
 0x6b8   :  { %v8140_v58 = vld [vmem:[#allocation13 + $0x69c] sm:$0xf] }
 0x6b9   :  { %3910 = vmatmul.bf16.vlgmr.msra.gmra.mxu2 %v9018_v51  ;;  %3923 = vmatmul.bf16.vlgmr.msra.gmra.mxu3 %v9022_v0 }
 0x6ba   :  { %3954 = vmatpush.bf16.msrb.mxu2 %v6883_v59  ;;  %3967 = vmatpush.bf16.msrb.mxu3 %v7139_v60  ;;  %v6980_v59 = vld [vmem:[#allocation13 + $0x6b8] sm:$0xf0]  ;;  %v6723_v60 = vor.u32 %v8080_v49, %v6722_v47  ;;  %v7331_v47 = vld [vmem:[#allocation16 + $0x570] sm:$0xf]  ;;  %v8232_v49 = vld [vmem:[#allocation16 + $0x574] sm:$0xf0] }
 0x6bb   :  { %3980 = vmatpush.bf16.msra.mxu0 %v6887_v63  ;;  %3993 = vmatpush.bf16.msra.mxu1 %v7143_v3  ;;  %v8072_v63 = vld [vmem:[#allocation13 + $0x474] sm:$0xf0]  ;;  %v6727_v3 = vor.u32 %v8076_v55, %v6724_v57  ;;  %v6983_v4 = vor.u32 %v8140_v58, %v6980_v59  ;;  %v7332_v50 = vor.u32 %v8232_v49, %v7331_v47  ;;  %v7179_v58 = vld [vmem:[#allocation16 + $0x440] sm:$0xf]  ;;  %v7379_v59 = vld [vmem:[#allocation16 + $0x5d0] sm:$0xf] }
 0x6bc   :  { %3936 = vmatmul.bf16.vlgmr.msrb.gmra.mxu0 %v9018_v51  ;;  %3949 = vmatmul.bf16.vlgmr.msrb.gmra.mxu1 %v9022_v0  ;;  %v7507_v49 = vld [vmem:[#allocation16 + $0x6d0] sm:$0xf] }
 0x6be   :  { %3955 = vmatpush.bf16.msrb.mxu2 %v6851_v18  ;;  %3968 = vmatpush.bf16.msrb.mxu3 %v7107_v10  ;;  %v6948_v18 = vld [vmem:[#allocation13 + $0x678] sm:$0xf0]  ;;  %v6691_v10 = vor.u32 %v8072_v63, %v6690_v62  ;;  %v7323_v62 = vld [vmem:[#allocation16 + $0x560] sm:$0xf]  ;;  %v8230_v63 = vld [vmem:[#allocation16 + $0x564] sm:$0xf0] }
 0x6bf   :  { %3981 = vmatpush.bf16.msra.mxu0 %v6855_v56  ;;  %3994 = vmatpush.bf16.msra.mxu1 %v7111_v13  ;;  %v8064_v56 = vld [vmem:[#allocation13 + $0x434] sm:$0xf0]  ;;  %v6951_v48 = vor.u32 %v8132_v30, %v6948_v18  ;;  %v8192_v18 = vld [vmem:[#allocation16 + $0x434] sm:$0xf0] }
 0x6c0   :  { %v6914_v13 = vld [vmem:[#allocation13 + $0x618] sm:$0xf] }
 0x6c1   :  { %v6915_v27 = vor.u32 %v8128_v17, %v6914_v13  ;;  %v8242_v30 = vld [vmem:[#allocation16 + $0x5c4] sm:$0xf0]  ;;  %v7363_v17 = vld [vmem:[#allocation16 + $0x5b0] sm:$0xf] }
 0x6c2   :  { %3956 = vmatpush.bf16.msrb.mxu2 %v6819_v42  ;;  %3969 = vmatpush.bf16.msrb.mxu3 %v7075_v22  ;;  %v6916_v42 = vld [vmem:[#allocation13 + $0x638] sm:$0xf0]  ;;  %v7267_v22 = vld [vmem:[#allocation16 + $0x4f0] sm:$0xf] }
 0x6c3   :  { %3982 = vmatpush.bf16.msra.mxu0 %v6823_v26  ;;  %3995 = vmatpush.bf16.msra.mxu1 %v7079_v43  ;;  %v8200_v26 = vld [vmem:[#allocation16 + $0x474] sm:$0xf0]  ;;  %v6659_v43 = vor.u32 %v8064_v56, %v6658_v11  ;;  %v6919_v12 = vor.u32 %v8124_v21, %v6916_v42  ;;  %v7268_v25 = vor.u32 %v8216_v23, %v7267_v22  ;;  %v7163_v21 = vld [vmem:[#allocation16 + $0x420] sm:$0xf]  ;;  %v8190_v42 = vld [vmem:[#allocation16 + $0x424] sm:$0xf0] }
 0x6c4   :  { %v7204_v29 = vor.u32 %v8200_v26, %v7203_v8  ;;  %v7372_v56 = vor.u32 %v8242_v30, %v7371_v9  ;;  %v7364_v22 = vor.u32 %v8240_v20, %v7363_v17  ;;  %v7219_v8 = vld [vmem:[#allocation16 + $0x490] sm:$0xf]  ;;  %v7164_v26 = vor.u32 %v8190_v42, %v7163_v21  ;;  %v8224_v30 = vld [vmem:[#allocation16 + $0x534] sm:$0xf0]  ;;  %v7483_v17 = vld [vmem:[#allocation16 + $0x6a0] sm:$0xf] }
 0x6c5   :  { %v7299_v9 = vld [vmem:[#allocation16 + $0x530] sm:$0xf]  ;;  %v8222_v21 = vld [vmem:[#allocation16 + $0x524] sm:$0xf0] }
 0x6c6   :  { %3957 = vmatpush.bf16.msrb.mxu2 %v6787_v32  ;;  %3970 = vmatpush.bf16.msrb.mxu3 %v7043_v15  ;;  %v7395_v32 = vld [vmem:[#allocation16 + $0x5f0] sm:$0xf]  ;;  %v8248_v15 = vld [vmem:[#allocation16 + $0x5f4] sm:$0xf0]  ;;  %v8270_v42 = vld [vmem:[#allocation16 + $0x6a4] sm:$0xf0] }
 0x6c7   :  { %3983 = vmatpush.bf16.msra.mxu0 %v6791_v36  ;;  %3996 = vmatpush.bf16.msra.mxu1 %v7047_v19  ;;  %v8198_v36 = vld [vmem:[#allocation16 + $0x464] sm:$0xf0]  ;;  %v7251_v19 = vld [vmem:[#allocation16 + $0x4d0] sm:$0xf]  ;;  %v7396_v37 = vor.u32 %v8248_v15, %v7395_v32  ;;  %v7147_v15 = vld [vmem:[#allocation16 + $0x400] sm:$0xf] }
 0x6c8   :  { %v7196_v40 = vor.u32 %v8198_v36, %v7195_v35  ;;  %v7252_v55 = vor.u32 %v8212_v39, %v7251_v19  ;;  %v7523_v32 = vld [vmem:[#allocation16 + $0x6f0] sm:$0xf]  ;;  %v8280_v35 = vld [vmem:[#allocation16 + $0x6f4] sm:$0xf0] }
 0x6c9   :  { %v7459_v36 = vld [vmem:[#allocation16 + $0x670] sm:$0xf]  ;;  %v8264_v19 = vld [vmem:[#allocation16 + $0x674] sm:$0xf0]  ;;  %v7524_v39 = vor.u32 %v8280_v35, %v7523_v32 }
 0x6ca   :  { %3958 = vmatpush.bf16.msrb.mxu2 %v6755_v45  ;;  %3971 = vmatpush.bf16.msrb.mxu3 %v7011_v46  ;;  %v7187_v45 = vld [vmem:[#allocation16 + $0x450] sm:$0xf]  ;;  %v8196_v46 = vld [vmem:[#allocation16 + $0x454] sm:$0xf0]  ;;  %v7460_v41 = vor.u32 %v8264_v19, %v7459_v36 }
 0x6cb   :  { %3984 = vmatpush.bf16.msra.mxu0 %v6759_v52  ;;  %3997 = vmatpush.bf16.msra.mxu1 %v7015_v53  ;;  %v7243_v52 = vld [vmem:[#allocation16 + $0x4c0] sm:$0xf]  ;;  %v8210_v53 = vld [vmem:[#allocation16 + $0x4c4] sm:$0xf0]  ;;  %v7188_v57 = vor.u32 %v8196_v46, %v7187_v45  ;;  %v8220_v32 = vld [vmem:[#allocation16 + $0x514] sm:$0xf0] }
 0x6cc   :  { %v7244_v5 = vor.u32 %v8210_v53, %v7243_v52  ;;  %v7451_v45 = vld [vmem:[#allocation16 + $0x660] sm:$0xf]  ;;  %v8262_v46 = vld [vmem:[#allocation16 + $0x664] sm:$0xf0]  ;;  %v8276_v53 = vld [vmem:[#allocation16 + $0x6d4] sm:$0xf0] }
 0x6cd   :  { %v7452_v52 = vor.u32 %v8262_v46, %v7451_v45  ;;  %v7411_v19 = vld [vmem:[#allocation16 + $0x610] sm:$0xf]  ;;  %v7275_v46 = vld [vmem:[#allocation16 + $0x500] sm:$0xf] }
 0x6ce   :  { %3959 = vmatpush.bf16.msrb.mxu2 %v6723_v60  ;;  %3972 = vmatpush.bf16.msrb.mxu3 %v6979_v61  ;;  %v8244_v60 = vld [vmem:[#allocation16 + $0x5d4] sm:$0xf0]  ;;  %v8194_v61 = vld [vmem:[#allocation16 + $0x444] sm:$0xf0] }
 0x6cf   :  { %3985 = vmatpush.bf16.msra.mxu0 %v6727_v3  ;;  %3998 = vmatpush.bf16.msra.mxu1 %v6983_v4  ;;  %v7235_v3 = vld [vmem:[#allocation16 + $0x4b0] sm:$0xf]  ;;  %v7380_v4 = vor.u32 %v8244_v60, %v7379_v59  ;;  %v7180_v6 = vor.u32 %v8194_v61, %v7179_v58  ;;  %v7307_v59 = vld [vmem:[#allocation16 + $0x540] sm:$0xf]  ;;  %v8226_v60 = vld [vmem:[#allocation16 + $0x544] sm:$0xf0] }
 0x6d0   :  { %v8274_v61 = vld [vmem:[#allocation16 + $0x6c4] sm:$0xf0] }
 0x6d2   :  { %3960 = vmatpush.bf16.msrb.mxu2 %v6691_v10  ;;  %3973 = vmatpush.bf16.msrb.mxu3 %v6947_v31  ;;  %v7315_v10 = vld [vmem:[#allocation16 + $0x550] sm:$0xf]  ;;  %v8228_v31 = vld [vmem:[#allocation16 + $0x554] sm:$0xf0] }
 0x6d3   :  { %3986 = vmatpush.bf16.msra.mxu0 %v6695_v14  ;;  %3999 = vmatpush.bf16.msra.mxu1 %v6951_v48  ;;  %v7316_v11 = vor.u32 %v8228_v31, %v7315_v10  ;;  %v7227_v14 = vld [vmem:[#allocation16 + $0x4a0] sm:$0xf]  ;;  %v7172_v48 = vor.u32 %v8192_v18, %v7171_v7  ;;  %v8272_v18 = vld [vmem:[#allocation16 + $0x6b4] sm:$0xf0]  ;;  %v7300_v10 = vor.u32 %v8224_v30, %v7299_v9  ;;  %v7427_v31 = vld [vmem:[#allocation16 + $0x630] sm:$0xf] }
 0x6d4   :  { %v7228_v23 = vor.u32 %v8206_v1, %v7227_v14  ;;  %v7291_v1 = vld [vmem:[#allocation16 + $0x520] sm:$0xf]  ;;  %v8292_v9 = vld [vmem:[#allocation16 + $0x754] sm:$0xf0] }
 0x6d6   :  { %3961 = vmatpush.bf16.msrb.mxu2 %v6659_v43  ;;  %3974 = vmatpush.bf16.msrb.mxu3 %v6915_v27  ;;  %v8204_v43 = vld [vmem:[#allocation16 + $0x494] sm:$0xf0]  ;;  %v7155_v27 = vld [vmem:[#allocation16 + $0x410] sm:$0xf] }
 0x6d7   :  { %3987 = vmatpush.bf16.msra.mxu0 %v6663_v24  ;;  %4000 = vmatpush.bf16.msra.mxu1 %v6919_v12  ;;  %v8188_v24 = vld [vmem:[#allocation16 + $0x414] sm:$0xf0]  ;;  %v7220_v12 = vor.u32 %v8204_v43, %v7219_v8  ;;  %v8254_v8 = vld [vmem:[#allocation16 + $0x624] sm:$0xf0] }
 0x6d8   :  { %v8234_v43 = vld [vmem:[#allocation16 + $0x584] sm:$0xf0] }
 0x6d9   :  { %3962 = vmatmul.bf16.vlgmr.msrb.gmra.mxu2 %v9018_v51  ;;  %3975 = vmatmul.bf16.vlgmr.msrb.gmra.mxu3 %v9022_v0 }
 0x6da   :  { %4811 = vmatpush.bf16.msra.mxu3 %v7268_v25  ;;  %4798 = vmatpush.bf16.msra.mxu2 %v7204_v29  ;;  %v7211_v25 = vld [vmem:[#allocation16 + $0x480] sm:$0xf]  ;;  %v7156_v29 = vor.u32 %v8188_v24, %v7155_v27  ;;  %v7651_v24 = vld [vmem:[#allocation16 + $0x7f0] sm:$0xf] }
 0x6db   :  { %3988 = vmatmul.bf16.vlgmr.msra.gmra.mxu0 %v9018_v51  ;;  %4001 = vmatmul.bf16.vlgmr.msra.gmra.mxu1 %v9022_v0  ;;  %v7324_v51 = vor.u32 %v8230_v63, %v7323_v62  ;;  %v8208_v0 = vld [vmem:[#allocation16 + $0x4b4] sm:$0xf0]  ;;  %v7308_v62 = vor.u32 %v8226_v60, %v7307_v59  ;;  %v7435_v63 = vld [vmem:[#allocation16 + $0x640] sm:$0xf] }
 0x6dc   :  { %4837 = vmatpush.bf16.msrb.mxu1 %v7396_v37  ;;  %4824 = vmatpush.bf16.msrb.mxu0 %v7332_v50  ;;  %v7236_v13 = vor.u32 %v8208_v0, %v7235_v3  ;;  %v7212_v37 = vor.u32 %v8202_v28, %v7211_v25  ;;  %v8260_v50 = vld [vmem:[#allocation16 + $0x654] sm:$0xf0]  ;;  %v7355_v3 = vld [vmem:[#allocation16 + $0x5a0] sm:$0xf]  ;;  %v8238_v0 = vld [vmem:[#allocation16 + $0x5a4] sm:$0xf0] }
 0x6dd   :  { %v8312_v28 = vld [vmem:[#allocation16 + $0x7f4] sm:$0xf0] }
 0x6de   :  { %4812 = vmatpush.bf16.msra.mxu3 %v7260_v38  ;;  %4799 = vmatpush.bf16.msra.mxu2 %v7196_v40  ;;  %v7148_v38 = vor.u32 %v8186_v34, %v7147_v15  ;;  %v7515_v40 = vld [vmem:[#allocation16 + $0x6e0] sm:$0xf]  ;;  %v7475_v15 = vld [vmem:[#allocation16 + $0x690] sm:$0xf]  ;;  %v8268_v34 = vld [vmem:[#allocation16 + $0x694] sm:$0xf0]  ;;  %v7652_v35 = vor.u32 %v8312_v28, %v7651_v24 }
 0x6df   :  { %v7516_v47 = vor.u32 %v8278_v44, %v7515_v40  ;;  %v7476_v40 = vor.u32 %v8268_v34, %v7475_v15  ;;  %v8308_v59 = vld [vmem:[#allocation16 + $0x7d4] sm:$0xf0] }
 0x6e0   :  { %4838 = vmatpush.bf16.msrb.mxu1 %v7388_v54  ;;  %4825 = vmatpush.bf16.msrb.mxu0 %v7324_v51  ;;  %v7443_v54 = vld [vmem:[#allocation16 + $0x650] sm:$0xf]  ;;  %v8258_v51 = vld [vmem:[#allocation16 + $0x644] sm:$0xf0] }
 0x6e1   :  { %v7444_v58 = vor.u32 %v8260_v50, %v7443_v54  ;;  %v7436_v7 = vor.u32 %v8258_v51, %v7435_v63  ;;  %v8250_v54 = vld [vmem:[#allocation16 + $0x604] sm:$0xf0]  ;;  %v7587_v50 = vld [vmem:[#allocation16 + $0x770] sm:$0xf]  ;;  %v7579_v63 = vld [vmem:[#allocation16 + $0x760] sm:$0xf] }
 0x6e2   :  { %4813 = vmatpush.bf16.msra.mxu3 %v7252_v55  ;;  %4800 = vmatpush.bf16.msra.mxu2 %v7188_v57  ;;  %v7508_v55 = vor.u32 %v8276_v53, %v7507_v49  ;;  %v7499_v57 = vld [vmem:[#allocation16 + $0x6c0] sm:$0xf]  ;;  %v8266_v49 = vld [vmem:[#allocation16 + $0x684] sm:$0xf0] }
 0x6e3   :  { %v7403_v53 = vld [vmem:[#allocation16 + $0x600] sm:$0xf]  ;;  %v8294_v51 = vld [vmem:[#allocation16 + $0x764] sm:$0xf0] }
 0x6e4   :  { %4839 = vmatpush.bf16.msrb.mxu1 %v7380_v4  ;;  %4826 = vmatpush.bf16.msrb.mxu0 %v7316_v11  ;;  %v7356_v4 = vor.u32 %v8238_v0, %v7355_v3  ;;  %v8256_v11 = vld [vmem:[#allocation16 + $0x634] sm:$0xf0]  ;;  %v7580_v3 = vor.u32 %v8294_v51, %v7579_v63  ;;  %v7627_v0 = vld [vmem:[#allocation16 + $0x7c0] sm:$0xf]  ;;  %v7197_v63 = vld [vmem:[#allocation16 + $0x468] sm:$0xf0] }
 0x6e5   :  { %v7428_v20 = vor.u32 %v8256_v11, %v7427_v31 }
 0x6e6   :  { %4814 = vmatpush.bf16.msra.mxu3 %v7244_v5  ;;  %4801 = vmatpush.bf16.msra.mxu2 %v7180_v6  ;;  %v7500_v5 = vor.u32 %v8274_v61, %v7499_v57  ;;  %v7491_v6 = vld [vmem:[#allocation16 + $0x6b0] sm:$0xf]  ;;  %v7404_v61 = vor.u32 %v8250_v54, %v7403_v53 }
 0x6e8   :  { %4840 = vmatpush.bf16.msrb.mxu1 %v7372_v56  ;;  %4827 = vmatpush.bf16.msrb.mxu0 %v7308_v62  ;;  %v7347_v56 = vld [vmem:[#allocation16 + $0x590] sm:$0xf] }
 0x6ea   :  { %4815 = vmatpush.bf16.msra.mxu3 %v7236_v13  ;;  %4802 = vmatpush.bf16.msra.mxu2 %v7172_v48  ;;  %v8236_v13 = vld [vmem:[#allocation16 + $0x594] sm:$0xf0]  ;;  %v7492_v48 = vor.u32 %v8272_v18, %v7491_v6  ;;  %v7619_v18 = vld [vmem:[#allocation16 + $0x7b0] sm:$0xf] }
 0x6eb   :  { %v7348_v14 = vor.u32 %v8236_v13, %v7347_v56  ;;  %v9040_v6 = vld [vmem:[#allocation14 + $0x8] sm:$0xff]  ;;  %v7563_v56 = vld [vmem:[#allocation16 + $0x740] sm:$0xf]  ;;  %v8290_v13 = vld [vmem:[#allocation16 + $0x744] sm:$0xf0] }
 0x6ec   :  { %4841 = vmatpush.bf16.msrb.mxu1 %v7364_v22  ;;  %4828 = vmatpush.bf16.msrb.mxu0 %v7300_v10  ;;  %v7292_v22 = vor.u32 %v8222_v21, %v7291_v1  ;;  %v8304_v10 = vld [vmem:[#allocation16 + $0x7b4] sm:$0xf0]  ;;  %v3143_v31 = vperm.slane %v9040_v6, 1  ;;  %v8302_v1 = vld [vmem:[#allocation16 + $0x7a4] sm:$0xf0] }
 0x6ed   :  { %v7620_v11 = vor.u32 %v8304_v10, %v7619_v18  ;;  %v8209_v18 = vld [vmem:[#allocation16 + $0x4c4] sm:$0xf]  ;;  %v7245_v10 = vld [vmem:[#allocation16 + $0x4c8] sm:$0xf0] }
 0x6ee   :  { %4816 = vmatpush.bf16.msra.mxu3 %v7228_v23  ;;  %4803 = vmatpush.bf16.msra.mxu2 %v7164_v26  ;;  %v7419_v23 = vld [vmem:[#allocation16 + $0x620] sm:$0xf] }
 0x6ef   :  { %v7339_v26 = vld [vmem:[#allocation16 + $0x580] sm:$0xf]  ;;  %v7420_v25 = vor.u32 %v8254_v8, %v7419_v23  ;;  %v7555_v23 = vld [vmem:[#allocation16 + $0x730] sm:$0xf]  ;;  %v8288_v8 = vld [vmem:[#allocation16 + $0x734] sm:$0xf0] }
 0x6f0   :  { %4842 = vmatpush.bf16.msrb.mxu1 %v7356_v4  ;;  %4829 = vmatpush.bf16.msrb.mxu0 %v7292_v22  ;;  %v7340_v27 = vor.u32 %v8234_v43, %v7339_v26  ;;  %v8306_v4 = vld [vmem:[#allocation16 + $0x7c4] sm:$0xf0]  ;;  %v3142_v22 = vperm.slane %v9040_v6, 0  ;;  %v8215_v43 = vld [vmem:[#allocation16 + $0x4f4] sm:$0xf]  ;;  %v7556_v24 = vor.u32 %v8288_v8, %v7555_v23 }
 0x6f1   :  { %v8247_v23 = vld [vmem:[#allocation16 + $0x5f4] sm:$0xf]  ;;  %v7397_v8 = vld [vmem:[#allocation16 + $0x5f8] sm:$0xf0] }
 0x6f2   :  { %4817 = vmatpush.bf16.msra.mxu3 %v7220_v12  ;;  %4804 = vmatpush.bf16.msra.mxu2 %v7156_v29  ;;  %v7484_v12 = vor.u32 %v8270_v42, %v7483_v17  ;;  %v7283_v29 = vld [vmem:[#allocation16 + $0x510] sm:$0xf] }
 0x6f3   :  { %v7284_v36 = vor.u32 %v8220_v32, %v7283_v29 }
 0x6f4   :  { %4843 = vmatpush.bf16.msrb.mxu1 %v7348_v14  ;;  %v7564_v14 = vor.u32 %v8290_v13, %v7563_v56  ;;  %v8195_v13 = vld [vmem:[#allocation16 + $0x454] sm:$0xf] }
 0x6f5   :  { %4830 = vmatpush.bf16.msrb.mxu0 %v7284_v36  ;;  %v7547_v36 = vld [vmem:[#allocation16 + $0x720] sm:$0xf] }
 0x6f6   :  { %4818 = vmatpush.bf16.msra.mxu3 %v7212_v37  ;;  %4805 = vmatpush.bf16.msra.mxu2 %v7148_v38  ;;  %v8252_v37 = vld [vmem:[#allocation16 + $0x614] sm:$0xf0]  ;;  %v7643_v38 = vld [vmem:[#allocation16 + $0x7e0] sm:$0xf] }
 0x6f7   :  { %v7412_v44 = vor.u32 %v8252_v37, %v7411_v19  ;;  %v8286_v19 = vld [vmem:[#allocation16 + $0x724] sm:$0xf0] }
 0x6f8   :  { %4844 = vmatpush.bf16.msrb.mxu1 %v7340_v27  ;;  %v7269_v27 = vld [vmem:[#allocation16 + $0x4f8] sm:$0xf0] }
 0x6fa   :  { %4863 = vmatpush.bf16.msrb.mxu3 %v7524_v39  ;;  %4850 = vmatpush.bf16.msrb.mxu2 %v7460_v41  ;;  %v8310_v39 = vld [vmem:[#allocation16 + $0x7e4] sm:$0xf0]  ;;  %v7467_v41 = vld [vmem:[#allocation16 + $0x680] sm:$0xf] }
 0x6fb   :  { %v7644_v45 = vor.u32 %v8310_v39, %v7643_v38  ;;  %v7468_v60 = vor.u32 %v8266_v49, %v7467_v41  ;;  %v8213_v38 = vld [vmem:[#allocation16 + $0x4e4] sm:$0xf]  ;;  %v7261_v39 = vld [vmem:[#allocation16 + $0x4e8] sm:$0xf0]  ;;  %v7548_v41 = vor.u32 %v8286_v19, %v7547_v36  ;;  %v7595_v49 = vld [vmem:[#allocation16 + $0x780] sm:$0xf] }
 0x6fc   :  { %4889 = vmatpush.bf16.msra.mxu1 %v7652_v35  ;;  %v7272_v35 = vor.u32 %v8215_v43, %v7269_v27  ;;  %v7181_v43 = vld [vmem:[#allocation16 + $0x448] sm:$0xf0]  ;;  %v8191_v36 = vld [vmem:[#allocation16 + $0x434] sm:$0xf] }
 0x6fe   :  { %4864 = vmatpush.bf16.msrb.mxu3 %v7516_v47  ;;  %4851 = vmatpush.bf16.msrb.mxu2 %v7452_v52  ;;  %v8218_v47 = vld [vmem:[#allocation16 + $0x504] sm:$0xf0] }
 0x6ff   :  { %v7276_v52 = vor.u32 %v8218_v47, %v7275_v46  ;;  %v7205_v47 = vld [vmem:[#allocation16 + $0x478] sm:$0xf0] }
 0x700   :  { %4890 = vmatpush.bf16.msra.mxu1 %v7644_v45 }
 0x701   :  { %4831 = vmatpush.bf16.msrb.mxu0 %v7276_v52  ;;  %v8298_v52 = vld [vmem:[#allocation16 + $0x784] sm:$0xf0] }
 0x702   :  { %4865 = vmatpush.bf16.msrb.mxu3 %v7508_v55  ;;  %4852 = vmatpush.bf16.msrb.mxu2 %v7444_v58  ;;  %v8296_v55 = vld [vmem:[#allocation16 + $0x774] sm:$0xf0]  ;;  %v7635_v58 = vld [vmem:[#allocation16 + $0x7d0] sm:$0xf]  ;;  %v7596_v53 = vor.u32 %v8298_v52, %v7595_v49 }
 0x703   :  { %v7588_v57 = vor.u32 %v8296_v55, %v7587_v50  ;;  %v7636_v62 = vor.u32 %v8308_v59, %v7635_v58  ;;  %v7264_v50 = vor.u32 %v8213_v38, %v7261_v39  ;;  %v7539_v55 = vld [vmem:[#allocation16 + $0x710] sm:$0xf]  ;;  %v8211_v58 = vld [vmem:[#allocation16 + $0x4d4] sm:$0xf]  ;;  %v7253_v59 = vld [vmem:[#allocation16 + $0x4d8] sm:$0xf0] }
 0x705   :  { %4876 = vmatpush.bf16.msra.mxu0 %v7588_v57  ;;  %4891 = vmatpush.bf16.msra.mxu1 %v7636_v62  ;;  %v8197_v62 = vld [vmem:[#allocation16 + $0x464] sm:$0xf] }
 0x706   :  { %4866 = vmatpush.bf16.msrb.mxu3 %v7500_v5  ;;  %4853 = vmatpush.bf16.msrb.mxu2 %v7436_v7  ;;  %v7628_v5 = vor.u32 %v8306_v4, %v7627_v0  ;;  %v7571_v7 = vld [vmem:[#allocation16 + $0x750] sm:$0xf]  ;;  %v3145_v4 = vperm.slane %v9040_v6, 3 }
 0x707   :  { %v7572_v30 = vor.u32 %v8292_v9, %v7571_v7  ;;  %v7531_v7 = vld [vmem:[#allocation16 + $0x700] sm:$0xf]  ;;  %v8282_v9 = vld [vmem:[#allocation16 + $0x704] sm:$0xf0] }
 0x709   :  { %4877 = vmatpush.bf16.msra.mxu0 %v7580_v3  ;;  %4892 = vmatpush.bf16.msra.mxu1 %v7628_v5  ;;  %v7256_v5 = vor.u32 %v8211_v58, %v7253_v59  ;;  %v7165_v58 = vld [vmem:[#allocation16 + $0x428] sm:$0xf0] }
 0x70a   :  { %4867 = vmatpush.bf16.msrb.mxu3 %v7492_v48  ;;  %4854 = vmatpush.bf16.msrb.mxu2 %v7428_v20  ;;  %v7611_v20 = vld [vmem:[#allocation16 + $0x7a0] sm:$0xf] }
 0x70b   :  { %v7612_v42 = vor.u32 %v8302_v1, %v7611_v20  ;;  %v7248_v20 = vor.u32 %v8209_v18, %v7245_v10  ;;  %v8207_v1 = vld [vmem:[#allocation16 + $0x4b4] sm:$0xf] }
 0x70c   :  { %v8187_v18 = vld [vmem:[#allocation16 + $0x414] sm:$0xf] }
 0x70d   :  { %4878 = vmatpush.bf16.msra.mxu0 %v7572_v30  ;;  %4893 = vmatpush.bf16.msra.mxu1 %v7620_v11  ;;  %v7200_v30 = vor.u32 %v8197_v62, %v7197_v63  ;;  %v7381_v62 = vld [vmem:[#allocation16 + $0x5d8] sm:$0xf0] }
 0x70e   :  { %4868 = vmatpush.bf16.msrb.mxu3 %v7484_v12  ;;  %4855 = vmatpush.bf16.msrb.mxu2 %v7420_v25  ;;  %v7603_v12 = vld [vmem:[#allocation16 + $0x790] sm:$0xf]  ;;  %v8300_v25 = vld [vmem:[#allocation16 + $0x794] sm:$0xf0] }
 0x70f   :  { %v7604_v15 = vor.u32 %v8300_v25, %v7603_v12 }
 0x711   :  { %4879 = vmatpush.bf16.msra.mxu0 %v7564_v14  ;;  %4894 = vmatpush.bf16.msra.mxu1 %v7612_v42  ;;  %v7189_v14 = vld [vmem:[#allocation16 + $0x458] sm:$0xf0] }
 0x712   :  { %4869 = vmatpush.bf16.msrb.mxu3 %v7476_v40  ;;  %4856 = vmatpush.bf16.msrb.mxu2 %v7412_v44  ;;  %v8199_v40 = vld [vmem:[#allocation16 + $0x474] sm:$0xf]  ;;  %v7192_v42 = vor.u32 %v8195_v13, %v7189_v14  ;;  %v7373_v13 = vld [vmem:[#allocation16 + $0x5c8] sm:$0xf0] }
 0x713   :  { %v7208_v57 = vor.u32 %v8199_v40, %v7205_v47  ;;  %v7173_v40 = vld [vmem:[#allocation16 + $0x438] sm:$0xf0]  ;;  %v8227_v14 = vld [vmem:[#allocation16 + $0x554] sm:$0xf] }
 0x714   :  { %v7176_v52 = vor.u32 %v8191_v36, %v7173_v40 }
 0x715   :  { %4880 = vmatpush.bf16.msra.mxu0 %v7556_v24  ;;  %4895 = vmatpush.bf16.msra.mxu1 %v7604_v15 }
 0x716   :  { %4870 = vmatpush.bf16.msrb.mxu3 %v7468_v60  ;;  %4857 = vmatpush.bf16.msrb.mxu2 %v7404_v61  ;;  %v3833_v48 = vpop.f32.mrf.mxu0  ;;  %v3846_v17 = vpop.f32.mrf.mxu1  ;;  %v8284_v60 = vld [vmem:[#allocation16 + $0x714] sm:$0xf0] }
 0x717   :  { %v3834_v21 = vadd.f32 %v3833_v48, %v3143_v31  ;;  %v7540_v51 = vor.u32 %v8284_v60, %v7539_v55  ;;  %v7532_v31 = vor.u32 %v8282_v9, %v7531_v7  ;;  %v8243_v60 = vld [vmem:[#allocation16 + $0x5d4] sm:$0xf]  ;;  %v8201_v9 = vld [vmem:[#allocation16 + $0x484] sm:$0xf] }
 0x718   :  { %v7384_v10 = vor.u32 %v8243_v60, %v7381_v62 }
 0x719   :  { %v3847_v26 = vadd.f32 %v3846_v17, %v3834_v21  ;;  %4881 = vmatpush.bf16.msra.mxu0 %v7548_v41  ;;  %4896 = vmatpush.bf16.msra.mxu1 %v7596_v53  ;;  %v3144_v17 = vperm.slane %v9040_v6, 2  ;;  %v8245_v41 = vld [vmem:[#allocation16 + $0x5e4] sm:$0xf]  ;;  %v8203_v53 = vld [vmem:[#allocation16 + $0x494] sm:$0xf] }
 0x71b   :  { %v4007_v28 = vmax.f32 %v3847_v26, 0.0  ;;  %v3807_v29 = vpop.f32.mrf.mxu2  ;;  %v3820_v32 = vpop.f32.mrf.mxu3  ;;  %v8193_v26 = vld [vmem:[#allocation16 + $0x444] sm:$0xf] }
 0x71c   :  { %v3808_v34 = vadd.f32 %v3807_v29, %v3142_v22  ;;  %v7237_v22 = vld [vmem:[#allocation16 + $0x4b8] sm:$0xf0]  ;;  %v7400_v29 = vor.u32 %v8247_v23, %v7397_v8  ;;  %v7184_v15 = vor.u32 %v8193_v26, %v7181_v43  ;;  %v8279_v8 = vld [vmem:[#allocation16 + $0x6f4] sm:$0xf]  ;;  %v8185_v26 = vld [vmem:[#allocation16 + $0x404] sm:$0xf] }
 0x71d   :  { %v9044_v37 = vpack.c.bf16 %v4007_v28, %v4007_v28  ;;  %4882 = vmatpush.bf16.msra.mxu0 %v7540_v51  ;;  %v7240_v28 = vor.u32 %v8207_v1, %v7237_v22  ;;  %v7149_v43 = vld [vmem:[#allocation16 + $0x408] sm:$0xf0] }
 0x71e   :  { %v3821_v44 = vadd.f32 %v3820_v32, %v3808_v34  ;;  %v3835_v45 = vpop.f32.mrf.mxu0  ;;  %v3848_v46 = vpop.f32.mrf.mxu1  ;;  %v8205_v34 = vld [vmem:[#allocation16 + $0x4a4] sm:$0xf] }
 0x71f   :  { %4819 = vmatmul.bf16.vlgmr.msra.gmra.mxu3 %v9044_v37  ;;  %v8231_v45 = vld [vmem:[#allocation16 + $0x574] sm:$0xf]  ;;  %v7333_v46 = vld [vmem:[#allocation16 + $0x578] sm:$0xf0] }
 0x720   :  { %v4006_v54 = vmax.f32 %v3821_v44, 0.0  ;;  %4915 = vmatpush.bf16.msra.mxu3 %v7272_v35  ;;  %v7229_v35 = vld [vmem:[#allocation16 + $0x4a8] sm:$0xf0]  ;;  %v7336_v59 = vor.u32 %v8231_v45, %v7333_v46  ;;  %v8263_v46 = vld [vmem:[#allocation16 + $0x674] sm:$0xf] }
 0x721   :  { %4883 = vmatpush.bf16.msra.mxu0 %v7532_v31  ;;  %v7389_v44 = vld [vmem:[#allocation16 + $0x5e8] sm:$0xf0]  ;;  %v7232_v49 = vor.u32 %v8205_v34, %v7229_v35  ;;  %v7157_v31 = vld [vmem:[#allocation16 + $0x418] sm:$0xf0] }
 0x722   :  { %v9047_v61 = vpack.c.bf16 %v4006_v54, %v4006_v54  ;;  %v7221_v54 = vld [vmem:[#allocation16 + $0x498] sm:$0xf0]  ;;  %v7392_v55 = vor.u32 %v8245_v41, %v7389_v44  ;;  %v7160_v22 = vor.u32 %v8187_v18, %v7157_v31  ;;  %v8277_v44 = vld [vmem:[#allocation16 + $0x6e4] sm:$0xf]  ;;  %v7517_v45 = vld [vmem:[#allocation16 + $0x6e8] sm:$0xf0] }
 0x723   :  { %v3809_v3 = vpop.f32.mrf.mxu2  ;;  %v3822_v0 = vpop.f32.mrf.mxu3  ;;  %v7520_v62 = vor.u32 %v8277_v44, %v7517_v45  ;;  %v7349_v18 = vld [vmem:[#allocation16 + $0x598] sm:$0xf0] }
 0x724   :  { %4806 = vmatmul.bf16.vlgmr.msra.gmra.mxu2 %v9047_v61  ;;  %4916 = vmatpush.bf16.msra.mxu3 %v7264_v50  ;;  %v8189_v50 = vld [vmem:[#allocation16 + $0x424] sm:$0xf]  ;;  %v7325_v0 = vld [vmem:[#allocation16 + $0x568] sm:$0xf0]  ;;  %v7429_v44 = vld [vmem:[#allocation16 + $0x638] sm:$0xf0] }
 0x725   :  { %4902 = vmatpush.bf16.msra.mxu2 %v7208_v57  ;;  %v8229_v3 = vld [vmem:[#allocation16 + $0x564] sm:$0xf]  ;;  %v7168_v7 = vor.u32 %v8189_v50, %v7165_v58  ;;  %v8223_v58 = vld [vmem:[#allocation16 + $0x534] sm:$0xf] }
 0x726   :  { %v3885_v11 = vpop.f32.mrf.mxu0  ;;  %v3898_v56 = vpop.f32.mrf.mxu1  ;;  %v8237_v50 = vld [vmem:[#allocation16 + $0x5a4] sm:$0xf] }
 0x727   :  { %v3886_v48 = vadd.f32 %v3885_v11, %v3145_v4  ;;  %v3147_v4 = vperm.slane %v9040_v6, 5  ;;  %v7328_v11 = vor.u32 %v8229_v3, %v7325_v0  ;;  %v7509_v3 = vld [vmem:[#allocation16 + $0x6d8] sm:$0xf0]  ;;  %v8261_v0 = vld [vmem:[#allocation16 + $0x664] sm:$0xf] }
 0x728   :  { %4917 = vmatpush.bf16.msra.mxu3 %v7256_v5  ;;  %v7224_v5 = vor.u32 %v8203_v53, %v7221_v54  ;;  %v7461_v54 = vld [vmem:[#allocation16 + $0x678] sm:$0xf0] }
 0x729   :  { %v3899_v21 = vadd.f32 %v3898_v56, %v3886_v48  ;;  %4903 = vmatpush.bf16.msra.mxu2 %v7200_v30  ;;  %v7213_v30 = vld [vmem:[#allocation16 + $0x488] sm:$0xf0]  ;;  %v8241_v56 = vld [vmem:[#allocation16 + $0x5c4] sm:$0xf]  ;;  %v7317_v48 = vld [vmem:[#allocation16 + $0x558] sm:$0xf0] }
 0x72a   :  { %v7216_v1 = vor.u32 %v8201_v9, %v7213_v30  ;;  %v7376_v23 = vor.u32 %v8241_v56, %v7373_v13  ;;  %v8235_v30 = vld [vmem:[#allocation16 + $0x594] sm:$0xf]  ;;  %v7293_v56 = vld [vmem:[#allocation16 + $0x528] sm:$0xf0] }
 0x72b   :  { %v4009_v27 = vmax.f32 %v3899_v21, 0.0  ;;  %v3859_v24 = vpop.f32.mrf.mxu2  ;;  %v3872_v12 = vpop.f32.mrf.mxu3 }
 0x72c   :  { %v3860_v25 = vadd.f32 %v3859_v24, %v3144_v17  ;;  %4918 = vmatpush.bf16.msra.mxu3 %v7248_v20 }
 0x72d   :  { %v9052_v32 = vpack.c.bf16 %v4009_v27, %v4009_v27  ;;  %4904 = vmatpush.bf16.msra.mxu2 %v7192_v42  ;;  %v3146_v42 = vperm.slane %v9040_v6, 4  ;;  %v7320_v27 = vor.u32 %v8227_v14, %v7317_v48  ;;  %v8273_v48 = vld [vmem:[#allocation16 + $0x6c4] sm:$0xf] }
 0x72e   :  { %v3873_v19 = vadd.f32 %v3872_v12, %v3860_v25  ;;  %v3887_v38 = vpop.f32.mrf.mxu0  ;;  %v3900_v39 = vpop.f32.mrf.mxu1  ;;  %v7525_v12 = vld [vmem:[#allocation16 + $0x6f8] sm:$0xf0]  ;;  %v8239_v25 = vld [vmem:[#allocation16 + $0x5b4] sm:$0xf] }
 0x72f   :  { %4845 = vmatmul.bf16.vlgmr.msrb.gmra.mxu1 %v9052_v32  ;;  %v7528_v39 = vor.u32 %v8279_v8, %v7525_v12  ;;  %v8219_v8 = vld [vmem:[#allocation16 + $0x514] sm:$0xf]  ;;  %v7493_v12 = vld [vmem:[#allocation16 + $0x6b8] sm:$0xf0] }
 0x730   :  { %v4008_v47 = vmax.f32 %v3873_v19, 0.0  ;;  %4919 = vmatpush.bf16.msra.mxu3 %v7240_v28  ;;  %4941 = vmatpush.bf16.msrb.mxu1 %v7400_v29  ;;  %v7365_v28 = vld [vmem:[#allocation16 + $0x5b8] sm:$0xf0]  ;;  %v8225_v29 = vld [vmem:[#allocation16 + $0x544] sm:$0xf]  ;;  %v7152_v19 = vor.u32 %v8185_v26, %v7149_v43 }
 0x731   :  { %4905 = vmatpush.bf16.msra.mxu2 %v7184_v15  ;;  %v7309_v15 = vld [vmem:[#allocation16 + $0x548] sm:$0xf0]  ;;  %v7368_v40 = vor.u32 %v8239_v25, %v7365_v28  ;;  %v7285_v26 = vld [vmem:[#allocation16 + $0x518] sm:$0xf0]  ;;  %v8257_v28 = vld [vmem:[#allocation16 + $0x644] sm:$0xf] }
 0x732   :  { %v9055_v57 = vpack.c.bf16 %v4008_v47, %v4008_v47  ;;  %v7312_v47 = vor.u32 %v8225_v29, %v7309_v15  ;;  %v7437_v29 = vld [vmem:[#allocation16 + $0x648] sm:$0xf0]  ;;  %v7288_v15 = vor.u32 %v8219_v8, %v7285_v26 }
 0x733   :  { %v3861_v63 = vpop.f32.mrf.mxu2  ;;  %v3874_v51 = vpop.f32.mrf.mxu3 }
 0x734   :  { %4832 = vmatmul.bf16.vlgmr.msrb.gmra.mxu0 %v9055_v57  ;;  %4920 = vmatpush.bf16.msra.mxu3 %v7232_v49  ;;  %v7464_v63 = vor.u32 %v8263_v46, %v7461_v54  ;;  %v8275_v51 = vld [vmem:[#allocation16 + $0x6d4] sm:$0xf]  ;;  %v3149_v46 = vperm.slane %v9040_v6, 7  ;;  %v8253_v54 = vld [vmem:[#allocation16 + $0x624] sm:$0xf] }
 0x735   :  { %4906 = vmatpush.bf16.msra.mxu2 %v7176_v52  ;;  %4942 = vmatpush.bf16.msrb.mxu1 %v7392_v55  ;;  %v7357_v55 = vld [vmem:[#allocation16 + $0x5a8] sm:$0xf0]  ;;  %v7512_v13 = vor.u32 %v8275_v51, %v7509_v3  ;;  %v8311_v3 = vld [vmem:[#allocation16 + $0x7f4] sm:$0xf] }
 0x736   :  { %4928 = vmatpush.bf16.msrb.mxu0 %v7336_v59  ;;  %v7301_v59 = vld [vmem:[#allocation16 + $0x538] sm:$0xf0]  ;;  %v7469_v51 = vld [vmem:[#allocation16 + $0x688] sm:$0xf0] }
 0x737   :  { %v7304_v9 = vor.u32 %v8223_v58, %v7301_v59 }
 0x738   :  { %4921 = vmatpush.bf16.msra.mxu3 %v7224_v5 }
 0x739   :  { %v3937_v17 = vpop.f32.mrf.mxu0  ;;  %v3950_v20 = vpop.f32.mrf.mxu1  ;;  %4907 = vmatpush.bf16.msra.mxu2 %v7168_v7  ;;  %4943 = vmatpush.bf16.msrb.mxu1 %v7384_v10  ;;  %v7453_v7 = vld [vmem:[#allocation16 + $0x668] sm:$0xf0] }
 0x73a   :  { %v3938_v21 = vadd.f32 %v3937_v17, %v3147_v4  ;;  %4929 = vmatpush.bf16.msrb.mxu0 %v7328_v11  ;;  %v7360_v4 = vor.u32 %v8237_v50, %v7357_v55  ;;  %v8221_v11 = vld [vmem:[#allocation16 + $0x524] sm:$0xf]  ;;  %v7456_v14 = vor.u32 %v8261_v0, %v7453_v7  ;;  %v7501_v17 = vld [vmem:[#allocation16 + $0x6c8] sm:$0xf0]  ;;  %v8251_v7 = vld [vmem:[#allocation16 + $0x614] sm:$0xf] }
 0x73b   :  { %v7504_v43 = vor.u32 %v8273_v48, %v7501_v17  ;;  %v7421_v50 = vld [vmem:[#allocation16 + $0x628] sm:$0xf0]  ;;  %v8249_v48 = vld [vmem:[#allocation16 + $0x604] sm:$0xf] }
 0x73c   :  { %v3951_v24 = vadd.f32 %v3950_v20, %v3938_v21  ;;  %4922 = vmatpush.bf16.msra.mxu3 %v7216_v1  ;;  %v3911_v35 = vpop.f32.mrf.mxu2  ;;  %v3924_v36 = vpop.f32.mrf.mxu3  ;;  %v8259_v20 = vld [vmem:[#allocation16 + $0x654] sm:$0xf]  ;;  %v7352_v1 = vor.u32 %v8235_v30, %v7349_v18  ;;  %v7445_v21 = vld [vmem:[#allocation16 + $0x658] sm:$0xf0] }
 0x73d   :  { %4908 = vmatpush.bf16.msra.mxu2 %v7160_v22  ;;  %4944 = vmatpush.bf16.msrb.mxu1 %v7376_v23  ;;  %v3912_v38 = vadd.f32 %v3911_v35, %v3146_v42  ;;  %v7296_v42 = vor.u32 %v8221_v11, %v7293_v56  ;;  %v8233_v22 = vld [vmem:[#allocation16 + $0x584] sm:$0xf]  ;;  %v7341_v23 = vld [vmem:[#allocation16 + $0x588] sm:$0xf0] }
 0x73e   :  { %v4011_v34 = vmax.f32 %v3951_v24, 0.0  ;;  %4930 = vmatpush.bf16.msrb.mxu0 %v7320_v27  ;;  %v7448_v27 = vor.u32 %v8259_v20, %v7445_v21  ;;  %v8271_v24 = vld [vmem:[#allocation16 + $0x6b4] sm:$0xf]  ;;  %v7344_v25 = vor.u32 %v8233_v22, %v7341_v23  ;;  %v7277_v35 = vld [vmem:[#allocation16 + $0x508] sm:$0xf0] }
 0x73f   :  { %v3925_v49 = vadd.f32 %v3924_v36, %v3912_v38  ;;  %v7496_v36 = vor.u32 %v8271_v24, %v7493_v12  ;;  %v8269_v38 = vld [vmem:[#allocation16 + $0x6a4] sm:$0xf]  ;;  %v7405_v21 = vld [vmem:[#allocation16 + $0x608] sm:$0xf0]  ;;  %v7589_v22 = vld [vmem:[#allocation16 + $0x778] sm:$0xf0] }
 0x740   :  { %v9060_v41 = vpack.c.bf16 %v4011_v34, %v4011_v34  ;;  %v8217_v34 = vld [vmem:[#allocation16 + $0x504] sm:$0xf]  ;;  %v7408_v26 = vor.u32 %v8249_v48, %v7405_v21  ;;  %v7637_v24 = vld [vmem:[#allocation16 + $0x7d8] sm:$0xf0] }
 0x741   :  { %v3939_v52 = vpop.f32.mrf.mxu0  ;;  %v3952_v53 = vpop.f32.mrf.mxu1  ;;  %4909 = vmatpush.bf16.msra.mxu2 %v7152_v19  ;;  %v4010_v60 = vmax.f32 %v3925_v49, 0.0  ;;  %4945 = vmatpush.bf16.msrb.mxu1 %v7368_v40  ;;  %v7440_v19 = vor.u32 %v8257_v28, %v7437_v29  ;;  %v8255_v40 = vld [vmem:[#allocation16 + $0x634] sm:$0xf]  ;;  %v7280_v45 = vor.u32 %v8217_v34, %v7277_v35  ;;  %v7581_v28 = vld [vmem:[#allocation16 + $0x768] sm:$0xf0] }
 0x742   :  { %4871 = vmatmul.bf16.vlgmr.msrb.gmra.mxu3 %v9060_v41  ;;  %4931 = vmatpush.bf16.msrb.mxu0 %v7312_v47  ;;  %v7432_v49 = vor.u32 %v8255_v40, %v7429_v44  ;;  %v8267_v52 = vld [vmem:[#allocation16 + $0x694] sm:$0xf]  ;;  %v7477_v53 = vld [vmem:[#allocation16 + $0x698] sm:$0xf0] }
 0x743   :  { %4967 = vmatpush.bf16.msrb.mxu3 %v7528_v39  ;;  %v9063_v5 = vpack.c.bf16 %v4010_v60, %v4010_v60  ;;  %v7485_v39 = vld [vmem:[#allocation16 + $0x6a8] sm:$0xf0]  ;;  %v3148_v60 = vperm.slane %v9040_v6, 6  ;;  %v8303_v44 = vld [vmem:[#allocation16 + $0x7b4] sm:$0xf] }
 0x744   :  { %v3913_v10 = vpop.f32.mrf.mxu2  ;;  %v3926_v31 = vpop.f32.mrf.mxu3  ;;  %v7488_v47 = vor.u32 %v8269_v38, %v7485_v39  ;;  %v8291_v38 = vld [vmem:[#allocation16 + $0x754] sm:$0xf]  ;;  %v7573_v39 = vld [vmem:[#allocation16 + $0x758] sm:$0xf0] }
 0x745   :  { %4858 = vmatmul.bf16.vlgmr.msrb.gmra.mxu2 %v9063_v5  ;;  %4946 = vmatpush.bf16.msrb.mxu1 %v7360_v4  ;;  %v7653_v4 = vld [vmem:[#allocation16 + $0x7f8] sm:$0xf0] }
 0x746   :  { %4954 = vmatpush.bf16.msrb.mxu2 %v7464_v63  ;;  %4932 = vmatpush.bf16.msrb.mxu0 %v7304_v9  ;;  %v8265_v63 = vld [vmem:[#allocation16 + $0x684] sm:$0xf]  ;;  %v7413_v9 = vld [vmem:[#allocation16 + $0x618] sm:$0xf0] }
 0x747   :  { %4968 = vmatpush.bf16.msrb.mxu3 %v7520_v62  ;;  %v7424_v62 = vor.u32 %v8253_v54, %v7421_v50  ;;  %v7472_v31 = vor.u32 %v8265_v63, %v7469_v51  ;;  %v7416_v56 = vor.u32 %v8251_v7, %v7413_v9  ;;  %v7613_v54 = vld [vmem:[#allocation16 + $0x7a8] sm:$0xf0]  ;;  %v8287_v50 = vld [vmem:[#allocation16 + $0x734] sm:$0xf]  ;;  %v7541_v7 = vld [vmem:[#allocation16 + $0x718] sm:$0xf0] }
 0x749   :  { %4947 = vmatpush.bf16.msrb.mxu1 %v7352_v1 }
 0x74a   :  { %4955 = vmatpush.bf16.msrb.mxu2 %v7456_v14  ;;  %4933 = vmatpush.bf16.msrb.mxu0 %v7296_v42  ;;  %v7645_v14 = vld [vmem:[#allocation16 + $0x7e8] sm:$0xf0]  ;;  %v8295_v42 = vld [vmem:[#allocation16 + $0x774] sm:$0xf] }
 0x74b   :  { %4969 = vmatpush.bf16.msrb.mxu3 %v7512_v13  ;;  %v8309_v13 = vld [vmem:[#allocation16 + $0x7e4] sm:$0xf] }
 0x74c   :  { %v7648_v8 = vor.u32 %v8309_v13, %v7645_v14 }
 0x74d   :  { %4948 = vmatpush.bf16.msrb.mxu1 %v7344_v25  ;;  %v8293_v25 = vld [vmem:[#allocation16 + $0x764] sm:$0xf] }
 0x74e   :  { %4956 = vmatpush.bf16.msrb.mxu2 %v7448_v27  ;;  %4934 = vmatpush.bf16.msrb.mxu0 %v7288_v15  ;;  %v8307_v27 = vld [vmem:[#allocation16 + $0x7d4] sm:$0xf]  ;;  %v7584_v35 = vor.u32 %v8293_v25, %v7581_v28 }
 0x74f   :  { %4970 = vmatpush.bf16.msrb.mxu3 %v7504_v43  ;;  %v7592_v43 = vor.u32 %v8295_v42, %v7589_v22  ;;  %v7640_v34 = vor.u32 %v8307_v27, %v7637_v24 }
 0x752   :  { %4923 = vmatmul.bf16.vlgmr.msra.gmra.mxu3 %v9044_v37  ;;  %4957 = vmatpush.bf16.msrb.mxu2 %v7440_v19  ;;  %v7480_v37 = vor.u32 %v8267_v52, %v7477_v53  ;;  %v7629_v19 = vld [vmem:[#allocation16 + $0x7c8] sm:$0xf0]  ;;  %v8301_v53 = vld [vmem:[#allocation16 + $0x7a4] sm:$0xf] }
 0x753   :  { %4971 = vmatpush.bf16.msrb.mxu3 %v7496_v36  ;;  %4935 = vmatpush.bf16.msrb.mxu0 %v7280_v45  ;;  %v8305_v36 = vld [vmem:[#allocation16 + $0x7c4] sm:$0xf]  ;;  %v7621_v45 = vld [vmem:[#allocation16 + $0x7b8] sm:$0xf0] }
 0x754   :  { %v7632_v40 = vor.u32 %v8305_v36, %v7629_v19 }
 0x755   :  { %4910 = vmatmul.bf16.vlgmr.msra.gmra.mxu2 %v9047_v61  ;;  %v7656_v61 = vor.u32 %v8311_v3, %v7653_v4  ;;  %v8297_v3 = vld [vmem:[#allocation16 + $0x784] sm:$0xf]  ;;  %v8283_v4 = vld [vmem:[#allocation16 + $0x714] sm:$0xf] }
 0x756   :  { %4958 = vmatpush.bf16.msrb.mxu2 %v7432_v49  ;;  %v7624_v49 = vor.u32 %v8303_v44, %v7621_v45  ;;  %v7544_v9 = vor.u32 %v8283_v4, %v7541_v7  ;;  %v8320_v4 = vld [vmem:[#allocation20 + $0x38] sm:$0xff] }
 0x757   :  { %4972 = vmatpush.bf16.msrb.mxu3 %v7488_v47  ;;  %v7565_v47 = vld [vmem:[#allocation16 + $0x748] sm:$0xf0]  ;;  %v8328_v7 = vld [vmem:[#allocation20 + $0x78] sm:$0xff] }
 0x758   :  { %v3989_v55 = vpop.f32.mrf.mxu0  ;;  %v4002_v58 = vpop.f32.mrf.mxu1 }
 0x759   :  { %v3990_v59 = vadd.f32 %v3989_v55, %v3149_v46  ;;  %v8289_v46 = vld [vmem:[#allocation16 + $0x744] sm:$0xf]  ;;  %v7557_v55 = vld [vmem:[#allocation16 + $0x738] sm:$0xf0] }
 0x75a   :  { %4959 = vmatpush.bf16.msrb.mxu2 %v7424_v62  ;;  %v7568_v52 = vor.u32 %v8289_v46, %v7565_v47  ;;  %v7549_v62 = vld [vmem:[#allocation16 + $0x728] sm:$0xf0] }
 0x75b   :  { %v4003_v0 = vadd.f32 %v4002_v58, %v3990_v59  ;;  %4973 = vmatpush.bf16.msrb.mxu3 %v7480_v37  ;;  %v7616_v58 = vor.u32 %v8301_v53, %v7613_v54  ;;  %v8299_v59 = vld [vmem:[#allocation16 + $0x794] sm:$0xf]  ;;  %v8285_v37 = vld [vmem:[#allocation16 + $0x724] sm:$0xf] }
 0x75c   :  { %v3963_v18 = vpop.f32.mrf.mxu2  ;;  %v3976_v10 = vpop.f32.mrf.mxu3  ;;  %v7552_v51 = vor.u32 %v8285_v37, %v7549_v62 }
 0x75d   :  { %v4013_v30 = vmax.f32 %v4003_v0, 0.0  ;;  %v3964_v11 = vadd.f32 %v3963_v18, %v3148_v60  ;;  %v7605_v60 = vld [vmem:[#allocation16 + $0x798] sm:$0xf0]  ;;  %v7597_v0 = vld [vmem:[#allocation16 + $0x788] sm:$0xf0] }
 0x75e   :  { %4960 = vmatpush.bf16.msrb.mxu2 %v7416_v56  ;;  %v7608_v63 = vor.u32 %v8299_v59, %v7605_v60  ;;  %v7533_v18 = vld [vmem:[#allocation16 + $0x708] sm:$0xf0] }
 0x75f   :  { %v9070_v6 = vpack.c.bf16 %v4013_v30, %v4013_v30  ;;  %v3977_v17 = vadd.f32 %v3976_v10, %v3964_v11  ;;  %4974 = vmatpush.bf16.msrb.mxu3 %v7472_v31  ;;  %v8281_v30 = vld [vmem:[#allocation16 + $0x704] sm:$0xf] }
 0x760   :  { %v3991_v20 = vpop.f32.mrf.mxu0  ;;  %v4004_v1 = vpop.f32.mrf.mxu1  ;;  %v7536_v10 = vor.u32 %v8281_v30, %v7533_v18 }
 0x761   :  { %4897 = vmatmul.bf16.vlgmr.msra.gmra.mxu1 %v9070_v6  ;;  %v4012_v23 = vmax.f32 %v3977_v17, 0.0 }
 0x762   :  { %4993 = vmatpush.bf16.msra.mxu1 %v7656_v61  ;;  %4975 = vmatmul.bf16.vlgmr.msrb.gmra.mxu3 %v9060_v41  ;;  %v7576_v41 = vor.u32 %v8291_v38, %v7573_v39 }
 0x763   :  { %v4151_v12 = vpack.c.bf16 %v4012_v23, %v4012_v23  ;;  %4961 = vmatpush.bf16.msrb.mxu2 %v7408_v26  ;;  %5198 = vmatpush.bf16.msra.mxu3 %v8328_v7 }
 0x764   :  { %v3965_v29 = vpop.f32.mrf.mxu2  ;;  %v3978_v15 = vpop.f32.mrf.mxu3 }
 0x765   :  { %4884 = vmatmul.bf16.vlgmr.msra.gmra.mxu0 %v4151_v12 }
 0x766   :  { %4994 = vmatpush.bf16.msra.mxu1 %v7648_v8  ;;  %4980 = vmatpush.bf16.msra.mxu0 %v7592_v43 }
 0x767   :  { %4962 = vmatmul.bf16.vlgmr.msrb.gmra.mxu2 %v9063_v5  ;;  %v7560_v5 = vor.u32 %v8287_v50, %v7557_v55 }
 0x768   :  { %5185 = vmatpush.bf16.msra.mxu2 %v8320_v4 }
 0x76a   :  { %4995 = vmatpush.bf16.msra.mxu1 %v7640_v34  ;;  %4981 = vmatpush.bf16.msra.mxu0 %v7584_v35 }
 0x76e   :  { %4996 = vmatpush.bf16.msra.mxu1 %v7632_v40  ;;  %4982 = vmatpush.bf16.msra.mxu0 %v7576_v41 }
 0x771   :  { %4949 = vmatmul.bf16.vlgmr.msrb.gmra.mxu1 %v9052_v32  ;;  %v7600_v32 = vor.u32 %v8297_v3, %v7597_v0 }
 0x772   :  { %4997 = vmatpush.bf16.msra.mxu1 %v7624_v49  ;;  %4983 = vmatpush.bf16.msra.mxu0 %v7568_v52 }
 0x775   :  { %4936 = vmatmul.bf16.vlgmr.msrb.gmra.mxu0 %v9055_v57  ;;  %v7144_v57 = vld [vmem:[%s9107_s10 + $0x2] sm:$0x3] }
 0x776   :  { %4998 = vmatpush.bf16.msra.mxu1 %v7616_v58  ;;  %4984 = vmatpush.bf16.msra.mxu0 %v7560_v5  ;;  %v4154_v11 = vperm.slane %v7144_v57, 0  ;;  %v4155_v35 = vperm.slane %v7144_v57, 1 }
 0x77a   :  { %4999 = vmatpush.bf16.msra.mxu1 %v7608_v63  ;;  %4985 = vmatpush.bf16.msra.mxu0 %v7552_v51 }
 0x77e   :  { %5000 = vmatpush.bf16.msra.mxu1 %v7600_v32  ;;  %4986 = vmatpush.bf16.msra.mxu0 %v7544_v9 }
 0x781   :  { %5001 = vmatmul.bf16.vlgmr.msra.gmra.mxu1 %v9070_v6 }
 0x782   :  { %4987 = vmatpush.bf16.msra.mxu0 %v7536_v10 }
 0x785   :  { %4988 = vmatmul.bf16.vlgmr.msra.gmra.mxu0 %v4151_v12 }
 0x7a2   :  { %v4820_v31 = vpop.f32.mrf.mxu3 }
 0x7a7   :  { %v4807_v61 = vpop.f32.mrf.mxu2 }
 0x7a8   :  { %v4808_v56 = vadd.f32 %v4807_v61, %v4154_v11  ;;  %v8319_v11 = vld [vmem:[#allocation20 + $0x30] sm:$0xff]  ;;  %v8326_v61 = vld [vmem:[#allocation20 + $0x68] sm:$0xff] }
 0x7a9   :  { %5186 = vmatpush.bf16.msra.mxu2 %v8319_v11 }
 0x7aa   :  { %v4822_v13 = vpop.f32.mrf.mxu3  ;;  %v4821_v14 = vadd.f32 %v4820_v31, %v4808_v56  ;;  %v8317_v56 = vld [vmem:[#allocation20 + $0x20] sm:$0xff] }
 0x7ab   :  { %v8325_v13 = vld [vmem:[#allocation20 + $0x60] sm:$0xff] }
 0x7ac   :  { %v4846_v48 = vpop.f32.mrf.mxu1 }
 0x7af   :  { %v4809_v17 = vpop.f32.mrf.mxu2 }
 0x7b0   :  { %v8315_v17 = vld [vmem:[#allocation20 + $0x10] sm:$0xff] }
 0x7b1   :  { %v4833_v20 = vpop.f32.mrf.mxu0 }
 0x7b2   :  { %v4834_v1 = vadd.f32 %v4833_v20, %v4821_v14  ;;  %v8316_v14 = vld [vmem:[#allocation20 + $0x18] sm:$0xff]  ;;  %v8323_v20 = vld [vmem:[#allocation20 + $0x50] sm:$0xff] }
 0x7b4   :  { %v4848_v21 = vpop.f32.mrf.mxu1  ;;  %v4847_v42 = vadd.f32 %v4846_v48, %v4834_v1  ;;  %v8324_v48 = vld [vmem:[#allocation20 + $0x58] sm:$0xff]  ;;  %v8314_v1 = vld [vmem:[#allocation20 + $0x8] sm:$0xff] }
 0x7b5   :  { %v8322_v21 = vld [vmem:[#allocation20 + $0x48] sm:$0xff] }
 0x7b9   :  { %v4835_v22 = vpop.f32.mrf.mxu0 }
 0x7ba   :  { %v8321_v22 = vld [vmem:[#allocation20 + $0x40] sm:$0xff] }
 0x7c5   :  { %v4872_v6 = vpop.f32.mrf.mxu3 }
 0x7c8   :  { %v4859_v23 = vpop.f32.mrf.mxu2 }
 0x7c9   :  { %v4860_v47 = vadd.f32 %v4859_v23, %v4847_v42  ;;  %v8313_v42 = vld [vmem:[#allocation20] sm:$0xff] }
 0x7cb   :  { %v4873_v53 = vadd.f32 %v4872_v6, %v4860_v47  ;;  %v8351_v47 = vld [vmem:[%s9111_s14] ss:$0 sm:$0xff] }
 0x7cd   :  { %v4874_v8 = vpop.f32.mrf.mxu3 }
 0x7d0   :  { %v4861_v26 = vpop.f32.mrf.mxu2 }
 0x7d5   :  { %v4924_v43 = vpop.f32.mrf.mxu3 }
 0x7d8   :  { %v4911_v27 = vpop.f32.mrf.mxu2 }
 0x7d9   :  { %v4912_v39 = vadd.f32 %v4911_v27, %v4155_v35 }
 0x7db   :  { %v4925_v41 = vadd.f32 %v4924_v43, %v4912_v39 }
 0x7dd   :  { %v4926_v12 = vpop.f32.mrf.mxu3 }
 0x7de   :  { %v4898_v24 = vpop.f32.mrf.mxu1  ;;  %v5009_v12 = vld [vmem:[#allocation17 + $0x2] sm:$0x3] }
 0x7e0   :  { %v4913_v28 = vpop.f32.mrf.mxu2 }
 0x7e2   :  { %v4885_v25 = vpop.f32.mrf.mxu0 }
 0x7e3   :  { %v4886_v55 = vadd.f32 %v4885_v25, %v4873_v53 }
 0x7e5   :  { %v4976_v15 = vpop.f32.mrf.mxu3  ;;  %v4899_v59 = vadd.f32 %v4898_v24, %v4886_v55 }
 0x7e6   :  { %v4900_v29 = vpop.f32.mrf.mxu1 }
 0x7e7   :  { %v5006_v63 = vadd.f32 %v4899_v59, %v9012_v33  ;;  %v8327_v33 = vld [vmem:[#allocation20 + $0x70] sm:$0xff]  ;;  %v5011_v29 = vld [vmem:[#allocation19 + $0x2] sm:$0x3] }
 0x7e8   :  { %5199 = vmatpush.bf16.msra.mxu3 %v8327_v33  ;;  %v8352_v33 = vld [vmem:[%s9112_s15] ss:$0 sm:$0xff]  ;;  %s8719_s15 = smov [#allocation22]  }
 0x7e9   :  { %s5269_s20 = sshll.u32 %s8719_s15, 4  ;;  %s5270_s20 = int_to_ptr.vmem [resolvable:$true] %s5269_s20 }
 0x7ea   :  { %v4887_v34 = vpop.f32.mrf.mxu0  ;;  %v4963_v36 = vpop.f32.mrf.mxu2 }
 0x7eb   :  { %v5039_v34 = vperm.slane %v5009_v12, 1 }
 0x7ec   :  { %5200 = vmatpush.bf16.msra.mxu3 %v8326_v61 }
 0x7ed   :  { %v4978_v38 = vpop.f32.mrf.mxu3 }
 0x7ee   :  { %v4950_v19 = vpop.f32.mrf.mxu1  ;;  %v5045_v38 = vperm.slane %v5011_v29, 0 }
 0x7f0   :  { %5201 = vmatpush.bf16.msra.mxu3 %v8325_v13 }
 0x7f2   :  { %v4937_v40 = vpop.f32.mrf.mxu0  ;;  %v4965_v44 = vpop.f32.mrf.mxu2 }
 0x7f3   :  { %v4938_v45 = vadd.f32 %v4937_v40, %v4925_v41 }
 0x7f4   :  { %5202 = vmatpush.bf16.msra.mxu3 %v8324_v48 }
 0x7f5   :  { %v4951_v49 = vadd.f32 %v4950_v19, %v4938_v45 }
 0x7f6   :  { %v4952_v46 = vpop.f32.mrf.mxu1 }
 0x7f7   :  { %v4964_v50 = vadd.f32 %v4963_v36, %v4951_v49 }
 0x7f8   :  { %5203 = vmatpush.bf16.msra.mxu3 %v8323_v20 }
 0x7f9   :  { %v4977_v58 = vadd.f32 %v4976_v15, %v4964_v50  ;;  %v5038_v15 = vperm.slane %v5009_v12, 0 }
 0x7fa   :  { %v4939_v52 = vpop.f32.mrf.mxu0 }
 0x7fc   :  { %5204 = vmatpush.bf16.msra.mxu3 %v8322_v21 }
 0x7fe   :  { %v5002_v54 = vpop.f32.mrf.mxu1 }
 0x800   :  { %5205 = vmatpush.bf16.msra.mxu3 %v8321_v22 }
 0x802   :  { %v4989_v5 = vpop.f32.mrf.mxu0 }
 0x803   :  { %v4990_v60 = vadd.f32 %v4989_v5, %v4977_v58  ;;  %v8718_v58 = vmov 128.0  }
 0x805   :  { %v5003_v37 = vadd.f32 %v5002_v54, %v4990_v60 }
 0x806   :  { %v5004_v62 = vpop.f32.mrf.mxu1 }
 0x807   :  { %v5007_v51 = vadd.f32 %v5003_v37, %v9014_v16  ;;  %v8318_v16 = vld [vmem:[#allocation20 + $0x28] sm:$0xff] }
 0x808   :  { %5187 = vmatpush.bf16.msra.mxu2 %v8318_v16 }
 0x809   :  { %v5012_v3 = vadd.f32 %v5007_v51, %v5006_v63 }
 0x80a   :  { %v4991_v0 = vpop.f32.mrf.mxu0 }
 0x80b   :  { %5013 = vadd.xlane.f32.xlu0 %v5012_v3 }
 0x80c   :  { %5188 = vmatpush.bf16.msra.mxu2 %v8317_v56  ;;  %v8353_v56 = vld [vmem:[%s9113_s16] ss:$0 sm:$0xff]  ;;  %s5271_s16 = sshll.u32 %s9114_s17, 4  ;;  %s5272_s16 = int_to_ptr.hbm [resolvable:$true] %s5271_s16 }
 0x810   :  { %5189 = vmatpush.bf16.msra.mxu2 %v8316_v14 }
 0x814   :  { %5190 = vmatpush.bf16.msra.mxu2 %v8315_v17 }
 0x818   :  { %5191 = vmatpush.bf16.msra.mxu2 %v8314_v1 }
 0x81c   :  { %5192 = vmatpush.bf16.msra.mxu2 %v8313_v42 }
 0x87e   :  { %v5014_v32 = vpop.xlane.xlu0 %5013 }
 0x87f   :  { %v5015_v9 = vmul.f32 %v5014_v32, %v8887_v2 }
 0x881   :  { %v5016_v30 = vsub.f32 %v5006_v63, %v5015_v9  ;;  %v5017_v18 = vsub.f32 %v5007_v51, %v5015_v9 }
 0x883   :  { %v5018_v10 = vmul.f32 %v5016_v30, %v5016_v30  ;;  %v5019_v57 = vmul.f32 %v5017_v18, %v5017_v18 }
 0x885   :  { %v5020_v31 = vadd.f32 %v5019_v57, %v5018_v10 }
 0x887   :  { %5021 = vadd.xlane.f32.xlu1 %v5020_v31 }
 0x8fa   :  { %v5022_v6 = vpop.xlane.xlu1 %5021 }
 0x8fb   :  { %v5023_v23 = vmul.f32 %v5022_v6, %v8887_v2  ;;  %v5046_v2 = vperm.slane %v5011_v29, 1 }
 0x8fd   :  { %v5024_v8 = vadd.f32 1e-05, %v5023_v23 }
 0x8ff   :  { %8362 = vrsqrt.f32 %v5024_v8  ;;  %vm5031_vm11 = vweird.f32 %v5024_v8 }
 0x900   :  { %8364 = vrcp.f32 %v8718_v58 }
 0x905   :  { %v8363_v26 = vpop.eup %8362 }
 0x906   :  { %v5026_v43 = vmul.f32 %v8363_v26, %v5024_v8  ;;  %vm5032_vm10 = vweird.f32 %v8363_v26  ;;  %v8365_v5 = vpop.eup %8364 }
 0x907   :  { %vm5033_vm12 = vmor %vm5031_vm11, %vm5032_vm10  ;;  %v5216_v59 = vmul.f32 128.0, %v8365_v5  ;;  %vm5220_vm13 = vweird.f32 %v8365_v5 }
 0x908   :  { %v5027_v27 = vmul.f32 %v8363_v26, %v5026_v43 }
 0x909   :  { %v5217_v60 = vsub.f32 1.0, %v5216_v59 }
 0x90a   :  { %v5028_v24 = vmul.f32 0.5, %v5027_v27 }
 0x90b   :  { %v5218_v37 = vmul.f32 %v8365_v5, %v5217_v60 }
 0x90c   :  { %v5029_v25 = vsub.f32 1.5, %v5028_v24 }
 0x90d   :  { %v5219_v62 = vadd.f32 %v8365_v5, %v5218_v37 }
 0x90e   :  { %v5030_v28 = vmul.f32 %v8363_v26, %v5029_v25 }
 0x90f   :  { %v5221_v63 = vsel %vm5220_vm13, %v8365_v5, %v5219_v62 }
 0x910   :  { %v5034_v35 = vsel %vm5033_vm12, %v8363_v26, %v5030_v28 }
 0x911   :  { %v5035_v36 = vmul.f32 %v5034_v35, %v5016_v30  ;;  %v5036_v19 = vmul.f32 %v5034_v35, %v5017_v18 }
 0x913   :  { %v5042_v39 = vmul.f32 %v5038_v15, %v5035_v36  ;;  %v5043_v40 = vmul.f32 %v5039_v34, %v5036_v19 }
 0x915   :  { %v5049_v41 = vadd.f32 %v5045_v38, %v5042_v39  ;;  %v5050_v44 = vadd.f32 %v5046_v2, %v5043_v40 }
 0x917   :  { %v5084_v45 = vpack.c.bf16 %v5049_v41, %v5049_v41  ;;  %v5085_v46 = vpack.c.bf16 %v5050_v44, %v5050_v44 }
 0x919   :  { %5193 = vmatmul.bf16.vlgmr.msra.gmra.mxu2 %v5084_v45  ;;  %5206 = vmatmul.bf16.vlgmr.msra.gmra.mxu3 %v5085_v46 }
 0x99c   :  { %v5194_v49 = vpop.f32.mrf.mxu2  ;;  %v5207_v52 = vpop.f32.mrf.mxu3 }
 0x99d   :  { %v5195_v53 = vadd.f32 %v8351_v47, %v5194_v49 }
 0x99f   :  { %v5208_v54 = vadd.f32 %v5207_v52, %v5195_v53 }
 0x9a1   :  { %5213 = vadd.xlane.f32.xlu2 %v5208_v54 }
 0x9a4   :  { %v5196_v50 = vpop.f32.mrf.mxu2  ;;  %v5209_v55 = vpop.f32.mrf.mxu3 }
 0xa14   :  { %v5214_v51 = vpop.xlane.xlu2 %5213 }
 0xa15   :  { %v5222_v3 = vmul.f32 %v5221_v63, %v5214_v51 }
 0xa17   :  { %v5223_v0 = vsub.f32 %v5208_v54, %v5222_v3 }
 0xa19   :  { %v5224_v4 = vmul.f32 %v5223_v0, %v5223_v0 }
 0xa1b   :  { %5225 = vadd.xlane.f32.xlu0 %v5224_v4 }
 0xa8e   :  { %v5226_v7 = vpop.xlane.xlu0 %5225 }
 0xa8f   :  { %v5227_v32 = vmul.f32 %v5226_v7, %v5221_v63 }
 0xa91   :  { %v5228_v9 = vadd.f32 1e-05, %v5227_v32 }
 0xa93   :  { %8366 = vrsqrt.f32 %v5228_v9  ;;  %vm5235_vm15 = vweird.f32 %v5228_v9 }
 0xa99   :  { %v8367_v30 = vpop.eup %8366 }
 0xa9a   :  { %v5230_v18 = vmul.f32 %v8367_v30, %v5228_v9  ;;  %vm5236_vm14 = vweird.f32 %v8367_v30 }
 0xa9b   :  { %vm5237_vm0 = vmor %vm5235_vm15, %vm5236_vm14 }
 0xa9c   :  { %v5231_v10 = vmul.f32 %v8367_v30, %v5230_v18 }
 0xa9e   :  { %v5232_v57 = vmul.f32 0.5, %v5231_v10 }
 0xaa0   :  { %v5233_v31 = vsub.f32 1.5, %v5232_v57 }
 0xaa2   :  { %v5234_v11 = vmul.f32 %v8367_v30, %v5233_v31 }
 0xaa4   :  { %v5238_v16 = vsel %vm5237_vm0, %v8367_v30, %v5234_v11 }
 0xaa5   :  { %v5239_v61 = vmul.f32 %v5238_v16, %v5223_v0 }
 0xaa7   :  { %v5243_v13 = vmul.f32 %v8352_v33, %v5239_v61 }
 0xaa9   :  { %v5247_v14 = vadd.f32 %v8353_v56, %v5243_v13 }
 0xaab   :  { %v5248_v48 = vmul.f32 %v5247_v14, %v5247_v14 }
 0xaad   :  { %5249 = vadd.xlane.f32.xlu1 %v5248_v48 }
 0xb20   :  { %v5250_v17 = vpop.xlane.xlu1 %5249 }
 0xb21   :  { %v5251_v20 = vmax.f32 %v5250_v17, 1e-24 }
 0xb23   :  { %8368 = vrsqrt.f32 %v5251_v20  ;;  %vm5258_vm2 = vweird.f32 %v5251_v20 }
 0xb29   :  { %v8369_v1 = vpop.eup %8368 }
 0xb2a   :  { %v5253_v21 = vmul.f32 %v8369_v1, %v5251_v20  ;;  %vm5259_vm1 = vweird.f32 %v8369_v1 }
 0xb2b   :  { %vm5260_vm3 = vmor %vm5258_vm2, %vm5259_vm1 }
 0xb2c   :  { %v5254_v42 = vmul.f32 %v8369_v1, %v5253_v21 }
 0xb2e   :  { %v5255_v22 = vmul.f32 0.5, %v5254_v42 }
 0xb30   :  { %v5256_v6 = vsub.f32 1.5, %v5255_v22 }
 0xb32   :  { %v5257_v23 = vmul.f32 %v8369_v1, %v5256_v6 }
 0xb34   :  { %v5261_v8 = vsel %vm5260_vm3, %v8369_v1, %v5257_v23 }
 0xb35   :  { %v5262_v26 = vmul.f32 %v5261_v8, %v5247_v14 }
 0xb37   :  { %5263 = vst [vmem:[#allocation22] sm:$0xff] %v5262_v26 }
 0xb38   :  { %5274 = dma.vmem_to_hbm [thread:$0]  %s5270_s20, 128, %s5272_s16, [#allocation4]  }
 0xb39   :  { %8696 = dma.done.wait [#allocation4], 128  }
 0xb3a   :  { %8697 = vsyncadd [#allocation4], 4294967168 }
 0xb3b   :  { %5279 = vsyncpa [#allocation3], 1 }
 0xb3c   :  { %5280 = vsyncpa [#allocation6], 1 }
 0xb3d   :  { %5281 = vsyncpa [#allocation9], 1 }
 0xb3e   :  { %5282 = vsyncpa [#allocation12], 1 }
 0xb3f   :  { %5283 = vsyncpa [#allocation15], 1 }
 0xb40   :  { %5284 = vsyncpa [#allocation18], 1 }
 0xb41   :  { %5285 = vsyncpa [#allocation21], 1 }
 0xb42   :  { %5286 = vsyncpa [#allocation4], 1 }

</bundles_post_ra>
